<compile_context>
chip_gen: v7x
topology: tpu7x:2x2x1
jax: 0.10.0
libtpu: 0.0.40
codegen_flags: <defaults>
</compile_context>

<pallas_src>
import functools
import math

import jax
import jax.numpy as jnp
import numpy as np
from jax import lax
from jax.experimental import pallas as pl
from jax.experimental.pallas import tpu as pltpu


# ----------------------------------------------------------------------------
# Pallas kernel: one grid step integrates `chunk` Euler steps.
# ----------------------------------------------------------------------------
def _bmed_lstm_kernel(
    s0_ref,      # (B, S)      f32   initial integrated state
    gsx0_ref,    # (B, 4H)     f32   x-const + layer-0 biases + s0 @ W0s
    w0_ref,      # (H, 8H)     bf16  stacked [W1ih | W0h]       (h0 weight)
    w1hh_ref,    # (H, 4H)     bf16  W1hh                        (h1 -> gates1)
    wst_ref,     # (H, 4H+S)   bf16  stacked [dt*Wfc@W0s | Wfc]  (h1 -> gsx/out)
    b1_ref,      # (B, 4H)     f32   b_ih1 + b_hh1 (pre-broadcast)
    bfc_ref,     # (B, S)      f32   fc bias       (pre-broadcast)
    gb_ref,      # (B, 4H)     f32   dt * (b_fc @ W0s) (pre-broadcast)
    out_ref,     # (1, B, chunk*2S)  packed per-step [s | step_out]
    cf_sc,       # (B, 6H+S)   f32   carry: [gsx | c0 | c1 | s]
    cb_sc,       # (B, 2H)     bf16  carry: [h0 | h1]
    *,
    chunk: int,
    hidden_size: int,
    s_size: int,
    dt: float,
):
    H = hidden_size
    H4 = 4 * H
    B = s0_ref.shape[0]

    @pl.when(pl.program_id(0) == 0)
    def _():
        cf_sc[...] = jnp.concatenate(
            [gsx0_ref[...], jnp.zeros((B, 2 * H), jnp.float32), s0_ref[...]],
            axis=1,
        )
        cb_sc[...] = jnp.zeros(cb_sc.shape, cb_sc.dtype)

    # Hoisted loads (stay resident across the unrolled steps).
    w0 = w0_ref[...]
    w1hh = w1hh_ref[...]
    wst = wst_ref[...]
    b1 = b1_ref[...]
    bfc = bfc_ref[...]
    gb = gb_ref[...]
    cdt = w0.dtype  # bf16 matmul compute dtype

    cf = cf_sc[...]
    gsx = cf[:, 0:H4]
    c0 = cf[:, H4:H4 + H]
    c1 = cf[:, H4 + H:H4 + 2 * H]
    s = cf[:, H4 + 2 * H:]
    cb = cb_sc[...]
    h0b = cb[:, 0:H]
    h1b = cb[:, H:]

    def gates(pre, c_prev):
        # Gate columns were permuted to [i, f, o, g] in the wrapper, so the
        # sigmoid covers a contiguous 3H prefix and tanh only the last H.
        sg = jax.nn.sigmoid(pre[:, :3 * H])
        g = jnp.tanh(pre[:, 3 * H:])
        i = sg[:, 0:H]
        f = sg[:, H:2 * H]
        o = sg[:, 2 * H:3 * H]
        c_new = f * c_prev + i * g
        h_new = o * jnp.tanh(c_new)
        return h_new, c_new

    # Block-entry bridge: contribution of the carried h0 to the first layer-0
    # pre-activation of this block (the W1ih half of the stacked dot is unused
    # here; one extra tiny dot per chunk on an otherwise idle MXU).
    d0h = jnp.dot(h0b, w0, preferred_element_type=jnp.float32)[:, H4:]

    # Fully unrolled inner loop: static lane offsets for the packed stores and
    # a wide window for the scheduler to overlap MXU fill/drain with VPU/EUP.
    for j in range(chunk):
        # Layer 0: pre0 = (x-const + biases + s @ W0s) + h0_prev @ W0h,
        # with the state contribution carried in f32 (no concat, no bf16 s).
        pre0 = gsx + d0h
        h0f, c0 = gates(pre0, c0)
        h0b = h0f.astype(cdt)                  # single bf16 cast, reused twice

        # One stacked MXU pass for both uses of the new h0:
        #   [:, :4H] = h0 @ W1ih   (layer-1, this step)
        #   [:, 4H:] = h0 @ W0h    (layer-0, next step)
        d0 = jnp.dot(h0b, w0, preferred_element_type=jnp.float32)
        d0h = d0[:, H4:]

        # Layer 1 (no [h0|h1] concat: the W1hh dot overlaps layer-0's gates).
        pre1 = b1 + d0[:, :H4] + jnp.dot(
            h1b, w1hh, preferred_element_type=jnp.float32)
        h1f, c1 = gates(pre1, c1)
        h1b = h1f.astype(cdt)

        # One stacked MXU pass producing the gsx feedback and step_out:
        #   [:, :4H] = h1 @ (dt * Wfc^T @ W0s)   (128-aligned slice)
        #   [:, 4H:] = h1 @ Wfc^T
        fused = jnp.dot(h1b, wst, preferred_element_type=jnp.float32)
        step_out = fused[:, H4:] + bfc
        gsx = gsx + fused[:, :H4] + gb
        s = s + step_out * dt

        # Single packed store per step at static lane offsets.
        lo = j * 2 * s_size
        out_ref[0, :, lo:lo + 2 * s_size] = jnp.concatenate(
            [s, step_out], axis=1)

    # Carry to the next grid block (one wide store per scratch buffer).
    cf_sc[...] = jnp.concatenate([gsx, c0, c1, s], axis=1)
    cb_sc[...] = jnp.concatenate([h0b, h1b], axis=1)


# ----------------------------------------------------------------------------
# Wrapper: parameter layout, time-grid replication, output unpacking.
# ----------------------------------------------------------------------------
def _permute_gates(a, axis=-1):
    """Reorder PyTorch LSTM gate blocks [i, f, g, o] -> [i, f, o, g]."""
    i, f, g, o = jnp.split(a, 4, axis=axis)
    return jnp.concatenate([i, f, o, g], axis=axis)


def bmed_lstm_forward(x, s0, params, dt, max_time, *,
                      compute_dtype=jnp.bfloat16):
    """Replicates BMEDLSTM.forward(x, s0, dt, max_time)."""
    B, _, x_size = x.shape
    s_size = s0.shape[1]
    H = params["hidden_size"]
    H4 = 4 * H
    dt_f = float(dt)
    hp = lax.Precision.HIGHEST

    # Replicate the host-side Python `while cal_t <= max_time` float loop.
    cal_times = []
    cal_t = 0.0
    while cal_t <= max_time:
        cal_times.append(cal_t)
        cal_t += dt
    T = len(cal_times)

    s0f = s0.astype(jnp.float32)
    x_first = x[:, 0, :].astype(jnp.float32)

    # Transpose weights and permute the 4H gate axis to [i, f, o, g].
    wih0 = params["w_ih_l0"]                                   # (4H, x+s)
    w0x_t = _permute_gates(jnp.transpose(wih0[:, :x_size]))    # (x, 4H)
    w0s_t = _permute_gates(jnp.transpose(wih0[:, x_size:]))    # (s, 4H)
    w0h_t = _permute_gates(jnp.transpose(params["w_hh_l0"]))   # (H, 4H)
    w1i_t = _permute_gates(jnp.transpose(params["w_ih_l1"]))   # (H, 4H)
    w1h_t = _permute_gates(jnp.transpose(params["w_hh_l1"]))   # (H, 4H)
    wfc_t = jnp.transpose(params["w_fc"])                      # (H, s)
    b0 = _permute_gates(params["b_ih_l0"] + params["b_hh_l0"])
    b1v = _permute_gates(params["b_ih_l1"] + params["b_hh_l1"])
    bfc_v = params["b_fc"]

    # Constant x contribution + layer-0 biases + initial s @ W0s, folded into
    # the f32 gsx carry (= layer-0 pre-activation minus the h0 @ W0h term).
    gsx0 = (jnp.dot(x_first, w0x_t, precision=hp) + b0[None, :]
            + jnp.dot(s0f, w0s_t, precision=hp)).astype(jnp.float32)

    # Stacked bf16 weights: one MXU pass each for h0 and h1 per step.
    w0 = jnp.concatenate([w1i_t, w0h_t], axis=1).astype(compute_dtype)    # (H, 8H)
    w1hh = w1h_t.astype(compute_dtype)                                    # (H, 4H)
    wcomb = dt_f * jnp.dot(wfc_t, w0s_t, precision=hp)                    # (H, 4H)
    wst = jnp.concatenate([wcomb, wfc_t], axis=1).astype(compute_dtype)   # (H, 4H+s)

    # Pre-broadcast biases (hoisted; JAX doesn't CSE broadcast_in_dim).
    b1 = jnp.broadcast_to(b1v[None, :], (B, H4)).astype(jnp.float32)
    bfc = jnp.broadcast_to(bfc_v[None, :], (B, s_size)).astype(jnp.float32)
    gb = jnp.broadcast_to(
        (dt_f * jnp.dot(bfc_v, w0s_t, precision=hp))[None, :], (B, H4)
    ).astype(jnp.float32)

    # Packed output lane width P: always a 128-multiple (unmasked, lane-dense
    # stores/writeback); widen toward 512 lanes when the horizon allows.  The
    # tail block is padded with throwaway Euler steps (never consumed later).
    per_step = 2 * s_size
    chunk = (per_step * 128 // math.gcd(per_step, 128)) // per_step
    while chunk * per_step < 512 and chunk < T and chunk < 128:
        chunk *= 2
    nb = -(-T // chunk)
    P = chunk * per_step

    kernel = functools.partial(
        _bmed_lstm_kernel,
        chunk=chunk, hidden_size=H, s_size=s_size, dt=dt_f)

    in_specs = [
        pl.BlockSpec((B, s_size), lambda i: (0, 0)),     # s0
        pl.BlockSpec((B, H4), lambda i: (0, 0)),         # gsx0
        pl.BlockSpec(w0.shape, lambda i: (0, 0)),        # [W1ih | W0h]
        pl.BlockSpec(w1hh.shape, lambda i: (0, 0)),      # W1hh
        pl.BlockSpec(wst.shape, lambda i: (0, 0)),       # [dt*Wfc@W0s | Wfc]
        pl.BlockSpec((B, H4), lambda i: (0, 0)),         # b1
        pl.BlockSpec((B, s_size), lambda i: (0, 0)),     # bfc
        pl.BlockSpec((B, H4), lambda i: (0, 0)),         # gb
    ]

    out = pl.pallas_call(
        kernel,
        grid=(nb,),
        in_specs=in_specs,
        out_specs=pl.BlockSpec((1, B, P), lambda i: (i, 0, 0)),
        out_shape=jax.ShapeDtypeStruct((nb, B, P), jnp.float32),
        scratch_shapes=[
            pltpu.VMEM((B, 6 * H + s_size), jnp.float32),   # [gsx | c0 | c1 | s]
            pltpu.VMEM((B, 2 * H), compute_dtype),          # [h0 | h1]
        ],
        compiler_params=pltpu.CompilerParams(
            dimension_semantics=("arbitrary",)),
    )(s0f, gsx0, w0, w1hh, wst, b1, bfc, gb)

    # Unpack lane-dense blocks back to PyTorch conventions.
    out = out.reshape(nb, B, chunk, 2, s_size)
    outputs = jnp.transpose(out[:, :, :, 0, :], (1, 0, 2, 3)).reshape(
        B, nb * chunk, s_size)[:, :T, :]                      # (B, T, s)
    res_step = jnp.transpose(out[:, :, :, 1, :], (0, 2, 1, 3)).reshape(
        nb * chunk, B, s_size)[:T][:, :, None, :]             # (T, B, 1, s)

    cal_times = jnp.asarray(cal_times, dtype=jnp.float32)
    # res_step[t] matches the PyTorch list element shape (B, 1, s).
    return outputs, cal_times, res_step


# ----------------------------------------------------------------------------
# Pure-JAX f32 reference (same math, standard gate order) for correctness.
# ----------------------------------------------------------------------------
def bmed_lstm_reference(x, s0, params, dt, max_time):
    B, _, _ = x.shape
    H = params["hidden_size"]
    x_first = x[:, 0, :]
    hp = lax.Precision.HIGHEST

    def cell(inp, h, c, w_ih, w_hh, b_ih, b_hh):
        g = (jnp.dot(inp, w_ih.T, precision=hp) + b_ih
             + jnp.dot(h, w_hh.T, precision=hp) + b_hh)
        i = jax.nn.sigmoid(g[:, 0 * H:1 * H])
        f = jax.nn.sigmoid(g[:, 1 * H:2 * H])
        gg = jnp.tanh(g[:, 2 * H:3 * H])
        o = jax.nn.sigmoid(g[:, 3 * H:4 * H])
        c_new = f * c + i * gg
        return o * jnp.tanh(c_new), c_new

    h0 = c0 = h1 = c1 = jnp.zeros((B, H), jnp.float32)
    s = s0
    outs = []
    cal_t = 0.0
    while cal_t <= max_time:
        comb = jnp.concatenate([x_first, s], axis=1)
        h0, c0 = cell(comb, h0, c0, params["w_ih_l0"], params["w_hh_l0"],
                      params["b_ih_l0"], params["b_hh_l0"])
        h1, c1 = cell(h0, h1, c1, params["w_ih_l1"], params["w_hh_l1"],
                      params["b_ih_l1"], params["b_hh_l1"])
        step_out = jnp.dot(h1, params["w_fc"].T, precision=hp) + params["b_fc"]
        s = s + step_out * dt
        outs.append(s[:, None, :])
        cal_t += dt
    return jnp.concatenate(outs, axis=1)


# ----------------------------------------------------------------------------
# Deterministic parameter init (PyTorch-style uniform(-1/sqrt(H), 1/sqrt(H))).
# ----------------------------------------------------------------------------
def init_params(key, x_size, s_size, hidden_size):
    H = hidden_size
    in0 = x_size + s_size
    k = 1.0 / np.sqrt(H)
    names_shapes = [
        ("w_ih_l0", (4 * H, in0)), ("w_hh_l0", (4 * H, H)),
        ("b_ih_l0", (4 * H,)), ("b_hh_l0", (4 * H,)),
        ("w_ih_l1", (4 * H, H)), ("w_hh_l1", (4 * H, H)),
        ("b_ih_l1", (4 * H,)), ("b_hh_l1", (4 * H,)),
        ("w_fc", (s_size, H)), ("b_fc", (s_size,)),
    ]
    params = {"hidden_size": H}
    keys = jax.random.split(key, len(names_shapes))
    for (name, shape), kk in zip(names_shapes, keys):
        params[name] = jax.random.uniform(
            kk, shape, dtype=jnp.float32, minval=-k, maxval=k)
    return params


# ----------------------------------------------------------------------------
if __name__ == "__main__":
    key = jax.random.PRNGKey(0)
    B, seq_len, x_size, s_size, H = 2, 8, 3, 4, 32
    dt = 0.01

    k_x, k_s, k_p = jax.random.split(key, 3)
    x = jax.random.normal(k_x, (B, seq_len, x_size), dtype=jnp.float32)
    s0 = jax.random.normal(k_s, (B, s_size), dtype=jnp.float32)
    params = init_params(k_p, x_size, s_size, H)

    # Short horizon (single padded block) and a longer horizon (multiple grid
    # blocks, exercising the VMEM carry) checked against the f32 reference.
    for max_time, atol in ((0.07, 5e-3), (1.0, 2e-2)):
        outputs, cal_times, res_step = bmed_lstm_forward(
            x, s0, params, dt, max_time)
        jax.block_until_ready(outputs)
        ref = bmed_lstm_reference(x, s0, params, dt, max_time)
        T = len(cal_times)
        assert outputs.shape == ref.shape == (B, T, s_size)
        assert res_step.shape == (T, B, 1, s_size)
        np.testing.assert_allclose(
            np.asarray(outputs), np.asarray(ref), atol=atol, rtol=atol)

    print("KERNEL_OK")
</pallas_src>

<mosaic_0001>
module attributes {stable_mosaic.version = 11 : i64} {
  func.func @_bmed_lstm_kernel(%arg0: i32, %arg1: memref<2x4xf32, #tpu.memory_space<vmem>>, %arg2: memref<2x128xf32, #tpu.memory_space<vmem>>, %arg3: memref<32x256xbf16, #tpu.memory_space<vmem>>, %arg4: memref<32x128xbf16, #tpu.memory_space<vmem>>, %arg5: memref<32x132xbf16, #tpu.memory_space<vmem>>, %arg6: memref<2x128xf32, #tpu.memory_space<vmem>>, %arg7: memref<2x4xf32, #tpu.memory_space<vmem>>, %arg8: memref<2x128xf32, #tpu.memory_space<vmem>>, %arg9: memref<1x2x128xf32, #tpu.memory_space<vmem>>, %arg10: memref<2x196xf32, #tpu.memory_space<vmem>>, %arg11: memref<2x64xbf16, #tpu.memory_space<vmem>>) attributes {dimension_semantics = [#tpu.dimension_semantics<arbitrary>], iteration_bounds = array<i64: 1>, scalar_prefetch = 0 : i64, scratch_operands = 2 : i64, tpu.core_type = #tpu.core_type<tc>, window_params = [{pipeline_mode = #tpu.pipeline_mode<synchronous>, transform_indices = @transform_0, window_bounds = array<i64: 2, 4>}, {pipeline_mode = #tpu.pipeline_mode<synchronous>, transform_indices = @transform_1, window_bounds = array<i64: 2, 128>}, {pipeline_mode = #tpu.pipeline_mode<synchronous>, transform_indices = @transform_2, window_bounds = array<i64: 32, 256>}, {pipeline_mode = #tpu.pipeline_mode<synchronous>, transform_indices = @transform_3, window_bounds = array<i64: 32, 128>}, {pipeline_mode = #tpu.pipeline_mode<synchronous>, transform_indices = @transform_4, window_bounds = array<i64: 32, 132>}, {pipeline_mode = #tpu.pipeline_mode<synchronous>, transform_indices = @transform_5, window_bounds = array<i64: 2, 128>}, {pipeline_mode = #tpu.pipeline_mode<synchronous>, transform_indices = @transform_6, window_bounds = array<i64: 2, 4>}, {pipeline_mode = #tpu.pipeline_mode<synchronous>, transform_indices = @transform_7, window_bounds = array<i64: 2, 128>}, {transform_indices = @transform_8, window_bounds = array<i64: 1, 2, 128>}]} {
    %c0_i32 = arith.constant 0 : i32
    %0 = arith.cmpi eq, %arg0, %c0_i32 : i32
    %1 = arith.extui %0 : i1 to i32
    %c0_i32_0 = arith.constant 0 : i32
    %2 = arith.cmpi ne, %1, %c0_i32_0 : i32
    scf.if %2 {
      %c0_149 = arith.constant 0 : index
      %c0_150 = arith.constant 0 : index
      %886 = vector.load %arg2[%c0_149, %c0_150] : memref<2x128xf32, #tpu.memory_space<vmem>>, vector<2x128xf32>
      %cst_151 = arith.constant 0.000000e+00 : f32
      %887 = vector.broadcast %cst_151 : f32 to vector<2x64xf32>
      %c0_152 = arith.constant 0 : index
      %c0_153 = arith.constant 0 : index
      %888 = vector.load %arg1[%c0_152, %c0_153] : memref<2x4xf32, #tpu.memory_space<vmem>>, vector<2x4xf32>
      %889 = tpu.concatenate %886, %887, %888 in 1 : vector<2x128xf32>, vector<2x64xf32>, vector<2x4xf32> -> vector<2x196xf32>
      %c0_154 = arith.constant 0 : index
      %c0_155 = arith.constant 0 : index
      %890 = vector.load %arg10[%c0_154, %c0_155] : memref<2x196xf32, #tpu.memory_space<vmem>>, vector<2x196xf32>
      tpu.vector_store %arg10[%c0_154, %c0_155], %889 {strides = array<i32>} : memref<2x196xf32, #tpu.memory_space<vmem>>, vector<2x196xf32>,
      %cst_156 = arith.constant 0.000000e+00 : bf16
      %891 = vector.broadcast %cst_156 : bf16 to vector<2x64xbf16>
      %c0_157 = arith.constant 0 : index
      %c0_158 = arith.constant 0 : index
      %892 = vector.load %arg11[%c0_157, %c0_158] : memref<2x64xbf16, #tpu.memory_space<vmem>>, vector<2x64xbf16>
      tpu.vector_store %arg11[%c0_157, %c0_158], %891 {strides = array<i32>} : memref<2x64xbf16, #tpu.memory_space<vmem>>, vector<2x64xbf16>,
    } else {
    }
    %c0 = arith.constant 0 : index
    %c0_1 = arith.constant 0 : index
    %3 = vector.load %arg3[%c0, %c0_1] : memref<32x256xbf16, #tpu.memory_space<vmem>>, vector<32x256xbf16>
    %c0_2 = arith.constant 0 : index
    %c0_3 = arith.constant 0 : index
    %4 = vector.load %arg4[%c0_2, %c0_3] : memref<32x128xbf16, #tpu.memory_space<vmem>>, vector<32x128xbf16>
    %c0_4 = arith.constant 0 : index
    %c0_5 = arith.constant 0 : index
    %5 = vector.load %arg5[%c0_4, %c0_5] : memref<32x132xbf16, #tpu.memory_space<vmem>>, vector<32x132xbf16>
    %c0_6 = arith.constant 0 : index
    %c0_7 = arith.constant 0 : index
    %6 = vector.load %arg6[%c0_6, %c0_7] : memref<2x128xf32, #tpu.memory_space<vmem>>, vector<2x128xf32>
    %c0_8 = arith.constant 0 : index
    %c0_9 = arith.constant 0 : index
    %7 = vector.load %arg7[%c0_8, %c0_9] : memref<2x4xf32, #tpu.memory_space<vmem>>, vector<2x4xf32>
    %c0_10 = arith.constant 0 : index
    %c0_11 = arith.constant 0 : index
    %8 = vector.load %arg8[%c0_10, %c0_11] : memref<2x128xf32, #tpu.memory_space<vmem>>, vector<2x128xf32>
    %c0_12 = arith.constant 0 : index
    %c0_13 = arith.constant 0 : index
    %9 = vector.load %arg10[%c0_12, %c0_13] : memref<2x196xf32, #tpu.memory_space<vmem>>, vector<2x196xf32>
    %10 = vector.extract_strided_slice %9 {offsets = [0, 0], sizes = [2, 128], strides = [1, 1]} : vector<2x196xf32> to vector<2x128xf32>
    %11 = vector.extract_strided_slice %9 {offsets = [0, 128], sizes = [2, 32], strides = [1, 1]} : vector<2x196xf32> to vector<2x32xf32>
    %12 = vector.extract_strided_slice %9 {offsets = [0, 160], sizes = [2, 32], strides = [1, 1]} : vector<2x196xf32> to vector<2x32xf32>
    %13 = vector.extract_strided_slice %9 {offsets = [0, 192], sizes = [2, 4], strides = [1, 1]} : vector<2x196xf32> to vector<2x4xf32>
    %c0_14 = arith.constant 0 : index
    %c0_15 = arith.constant 0 : index
    %14 = vector.load %arg11[%c0_14, %c0_15] : memref<2x64xbf16, #tpu.memory_space<vmem>>, vector<2x64xbf16>
    %15 = vector.extract_strided_slice %14 {offsets = [0, 0], sizes = [2, 32], strides = [1, 1]} : vector<2x64xbf16> to vector<2x32xbf16>
    %16 = vector.extract_strided_slice %14 {offsets = [0, 32], sizes = [2, 32], strides = [1, 1]} : vector<2x64xbf16> to vector<2x32xbf16>
    %cst = arith.constant dense<0.000000e+00> : vector<2x256xf32>
    %17 = tpu.matmul %15, %3, %cst {dimension_numbers = #tpu.dot_dimension_numbers<[1], [0], [0], [1], [0, 0, 1, 1], [], []>} : vector<2x32xbf16>, vector<32x256xbf16>, vector<2x256xf32> -> vector<2x256xf32>
    %18 = vector.extract_strided_slice %17 {offsets = [0, 128], sizes = [2, 128], strides = [1, 1]} : vector<2x256xf32> to vector<2x128xf32>
    %19 = arith.addf %10, %18 : vector<2x128xf32>
    %20 = vector.extract_strided_slice %19 {offsets = [0, 0], sizes = [2, 96], strides = [1, 1]} : vector<2x128xf32> to vector<2x96xf32>
    %21 = arith.negf %20 : vector<2x96xf32>
    %22 = math.exp %21 : vector<2x96xf32>
    %cst_16 = arith.constant 1.000000e+00 : f32
    %23 = vector.broadcast %cst_16 : f32 to vector<2x96xf32>
    %24 = arith.addf %23, %22 : vector<2x96xf32>
    %25 = arith.divf %23, %24 : vector<2x96xf32>
    %26 = vector.extract_strided_slice %19 {offsets = [0, 96], sizes = [2, 32], strides = [1, 1]} : vector<2x128xf32> to vector<2x32xf32>
    %27 = math.tanh %26 : vector<2x32xf32>
    %28 = vector.extract_strided_slice %25 {offsets = [0, 0], sizes = [2, 32], strides = [1, 1]} : vector<2x96xf32> to vector<2x32xf32>
    %29 = vector.extract_strided_slice %25 {offsets = [0, 32], sizes = [2, 32], strides = [1, 1]} : vector<2x96xf32> to vector<2x32xf32>
    %30 = vector.extract_strided_slice %25 {offsets = [0, 64], sizes = [2, 32], strides = [1, 1]} : vector<2x96xf32> to vector<2x32xf32>
    %31 = arith.mulf %29, %11 : vector<2x32xf32>
    %32 = arith.mulf %28, %27 : vector<2x32xf32>
    %33 = arith.addf %31, %32 : vector<2x32xf32>
    %34 = math.tanh %33 : vector<2x32xf32>
    %35 = arith.mulf %30, %34 : vector<2x32xf32>
    %36 = arith.truncf %35 : vector<2x32xf32> to vector<2x32xbf16>
    %cst_17 = arith.constant dense<0.000000e+00> : vector<2x256xf32>
    %37 = tpu.matmul %36, %3, %cst_17 {dimension_numbers = #tpu.dot_dimension_numbers<[1], [0], [0], [1], [0, 0, 1, 1], [], []>} : vector<2x32xbf16>, vector<32x256xbf16>, vector<2x256xf32> -> vector<2x256xf32>
    %38 = vector.extract_strided_slice %37 {offsets = [0, 128], sizes = [2, 128], strides = [1, 1]} : vector<2x256xf32> to vector<2x128xf32>
    %39 = vector.extract_strided_slice %37 {offsets = [0, 0], sizes = [2, 128], strides = [1, 1]} : vector<2x256xf32> to vector<2x128xf32>
    %40 = arith.addf %6, %39 : vector<2x128xf32>
    %cst_18 = arith.constant dense<0.000000e+00> : vector<2x128xf32>
    %41 = tpu.matmul %16, %4, %cst_18 {dimension_numbers = #tpu.dot_dimension_numbers<[1], [0], [0], [1], [0, 0, 1, 1], [], []>} : vector<2x32xbf16>, vector<32x128xbf16>, vector<2x128xf32> -> vector<2x128xf32>
    %42 = arith.addf %40, %41 : vector<2x128xf32>
    %43 = vector.extract_strided_slice %42 {offsets = [0, 0], sizes = [2, 96], strides = [1, 1]} : vector<2x128xf32> to vector<2x96xf32>
    %44 = arith.negf %43 : vector<2x96xf32>
    %45 = math.exp %44 : vector<2x96xf32>
    %cst_19 = arith.constant 1.000000e+00 : f32
    %46 = vector.broadcast %cst_19 : f32 to vector<2x96xf32>
    %47 = arith.addf %46, %45 : vector<2x96xf32>
    %48 = arith.divf %46, %47 : vector<2x96xf32>
    %49 = vector.extract_strided_slice %42 {offsets = [0, 96], sizes = [2, 32], strides = [1, 1]} : vector<2x128xf32> to vector<2x32xf32>
    %50 = math.tanh %49 : vector<2x32xf32>
    %51 = vector.extract_strided_slice %48 {offsets = [0, 0], sizes = [2, 32], strides = [1, 1]} : vector<2x96xf32> to vector<2x32xf32>
    %52 = vector.extract_strided_slice %48 {offsets = [0, 32], sizes = [2, 32], strides = [1, 1]} : vector<2x96xf32> to vector<2x32xf32>
    %53 = vector.extract_strided_slice %48 {offsets = [0, 64], sizes = [2, 32], strides = [1, 1]} : vector<2x96xf32> to vector<2x32xf32>
    %54 = arith.mulf %52, %12 : vector<2x32xf32>
    %55 = arith.mulf %51, %50 : vector<2x32xf32>
    %56 = arith.addf %54, %55 : vector<2x32xf32>
    %57 = math.tanh %56 : vector<2x32xf32>
    %58 = arith.mulf %53, %57 : vector<2x32xf32>
    %59 = arith.truncf %58 : vector<2x32xf32> to vector<2x32xbf16>
    %cst_20 = arith.constant dense<0.000000e+00> : vector<2x132xf32>
    %60 = tpu.matmul %59, %5, %cst_20 {dimension_numbers = #tpu.dot_dimension_numbers<[1], [0], [0], [1], [0, 0, 1, 1], [], []>} : vector<2x32xbf16>, vector<32x132xbf16>, vector<2x132xf32> -> vector<2x132xf32>
    %61 = vector.extract_strided_slice %60 {offsets = [0, 128], sizes = [2, 4], strides = [1, 1]} : vector<2x132xf32> to vector<2x4xf32>
    %62 = arith.addf %61, %7 : vector<2x4xf32>
    %63 = vector.extract_strided_slice %60 {offsets = [0, 0], sizes = [2, 128], strides = [1, 1]} : vector<2x132xf32> to vector<2x128xf32>
    %64 = arith.addf %10, %63 : vector<2x128xf32>
    %65 = arith.addf %64, %8 : vector<2x128xf32>
    %cst_21 = arith.constant 0.00999999977 : f32
    %66 = vector.broadcast %cst_21 : f32 to vector<2x4xf32>
    %67 = arith.mulf %62, %66 : vector<2x4xf32>
    %68 = arith.addf %13, %67 : vector<2x4xf32>
    %69 = tpu.concatenate %68, %62 in 1 : vector<2x4xf32>, vector<2x4xf32> -> vector<2x8xf32>
    %c0_22 = arith.constant 0 : index
    %c0_23 = arith.constant 0 : index
    %c0_24 = arith.constant 0 : index
    %70 = vector.load %arg9[%c0_22, %c0_23, %c0_24] : memref<1x2x128xf32, #tpu.memory_space<vmem>>, vector<1x2x8xf32>
    %71 = vector.shape_cast %70 : vector<1x2x8xf32> to vector<2x8xf32>
    %72 = vector.shape_cast %69 : vector<2x8xf32> to vector<1x2x8xf32>
    tpu.vector_store %arg9[%c0_22, %c0_23, %c0_24], %72 {strides = array<i32>} : memref<1x2x128xf32, #tpu.memory_space<vmem>>, vector<1x2x8xf32>,
    %73 = arith.addf %65, %38 : vector<2x128xf32>
    %74 = vector.extract_strided_slice %73 {offsets = [0, 0], sizes = [2, 96], strides = [1, 1]} : vector<2x128xf32> to vector<2x96xf32>
    %75 = arith.negf %74 : vector<2x96xf32>
    %76 = math.exp %75 : vector<2x96xf32>
    %cst_25 = arith.constant 1.000000e+00 : f32
    %77 = vector.broadcast %cst_25 : f32 to vector<2x96xf32>
    %78 = arith.addf %77, %76 : vector<2x96xf32>
    %79 = arith.divf %77, %78 : vector<2x96xf32>
    %80 = vector.extract_strided_slice %73 {offsets = [0, 96], sizes = [2, 32], strides = [1, 1]} : vector<2x128xf32> to vector<2x32xf32>
    %81 = math.tanh %80 : vector<2x32xf32>
    %82 = vector.extract_strided_slice %79 {offsets = [0, 0], sizes = [2, 32], strides = [1, 1]} : vector<2x96xf32> to vector<2x32xf32>
    %83 = vector.extract_strided_slice %79 {offsets = [0, 32], sizes = [2, 32], strides = [1, 1]} : vector<2x96xf32> to vector<2x32xf32>
    %84 = vector.extract_strided_slice %79 {offsets = [0, 64], sizes = [2, 32], strides = [1, 1]} : vector<2x96xf32> to vector<2x32xf32>
    %85 = arith.mulf %83, %33 : vector<2x32xf32>
    %86 = arith.mulf %82, %81 : vector<2x32xf32>
    %87 = arith.addf %85, %86 : vector<2x32xf32>
    %88 = math.tanh %87 : vector<2x32xf32>
    %89 = arith.mulf %84, %88 : vector<2x32xf32>
    %90 = arith.truncf %89 : vector<2x32xf32> to vector<2x32xbf16>
    %cst_26 = arith.constant dense<0.000000e+00> : vector<2x256xf32>
    %91 = tpu.matmul %90, %3, %cst_26 {dimension_numbers = #tpu.dot_dimension_numbers<[1], [0], [0], [1], [0, 0, 1, 1], [], []>} : vector<2x32xbf16>, vector<32x256xbf16>, vector<2x256xf32> -> vector<2x256xf32>
    %92 = vector.extract_strided_slice %91 {offsets = [0, 128], sizes = [2, 128], strides = [1, 1]} : vector<2x256xf32> to vector<2x128xf32>
    %93 = vector.extract_strided_slice %91 {offsets = [0, 0], sizes = [2, 128], strides = [1, 1]} : vector<2x256xf32> to vector<2x128xf32>
    %94 = arith.addf %6, %93 : vector<2x128xf32>
    %cst_27 = arith.constant dense<0.000000e+00> : vector<2x128xf32>
    %95 = tpu.matmul %59, %4, %cst_27 {dimension_numbers = #tpu.dot_dimension_numbers<[1], [0], [0], [1], [0, 0, 1, 1], [], []>} : vector<2x32xbf16>, vector<32x128xbf16>, vector<2x128xf32> -> vector<2x128xf32>
    %96 = arith.addf %94, %95 : vector<2x128xf32>
    %97 = vector.extract_strided_slice %96 {offsets = [0, 0], sizes = [2, 96], strides = [1, 1]} : vector<2x128xf32> to vector<2x96xf32>
    %98 = arith.negf %97 : vector<2x96xf32>
    %99 = math.exp %98 : vector<2x96xf32>
    %cst_28 = arith.constant 1.000000e+00 : f32
    %100 = vector.broadcast %cst_28 : f32 to vector<2x96xf32>
    %101 = arith.addf %100, %99 : vector<2x96xf32>
    %102 = arith.divf %100, %101 : vector<2x96xf32>
    %103 = vector.extract_strided_slice %96 {offsets = [0, 96], sizes = [2, 32], strides = [1, 1]} : vector<2x128xf32> to vector<2x32xf32>
    %104 = math.tanh %103 : vector<2x32xf32>
    %105 = vector.extract_strided_slice %102 {offsets = [0, 0], sizes = [2, 32], strides = [1, 1]} : vector<2x96xf32> to vector<2x32xf32>
    %106 = vector.extract_strided_slice %102 {offsets = [0, 32], sizes = [2, 32], strides = [1, 1]} : vector<2x96xf32> to vector<2x32xf32>
    %107 = vector.extract_strided_slice %102 {offsets = [0, 64], sizes = [2, 32], strides = [1, 1]} : vector<2x96xf32> to vector<2x32xf32>
    %108 = arith.mulf %106, %56 : vector<2x32xf32>
    %109 = arith.mulf %105, %104 : vector<2x32xf32>
    %110 = arith.addf %108, %109 : vector<2x32xf32>
    %111 = math.tanh %110 : vector<2x32xf32>
    %112 = arith.mulf %107, %111 : vector<2x32xf32>
    %113 = arith.truncf %112 : vector<2x32xf32> to vector<2x32xbf16>
    %cst_29 = arith.constant dense<0.000000e+00> : vector<2x132xf32>
    %114 = tpu.matmul %113, %5, %cst_29 {dimension_numbers = #tpu.dot_dimension_numbers<[1], [0], [0], [1], [0, 0, 1, 1], [], []>} : vector<2x32xbf16>, vector<32x132xbf16>, vector<2x132xf32> -> vector<2x132xf32>
    %115 = vector.extract_strided_slice %114 {offsets = [0, 128], sizes = [2, 4], strides = [1, 1]} : vector<2x132xf32> to vector<2x4xf32>
    %116 = arith.addf %115, %7 : vector<2x4xf32>
    %117 = vector.extract_strided_slice %114 {offsets = [0, 0], sizes = [2, 128], strides = [1, 1]} : vector<2x132xf32> to vector<2x128xf32>
    %118 = arith.addf %65, %117 : vector<2x128xf32>
    %119 = arith.addf %118, %8 : vector<2x128xf32>
    %cst_30 = arith.constant 0.00999999977 : f32
    %120 = vector.broadcast %cst_30 : f32 to vector<2x4xf32>
    %121 = arith.mulf %116, %120 : vector<2x4xf32>
    %122 = arith.addf %68, %121 : vector<2x4xf32>
    %123 = tpu.concatenate %122, %116 in 1 : vector<2x4xf32>, vector<2x4xf32> -> vector<2x8xf32>
    %c0_31 = arith.constant 0 : index
    %c0_32 = arith.constant 0 : index
    %c8 = arith.constant 8 : index
    %124 = vector.load %arg9[%c0_31, %c0_32, %c8] : memref<1x2x128xf32, #tpu.memory_space<vmem>>, vector<1x2x8xf32>
    %125 = vector.shape_cast %124 : vector<1x2x8xf32> to vector<2x8xf32>
    %126 = vector.shape_cast %123 : vector<2x8xf32> to vector<1x2x8xf32>
    tpu.vector_store %arg9[%c0_31, %c0_32, %c8], %126 {strides = array<i32>} : memref<1x2x128xf32, #tpu.memory_space<vmem>>, vector<1x2x8xf32>,
    %127 = arith.addf %119, %92 : vector<2x128xf32>
    %128 = vector.extract_strided_slice %127 {offsets = [0, 0], sizes = [2, 96], strides = [1, 1]} : vector<2x128xf32> to vector<2x96xf32>
    %129 = arith.negf %128 : vector<2x96xf32>
    %130 = math.exp %129 : vector<2x96xf32>
    %cst_33 = arith.constant 1.000000e+00 : f32
    %131 = vector.broadcast %cst_33 : f32 to vector<2x96xf32>
    %132 = arith.addf %131, %130 : vector<2x96xf32>
    %133 = arith.divf %131, %132 : vector<2x96xf32>
    %134 = vector.extract_strided_slice %127 {offsets = [0, 96], sizes = [2, 32], strides = [1, 1]} : vector<2x128xf32> to vector<2x32xf32>
    %135 = math.tanh %134 : vector<2x32xf32>
    %136 = vector.extract_strided_slice %133 {offsets = [0, 0], sizes = [2, 32], strides = [1, 1]} : vector<2x96xf32> to vector<2x32xf32>
    %137 = vector.extract_strided_slice %133 {offsets = [0, 32], sizes = [2, 32], strides = [1, 1]} : vector<2x96xf32> to vector<2x32xf32>
    %138 = vector.extract_strided_slice %133 {offsets = [0, 64], sizes = [2, 32], strides = [1, 1]} : vector<2x96xf32> to vector<2x32xf32>
    %139 = arith.mulf %137, %87 : vector<2x32xf32>
    %140 = arith.mulf %136, %135 : vector<2x32xf32>
    %141 = arith.addf %139, %140 : vector<2x32xf32>
    %142 = math.tanh %141 : vector<2x32xf32>
    %143 = arith.mulf %138, %142 : vector<2x32xf32>
    %144 = arith.truncf %143 : vector<2x32xf32> to vector<2x32xbf16>
    %cst_34 = arith.constant dense<0.000000e+00> : vector<2x256xf32>
    %145 = tpu.matmul %144, %3, %cst_34 {dimension_numbers = #tpu.dot_dimension_numbers<[1], [0], [0], [1], [0, 0, 1, 1], [], []>} : vector<2x32xbf16>, vector<32x256xbf16>, vector<2x256xf32> -> vector<2x256xf32>
    %146 = vector.extract_strided_slice %145 {offsets = [0, 128], sizes = [2, 128], strides = [1, 1]} : vector<2x256xf32> to vector<2x128xf32>
    %147 = vector.extract_strided_slice %145 {offsets = [0, 0], sizes = [2, 128], strides = [1, 1]} : vector<2x256xf32> to vector<2x128xf32>
    %148 = arith.addf %6, %147 : vector<2x128xf32>
    %cst_35 = arith.constant dense<0.000000e+00> : vector<2x128xf32>
    %149 = tpu.matmul %113, %4, %cst_35 {dimension_numbers = #tpu.dot_dimension_numbers<[1], [0], [0], [1], [0, 0, 1, 1], [], []>} : vector<2x32xbf16>, vector<32x128xbf16>, vector<2x128xf32> -> vector<2x128xf32>
    %150 = arith.addf %148, %149 : vector<2x128xf32>
    %151 = vector.extract_strided_slice %150 {offsets = [0, 0], sizes = [2, 96], strides = [1, 1]} : vector<2x128xf32> to vector<2x96xf32>
    %152 = arith.negf %151 : vector<2x96xf32>
    %153 = math.exp %152 : vector<2x96xf32>
    %cst_36 = arith.constant 1.000000e+00 : f32
    %154 = vector.broadcast %cst_36 : f32 to vector<2x96xf32>
    %155 = arith.addf %154, %153 : vector<2x96xf32>
    %156 = arith.divf %154, %155 : vector<2x96xf32>
    %157 = vector.extract_strided_slice %150 {offsets = [0, 96], sizes = [2, 32], strides = [1, 1]} : vector<2x128xf32> to vector<2x32xf32>
    %158 = math.tanh %157 : vector<2x32xf32>
    %159 = vector.extract_strided_slice %156 {offsets = [0, 0], sizes = [2, 32], strides = [1, 1]} : vector<2x96xf32> to vector<2x32xf32>
    %160 = vector.extract_strided_slice %156 {offsets = [0, 32], sizes = [2, 32], strides = [1, 1]} : vector<2x96xf32> to vector<2x32xf32>
    %161 = vector.extract_strided_slice %156 {offsets = [0, 64], sizes = [2, 32], strides = [1, 1]} : vector<2x96xf32> to vector<2x32xf32>
    %162 = arith.mulf %160, %110 : vector<2x32xf32>
    %163 = arith.mulf %159, %158 : vector<2x32xf32>
    %164 = arith.addf %162, %163 : vector<2x32xf32>
    %165 = math.tanh %164 : vector<2x32xf32>
    %166 = arith.mulf %161, %165 : vector<2x32xf32>
    %167 = arith.truncf %166 : vector<2x32xf32> to vector<2x32xbf16>
    %cst_37 = arith.constant dense<0.000000e+00> : vector<2x132xf32>
    %168 = tpu.matmul %167, %5, %cst_37 {dimension_numbers = #tpu.dot_dimension_numbers<[1], [0], [0], [1], [0, 0, 1, 1], [], []>} : vector<2x32xbf16>, vector<32x132xbf16>, vector<2x132xf32> -> vector<2x132xf32>
    %169 = vector.extract_strided_slice %168 {offsets = [0, 128], sizes = [2, 4], strides = [1, 1]} : vector<2x132xf32> to vector<2x4xf32>
    %170 = arith.addf %169, %7 : vector<2x4xf32>
    %171 = vector.extract_strided_slice %168 {offsets = [0, 0], sizes = [2, 128], strides = [1, 1]} : vector<2x132xf32> to vector<2x128xf32>
    %172 = arith.addf %119, %171 : vector<2x128xf32>
    %173 = arith.addf %172, %8 : vector<2x128xf32>
    %cst_38 = arith.constant 0.00999999977 : f32
    %174 = vector.broadcast %cst_38 : f32 to vector<2x4xf32>
    %175 = arith.mulf %170, %174 : vector<2x4xf32>
    %176 = arith.addf %122, %175 : vector<2x4xf32>
    %177 = tpu.concatenate %176, %170 in 1 : vector<2x4xf32>, vector<2x4xf32> -> vector<2x8xf32>
    %c0_39 = arith.constant 0 : index
    %c0_40 = arith.constant 0 : index
    %c16 = arith.constant 16 : index
    %178 = vector.load %arg9[%c0_39, %c0_40, %c16] : memref<1x2x128xf32, #tpu.memory_space<vmem>>, vector<1x2x8xf32>
    %179 = vector.shape_cast %178 : vector<1x2x8xf32> to vector<2x8xf32>
    %180 = vector.shape_cast %177 : vector<2x8xf32> to vector<1x2x8xf32>
    tpu.vector_store %arg9[%c0_39, %c0_40, %c16], %180 {strides = array<i32>} : memref<1x2x128xf32, #tpu.memory_space<vmem>>, vector<1x2x8xf32>,
    %181 = arith.addf %173, %146 : vector<2x128xf32>
    %182 = vector.extract_strided_slice %181 {offsets = [0, 0], sizes = [2, 96], strides = [1, 1]} : vector<2x128xf32> to vector<2x96xf32>
    %183 = arith.negf %182 : vector<2x96xf32>
    %184 = math.exp %183 : vector<2x96xf32>
    %cst_41 = arith.constant 1.000000e+00 : f32
    %185 = vector.broadcast %cst_41 : f32 to vector<2x96xf32>
    %186 = arith.addf %185, %184 : vector<2x96xf32>
    %187 = arith.divf %185, %186 : vector<2x96xf32>
    %188 = vector.extract_strided_slice %181 {offsets = [0, 96], sizes = [2, 32], strides = [1, 1]} : vector<2x128xf32> to vector<2x32xf32>
    %189 = math.tanh %188 : vector<2x32xf32>
    %190 = vector.extract_strided_slice %187 {offsets = [0, 0], sizes = [2, 32], strides = [1, 1]} : vector<2x96xf32> to vector<2x32xf32>
    %191 = vector.extract_strided_slice %187 {offsets = [0, 32], sizes = [2, 32], strides = [1, 1]} : vector<2x96xf32> to vector<2x32xf32>
    %192 = vector.extract_strided_slice %187 {offsets = [0, 64], sizes = [2, 32], strides = [1, 1]} : vector<2x96xf32> to vector<2x32xf32>
    %193 = arith.mulf %191, %141 : vector<2x32xf32>
    %194 = arith.mulf %190, %189 : vector<2x32xf32>
    %195 = arith.addf %193, %194 : vector<2x32xf32>
    %196 = math.tanh %195 : vector<2x32xf32>
    %197 = arith.mulf %192, %196 : vector<2x32xf32>
    %198 = arith.truncf %197 : vector<2x32xf32> to vector<2x32xbf16>
    %cst_42 = arith.constant dense<0.000000e+00> : vector<2x256xf32>
    %199 = tpu.matmul %198, %3, %cst_42 {dimension_numbers = #tpu.dot_dimension_numbers<[1], [0], [0], [1], [0, 0, 1, 1], [], []>} : vector<2x32xbf16>, vector<32x256xbf16>, vector<2x256xf32> -> vector<2x256xf32>
    %200 = vector.extract_strided_slice %199 {offsets = [0, 128], sizes = [2, 128], strides = [1, 1]} : vector<2x256xf32> to vector<2x128xf32>
    %201 = vector.extract_strided_slice %199 {offsets = [0, 0], sizes = [2, 128], strides = [1, 1]} : vector<2x256xf32> to vector<2x128xf32>
    %202 = arith.addf %6, %201 : vector<2x128xf32>
    %cst_43 = arith.constant dense<0.000000e+00> : vector<2x128xf32>
    %203 = tpu.matmul %167, %4, %cst_43 {dimension_numbers = #tpu.dot_dimension_numbers<[1], [0], [0], [1], [0, 0, 1, 1], [], []>} : vector<2x32xbf16>, vector<32x128xbf16>, vector<2x128xf32> -> vector<2x128xf32>
    %204 = arith.addf %202, %203 : vector<2x128xf32>
    %205 = vector.extract_strided_slice %204 {offsets = [0, 0], sizes = [2, 96], strides = [1, 1]} : vector<2x128xf32> to vector<2x96xf32>
    %206 = arith.negf %205 : vector<2x96xf32>
    %207 = math.exp %206 : vector<2x96xf32>
    %cst_44 = arith.constant 1.000000e+00 : f32
    %208 = vector.broadcast %cst_44 : f32 to vector<2x96xf32>
    %209 = arith.addf %208, %207 : vector<2x96xf32>
    %210 = arith.divf %208, %209 : vector<2x96xf32>
    %211 = vector.extract_strided_slice %204 {offsets = [0, 96], sizes = [2, 32], strides = [1, 1]} : vector<2x128xf32> to vector<2x32xf32>
    %212 = math.tanh %211 : vector<2x32xf32>
    %213 = vector.extract_strided_slice %210 {offsets = [0, 0], sizes = [2, 32], strides = [1, 1]} : vector<2x96xf32> to vector<2x32xf32>
    %214 = vector.extract_strided_slice %210 {offsets = [0, 32], sizes = [2, 32], strides = [1, 1]} : vector<2x96xf32> to vector<2x32xf32>
    %215 = vector.extract_strided_slice %210 {offsets = [0, 64], sizes = [2, 32], strides = [1, 1]} : vector<2x96xf32> to vector<2x32xf32>
    %216 = arith.mulf %214, %164 : vector<2x32xf32>
    %217 = arith.mulf %213, %212 : vector<2x32xf32>
    %218 = arith.addf %216, %217 : vector<2x32xf32>
    %219 = math.tanh %218 : vector<2x32xf32>
    %220 = arith.mulf %215, %219 : vector<2x32xf32>
    %221 = arith.truncf %220 : vector<2x32xf32> to vector<2x32xbf16>
    %cst_45 = arith.constant dense<0.000000e+00> : vector<2x132xf32>
    %222 = tpu.matmul %221, %5, %cst_45 {dimension_numbers = #tpu.dot_dimension_numbers<[1], [0], [0], [1], [0, 0, 1, 1], [], []>} : vector<2x32xbf16>, vector<32x132xbf16>, vector<2x132xf32> -> vector<2x132xf32>
    %223 = vector.extract_strided_slice %222 {offsets = [0, 128], sizes = [2, 4], strides = [1, 1]} : vector<2x132xf32> to vector<2x4xf32>
    %224 = arith.addf %223, %7 : vector<2x4xf32>
    %225 = vector.extract_strided_slice %222 {offsets = [0, 0], sizes = [2, 128], strides = [1, 1]} : vector<2x132xf32> to vector<2x128xf32>
    %226 = arith.addf %173, %225 : vector<2x128xf32>
    %227 = arith.addf %226, %8 : vector<2x128xf32>
    %cst_46 = arith.constant 0.00999999977 : f32
    %228 = vector.broadcast %cst_46 : f32 to vector<2x4xf32>
    %229 = arith.mulf %224, %228 : vector<2x4xf32>
    %230 = arith.addf %176, %229 : vector<2x4xf32>
    %231 = tpu.concatenate %230, %224 in 1 : vector<2x4xf32>, vector<2x4xf32> -> vector<2x8xf32>
    %c0_47 = arith.constant 0 : index
    %c0_48 = arith.constant 0 : index
    %c24 = arith.constant 24 : index
    %232 = vector.load %arg9[%c0_47, %c0_48, %c24] : memref<1x2x128xf32, #tpu.memory_space<vmem>>, vector<1x2x8xf32>
    %233 = vector.shape_cast %232 : vector<1x2x8xf32> to vector<2x8xf32>
    %234 = vector.shape_cast %231 : vector<2x8xf32> to vector<1x2x8xf32>
    tpu.vector_store %arg9[%c0_47, %c0_48, %c24], %234 {strides = array<i32>} : memref<1x2x128xf32, #tpu.memory_space<vmem>>, vector<1x2x8xf32>,
    %235 = arith.addf %227, %200 : vector<2x128xf32>
    %236 = vector.extract_strided_slice %235 {offsets = [0, 0], sizes = [2, 96], strides = [1, 1]} : vector<2x128xf32> to vector<2x96xf32>
    %237 = arith.negf %236 : vector<2x96xf32>
    %238 = math.exp %237 : vector<2x96xf32>
    %cst_49 = arith.constant 1.000000e+00 : f32
    %239 = vector.broadcast %cst_49 : f32 to vector<2x96xf32>
    %240 = arith.addf %239, %238 : vector<2x96xf32>
    %241 = arith.divf %239, %240 : vector<2x96xf32>
    %242 = vector.extract_strided_slice %235 {offsets = [0, 96], sizes = [2, 32], strides = [1, 1]} : vector<2x128xf32> to vector<2x32xf32>
    %243 = math.tanh %242 : vector<2x32xf32>
    %244 = vector.extract_strided_slice %241 {offsets = [0, 0], sizes = [2, 32], strides = [1, 1]} : vector<2x96xf32> to vector<2x32xf32>
    %245 = vector.extract_strided_slice %241 {offsets = [0, 32], sizes = [2, 32], strides = [1, 1]} : vector<2x96xf32> to vector<2x32xf32>
    %246 = vector.extract_strided_slice %241 {offsets = [0, 64], sizes = [2, 32], strides = [1, 1]} : vector<2x96xf32> to vector<2x32xf32>
    %247 = arith.mulf %245, %195 : vector<2x32xf32>
    %248 = arith.mulf %244, %243 : vector<2x32xf32>
    %249 = arith.addf %247, %248 : vector<2x32xf32>
    %250 = math.tanh %249 : vector<2x32xf32>
    %251 = arith.mulf %246, %250 : vector<2x32xf32>
    %252 = arith.truncf %251 : vector<2x32xf32> to vector<2x32xbf16>
    %cst_50 = arith.constant dense<0.000000e+00> : vector<2x256xf32>
    %253 = tpu.matmul %252, %3, %cst_50 {dimension_numbers = #tpu.dot_dimension_numbers<[1], [0], [0], [1], [0, 0, 1, 1], [], []>} : vector<2x32xbf16>, vector<32x256xbf16>, vector<2x256xf32> -> vector<2x256xf32>
    %254 = vector.extract_strided_slice %253 {offsets = [0, 128], sizes = [2, 128], strides = [1, 1]} : vector<2x256xf32> to vector<2x128xf32>
    %255 = vector.extract_strided_slice %253 {offsets = [0, 0], sizes = [2, 128], strides = [1, 1]} : vector<2x256xf32> to vector<2x128xf32>
    %256 = arith.addf %6, %255 : vector<2x128xf32>
    %cst_51 = arith.constant dense<0.000000e+00> : vector<2x128xf32>
    %257 = tpu.matmul %221, %4, %cst_51 {dimension_numbers = #tpu.dot_dimension_numbers<[1], [0], [0], [1], [0, 0, 1, 1], [], []>} : vector<2x32xbf16>, vector<32x128xbf16>, vector<2x128xf32> -> vector<2x128xf32>
    %258 = arith.addf %256, %257 : vector<2x128xf32>
    %259 = vector.extract_strided_slice %258 {offsets = [0, 0], sizes = [2, 96], strides = [1, 1]} : vector<2x128xf32> to vector<2x96xf32>
    %260 = arith.negf %259 : vector<2x96xf32>
    %261 = math.exp %260 : vector<2x96xf32>
    %cst_52 = arith.constant 1.000000e+00 : f32
    %262 = vector.broadcast %cst_52 : f32 to vector<2x96xf32>
    %263 = arith.addf %262, %261 : vector<2x96xf32>
    %264 = arith.divf %262, %263 : vector<2x96xf32>
    %265 = vector.extract_strided_slice %258 {offsets = [0, 96], sizes = [2, 32], strides = [1, 1]} : vector<2x128xf32> to vector<2x32xf32>
    %266 = math.tanh %265 : vector<2x32xf32>
    %267 = vector.extract_strided_slice %264 {offsets = [0, 0], sizes = [2, 32], strides = [1, 1]} : vector<2x96xf32> to vector<2x32xf32>
    %268 = vector.extract_strided_slice %264 {offsets = [0, 32], sizes = [2, 32], strides = [1, 1]} : vector<2x96xf32> to vector<2x32xf32>
    %269 = vector.extract_strided_slice %264 {offsets = [0, 64], sizes = [2, 32], strides = [1, 1]} : vector<2x96xf32> to vector<2x32xf32>
    %270 = arith.mulf %268, %218 : vector<2x32xf32>
    %271 = arith.mulf %267, %266 : vector<2x32xf32>
    %272 = arith.addf %270, %271 : vector<2x32xf32>
    %273 = math.tanh %272 : vector<2x32xf32>
    %274 = arith.mulf %269, %273 : vector<2x32xf32>
    %275 = arith.truncf %274 : vector<2x32xf32> to vector<2x32xbf16>
    %cst_53 = arith.constant dense<0.000000e+00> : vector<2x132xf32>
    %276 = tpu.matmul %275, %5, %cst_53 {dimension_numbers = #tpu.dot_dimension_numbers<[1], [0], [0], [1], [0, 0, 1, 1], [], []>} : vector<2x32xbf16>, vector<32x132xbf16>, vector<2x132xf32> -> vector<2x132xf32>
    %277 = vector.extract_strided_slice %276 {offsets = [0, 128], sizes = [2, 4], strides = [1, 1]} : vector<2x132xf32> to vector<2x4xf32>
    %278 = arith.addf %277, %7 : vector<2x4xf32>
    %279 = vector.extract_strided_slice %276 {offsets = [0, 0], sizes = [2, 128], strides = [1, 1]} : vector<2x132xf32> to vector<2x128xf32>
    %280 = arith.addf %227, %279 : vector<2x128xf32>
    %281 = arith.addf %280, %8 : vector<2x128xf32>
    %cst_54 = arith.constant 0.00999999977 : f32
    %282 = vector.broadcast %cst_54 : f32 to vector<2x4xf32>
    %283 = arith.mulf %278, %282 : vector<2x4xf32>
    %284 = arith.addf %230, %283 : vector<2x4xf32>
    %285 = tpu.concatenate %284, %278 in 1 : vector<2x4xf32>, vector<2x4xf32> -> vector<2x8xf32>
    %c0_55 = arith.constant 0 : index
    %c0_56 = arith.constant 0 : index
    %c32 = arith.constant 32 : index
    %286 = vector.load %arg9[%c0_55, %c0_56, %c32] : memref<1x2x128xf32, #tpu.memory_space<vmem>>, vector<1x2x8xf32>
    %287 = vector.shape_cast %286 : vector<1x2x8xf32> to vector<2x8xf32>
    %288 = vector.shape_cast %285 : vector<2x8xf32> to vector<1x2x8xf32>
    tpu.vector_store %arg9[%c0_55, %c0_56, %c32], %288 {strides = array<i32>} : memref<1x2x128xf32, #tpu.memory_space<vmem>>, vector<1x2x8xf32>,
    %289 = arith.addf %281, %254 : vector<2x128xf32>
    %290 = vector.extract_strided_slice %289 {offsets = [0, 0], sizes = [2, 96], strides = [1, 1]} : vector<2x128xf32> to vector<2x96xf32>
    %291 = arith.negf %290 : vector<2x96xf32>
    %292 = math.exp %291 : vector<2x96xf32>
    %cst_57 = arith.constant 1.000000e+00 : f32
    %293 = vector.broadcast %cst_57 : f32 to vector<2x96xf32>
    %294 = arith.addf %293, %292 : vector<2x96xf32>
    %295 = arith.divf %293, %294 : vector<2x96xf32>
    %296 = vector.extract_strided_slice %289 {offsets = [0, 96], sizes = [2, 32], strides = [1, 1]} : vector<2x128xf32> to vector<2x32xf32>
    %297 = math.tanh %296 : vector<2x32xf32>
    %298 = vector.extract_strided_slice %295 {offsets = [0, 0], sizes = [2, 32], strides = [1, 1]} : vector<2x96xf32> to vector<2x32xf32>
    %299 = vector.extract_strided_slice %295 {offsets = [0, 32], sizes = [2, 32], strides = [1, 1]} : vector<2x96xf32> to vector<2x32xf32>
    %300 = vector.extract_strided_slice %295 {offsets = [0, 64], sizes = [2, 32], strides = [1, 1]} : vector<2x96xf32> to vector<2x32xf32>
    %301 = arith.mulf %299, %249 : vector<2x32xf32>
    %302 = arith.mulf %298, %297 : vector<2x32xf32>
    %303 = arith.addf %301, %302 : vector<2x32xf32>
    %304 = math.tanh %303 : vector<2x32xf32>
    %305 = arith.mulf %300, %304 : vector<2x32xf32>
    %306 = arith.truncf %305 : vector<2x32xf32> to vector<2x32xbf16>
    %cst_58 = arith.constant dense<0.000000e+00> : vector<2x256xf32>
    %307 = tpu.matmul %306, %3, %cst_58 {dimension_numbers = #tpu.dot_dimension_numbers<[1], [0], [0], [1], [0, 0, 1, 1], [], []>} : vector<2x32xbf16>, vector<32x256xbf16>, vector<2x256xf32> -> vector<2x256xf32>
    %308 = vector.extract_strided_slice %307 {offsets = [0, 128], sizes = [2, 128], strides = [1, 1]} : vector<2x256xf32> to vector<2x128xf32>
    %309 = vector.extract_strided_slice %307 {offsets = [0, 0], sizes = [2, 128], strides = [1, 1]} : vector<2x256xf32> to vector<2x128xf32>
    %310 = arith.addf %6, %309 : vector<2x128xf32>
    %cst_59 = arith.constant dense<0.000000e+00> : vector<2x128xf32>
    %311 = tpu.matmul %275, %4, %cst_59 {dimension_numbers = #tpu.dot_dimension_numbers<[1], [0], [0], [1], [0, 0, 1, 1], [], []>} : vector<2x32xbf16>, vector<32x128xbf16>, vector<2x128xf32> -> vector<2x128xf32>
    %312 = arith.addf %310, %311 : vector<2x128xf32>
    %313 = vector.extract_strided_slice %312 {offsets = [0, 0], sizes = [2, 96], strides = [1, 1]} : vector<2x128xf32> to vector<2x96xf32>
    %314 = arith.negf %313 : vector<2x96xf32>
    %315 = math.exp %314 : vector<2x96xf32>
    %cst_60 = arith.constant 1.000000e+00 : f32
    %316 = vector.broadcast %cst_60 : f32 to vector<2x96xf32>
    %317 = arith.addf %316, %315 : vector<2x96xf32>
    %318 = arith.divf %316, %317 : vector<2x96xf32>
    %319 = vector.extract_strided_slice %312 {offsets = [0, 96], sizes = [2, 32], strides = [1, 1]} : vector<2x128xf32> to vector<2x32xf32>
    %320 = math.tanh %319 : vector<2x32xf32>
    %321 = vector.extract_strided_slice %318 {offsets = [0, 0], sizes = [2, 32], strides = [1, 1]} : vector<2x96xf32> to vector<2x32xf32>
    %322 = vector.extract_strided_slice %318 {offsets = [0, 32], sizes = [2, 32], strides = [1, 1]} : vector<2x96xf32> to vector<2x32xf32>
    %323 = vector.extract_strided_slice %318 {offsets = [0, 64], sizes = [2, 32], strides = [1, 1]} : vector<2x96xf32> to vector<2x32xf32>
    %324 = arith.mulf %322, %272 : vector<2x32xf32>
    %325 = arith.mulf %321, %320 : vector<2x32xf32>
    %326 = arith.addf %324, %325 : vector<2x32xf32>
    %327 = math.tanh %326 : vector<2x32xf32>
    %328 = arith.mulf %323, %327 : vector<2x32xf32>
    %329 = arith.truncf %328 : vector<2x32xf32> to vector<2x32xbf16>
    %cst_61 = arith.constant dense<0.000000e+00> : vector<2x132xf32>
    %330 = tpu.matmul %329, %5, %cst_61 {dimension_numbers = #tpu.dot_dimension_numbers<[1], [0], [0], [1], [0, 0, 1, 1], [], []>} : vector<2x32xbf16>, vector<32x132xbf16>, vector<2x132xf32> -> vector<2x132xf32>
    %331 = vector.extract_strided_slice %330 {offsets = [0, 128], sizes = [2, 4], strides = [1, 1]} : vector<2x132xf32> to vector<2x4xf32>
    %332 = arith.addf %331, %7 : vector<2x4xf32>
    %333 = vector.extract_strided_slice %330 {offsets = [0, 0], sizes = [2, 128], strides = [1, 1]} : vector<2x132xf32> to vector<2x128xf32>
    %334 = arith.addf %281, %333 : vector<2x128xf32>
    %335 = arith.addf %334, %8 : vector<2x128xf32>
    %cst_62 = arith.constant 0.00999999977 : f32
    %336 = vector.broadcast %cst_62 : f32 to vector<2x4xf32>
    %337 = arith.mulf %332, %336 : vector<2x4xf32>
    %338 = arith.addf %284, %337 : vector<2x4xf32>
    %339 = tpu.concatenate %338, %332 in 1 : vector<2x4xf32>, vector<2x4xf32> -> vector<2x8xf32>
    %c0_63 = arith.constant 0 : index
    %c0_64 = arith.constant 0 : index
    %c40 = arith.constant 40 : index
    %340 = vector.load %arg9[%c0_63, %c0_64, %c40] : memref<1x2x128xf32, #tpu.memory_space<vmem>>, vector<1x2x8xf32>
    %341 = vector.shape_cast %340 : vector<1x2x8xf32> to vector<2x8xf32>
    %342 = vector.shape_cast %339 : vector<2x8xf32> to vector<1x2x8xf32>
    tpu.vector_store %arg9[%c0_63, %c0_64, %c40], %342 {strides = array<i32>} : memref<1x2x128xf32, #tpu.memory_space<vmem>>, vector<1x2x8xf32>,
    %343 = arith.addf %335, %308 : vector<2x128xf32>
    %344 = vector.extract_strided_slice %343 {offsets = [0, 0], sizes = [2, 96], strides = [1, 1]} : vector<2x128xf32> to vector<2x96xf32>
    %345 = arith.negf %344 : vector<2x96xf32>
    %346 = math.exp %345 : vector<2x96xf32>
    %cst_65 = arith.constant 1.000000e+00 : f32
    %347 = vector.broadcast %cst_65 : f32 to vector<2x96xf32>
    %348 = arith.addf %347, %346 : vector<2x96xf32>
    %349 = arith.divf %347, %348 : vector<2x96xf32>
    %350 = vector.extract_strided_slice %343 {offsets = [0, 96], sizes = [2, 32], strides = [1, 1]} : vector<2x128xf32> to vector<2x32xf32>
    %351 = math.tanh %350 : vector<2x32xf32>
    %352 = vector.extract_strided_slice %349 {offsets = [0, 0], sizes = [2, 32], strides = [1, 1]} : vector<2x96xf32> to vector<2x32xf32>
    %353 = vector.extract_strided_slice %349 {offsets = [0, 32], sizes = [2, 32], strides = [1, 1]} : vector<2x96xf32> to vector<2x32xf32>
    %354 = vector.extract_strided_slice %349 {offsets = [0, 64], sizes = [2, 32], strides = [1, 1]} : vector<2x96xf32> to vector<2x32xf32>
    %355 = arith.mulf %353, %303 : vector<2x32xf32>
    %356 = arith.mulf %352, %351 : vector<2x32xf32>
    %357 = arith.addf %355, %356 : vector<2x32xf32>
    %358 = math.tanh %357 : vector<2x32xf32>
    %359 = arith.mulf %354, %358 : vector<2x32xf32>
    %360 = arith.truncf %359 : vector<2x32xf32> to vector<2x32xbf16>
    %cst_66 = arith.constant dense<0.000000e+00> : vector<2x256xf32>
    %361 = tpu.matmul %360, %3, %cst_66 {dimension_numbers = #tpu.dot_dimension_numbers<[1], [0], [0], [1], [0, 0, 1, 1], [], []>} : vector<2x32xbf16>, vector<32x256xbf16>, vector<2x256xf32> -> vector<2x256xf32>
    %362 = vector.extract_strided_slice %361 {offsets = [0, 128], sizes = [2, 128], strides = [1, 1]} : vector<2x256xf32> to vector<2x128xf32>
    %363 = vector.extract_strided_slice %361 {offsets = [0, 0], sizes = [2, 128], strides = [1, 1]} : vector<2x256xf32> to vector<2x128xf32>
    %364 = arith.addf %6, %363 : vector<2x128xf32>
    %cst_67 = arith.constant dense<0.000000e+00> : vector<2x128xf32>
    %365 = tpu.matmul %329, %4, %cst_67 {dimension_numbers = #tpu.dot_dimension_numbers<[1], [0], [0], [1], [0, 0, 1, 1], [], []>} : vector<2x32xbf16>, vector<32x128xbf16>, vector<2x128xf32> -> vector<2x128xf32>
    %366 = arith.addf %364, %365 : vector<2x128xf32>
    %367 = vector.extract_strided_slice %366 {offsets = [0, 0], sizes = [2, 96], strides = [1, 1]} : vector<2x128xf32> to vector<2x96xf32>
    %368 = arith.negf %367 : vector<2x96xf32>
    %369 = math.exp %368 : vector<2x96xf32>
    %cst_68 = arith.constant 1.000000e+00 : f32
    %370 = vector.broadcast %cst_68 : f32 to vector<2x96xf32>
    %371 = arith.addf %370, %369 : vector<2x96xf32>
    %372 = arith.divf %370, %371 : vector<2x96xf32>
    %373 = vector.extract_strided_slice %366 {offsets = [0, 96], sizes = [2, 32], strides = [1, 1]} : vector<2x128xf32> to vector<2x32xf32>
    %374 = math.tanh %373 : vector<2x32xf32>
    %375 = vector.extract_strided_slice %372 {offsets = [0, 0], sizes = [2, 32], strides = [1, 1]} : vector<2x96xf32> to vector<2x32xf32>
    %376 = vector.extract_strided_slice %372 {offsets = [0, 32], sizes = [2, 32], strides = [1, 1]} : vector<2x96xf32> to vector<2x32xf32>
    %377 = vector.extract_strided_slice %372 {offsets = [0, 64], sizes = [2, 32], strides = [1, 1]} : vector<2x96xf32> to vector<2x32xf32>
    %378 = arith.mulf %376, %326 : vector<2x32xf32>
    %379 = arith.mulf %375, %374 : vector<2x32xf32>
    %380 = arith.addf %378, %379 : vector<2x32xf32>
    %381 = math.tanh %380 : vector<2x32xf32>
    %382 = arith.mulf %377, %381 : vector<2x32xf32>
    %383 = arith.truncf %382 : vector<2x32xf32> to vector<2x32xbf16>
    %cst_69 = arith.constant dense<0.000000e+00> : vector<2x132xf32>
    %384 = tpu.matmul %383, %5, %cst_69 {dimension_numbers = #tpu.dot_dimension_numbers<[1], [0], [0], [1], [0, 0, 1, 1], [], []>} : vector<2x32xbf16>, vector<32x132xbf16>, vector<2x132xf32> -> vector<2x132xf32>
    %385 = vector.extract_strided_slice %384 {offsets = [0, 128], sizes = [2, 4], strides = [1, 1]} : vector<2x132xf32> to vector<2x4xf32>
    %386 = arith.addf %385, %7 : vector<2x4xf32>
    %387 = vector.extract_strided_slice %384 {offsets = [0, 0], sizes = [2, 128], strides = [1, 1]} : vector<2x132xf32> to vector<2x128xf32>
    %388 = arith.addf %335, %387 : vector<2x128xf32>
    %389 = arith.addf %388, %8 : vector<2x128xf32>
    %cst_70 = arith.constant 0.00999999977 : f32
    %390 = vector.broadcast %cst_70 : f32 to vector<2x4xf32>
    %391 = arith.mulf %386, %390 : vector<2x4xf32>
    %392 = arith.addf %338, %391 : vector<2x4xf32>
    %393 = tpu.concatenate %392, %386 in 1 : vector<2x4xf32>, vector<2x4xf32> -> vector<2x8xf32>
    %c0_71 = arith.constant 0 : index
    %c0_72 = arith.constant 0 : index
    %c48 = arith.constant 48 : index
    %394 = vector.load %arg9[%c0_71, %c0_72, %c48] : memref<1x2x128xf32, #tpu.memory_space<vmem>>, vector<1x2x8xf32>
    %395 = vector.shape_cast %394 : vector<1x2x8xf32> to vector<2x8xf32>
    %396 = vector.shape_cast %393 : vector<2x8xf32> to vector<1x2x8xf32>
    tpu.vector_store %arg9[%c0_71, %c0_72, %c48], %396 {strides = array<i32>} : memref<1x2x128xf32, #tpu.memory_space<vmem>>, vector<1x2x8xf32>,
    %397 = arith.addf %389, %362 : vector<2x128xf32>
    %398 = vector.extract_strided_slice %397 {offsets = [0, 0], sizes = [2, 96], strides = [1, 1]} : vector<2x128xf32> to vector<2x96xf32>
    %399 = arith.negf %398 : vector<2x96xf32>
    %400 = math.exp %399 : vector<2x96xf32>
    %cst_73 = arith.constant 1.000000e+00 : f32
    %401 = vector.broadcast %cst_73 : f32 to vector<2x96xf32>
    %402 = arith.addf %401, %400 : vector<2x96xf32>
    %403 = arith.divf %401, %402 : vector<2x96xf32>
    %404 = vector.extract_strided_slice %397 {offsets = [0, 96], sizes = [2, 32], strides = [1, 1]} : vector<2x128xf32> to vector<2x32xf32>
    %405 = math.tanh %404 : vector<2x32xf32>
    %406 = vector.extract_strided_slice %403 {offsets = [0, 0], sizes = [2, 32], strides = [1, 1]} : vector<2x96xf32> to vector<2x32xf32>
    %407 = vector.extract_strided_slice %403 {offsets = [0, 32], sizes = [2, 32], strides = [1, 1]} : vector<2x96xf32> to vector<2x32xf32>
    %408 = vector.extract_strided_slice %403 {offsets = [0, 64], sizes = [2, 32], strides = [1, 1]} : vector<2x96xf32> to vector<2x32xf32>
    %409 = arith.mulf %407, %357 : vector<2x32xf32>
    %410 = arith.mulf %406, %405 : vector<2x32xf32>
    %411 = arith.addf %409, %410 : vector<2x32xf32>
    %412 = math.tanh %411 : vector<2x32xf32>
    %413 = arith.mulf %408, %412 : vector<2x32xf32>
    %414 = arith.truncf %413 : vector<2x32xf32> to vector<2x32xbf16>
    %cst_74 = arith.constant dense<0.000000e+00> : vector<2x256xf32>
    %415 = tpu.matmul %414, %3, %cst_74 {dimension_numbers = #tpu.dot_dimension_numbers<[1], [0], [0], [1], [0, 0, 1, 1], [], []>} : vector<2x32xbf16>, vector<32x256xbf16>, vector<2x256xf32> -> vector<2x256xf32>
    %416 = vector.extract_strided_slice %415 {offsets = [0, 128], sizes = [2, 128], strides = [1, 1]} : vector<2x256xf32> to vector<2x128xf32>
    %417 = vector.extract_strided_slice %415 {offsets = [0, 0], sizes = [2, 128], strides = [1, 1]} : vector<2x256xf32> to vector<2x128xf32>
    %418 = arith.addf %6, %417 : vector<2x128xf32>
    %cst_75 = arith.constant dense<0.000000e+00> : vector<2x128xf32>
    %419 = tpu.matmul %383, %4, %cst_75 {dimension_numbers = #tpu.dot_dimension_numbers<[1], [0], [0], [1], [0, 0, 1, 1], [], []>} : vector<2x32xbf16>, vector<32x128xbf16>, vector<2x128xf32> -> vector<2x128xf32>
    %420 = arith.addf %418, %419 : vector<2x128xf32>
    %421 = vector.extract_strided_slice %420 {offsets = [0, 0], sizes = [2, 96], strides = [1, 1]} : vector<2x128xf32> to vector<2x96xf32>
    %422 = arith.negf %421 : vector<2x96xf32>
    %423 = math.exp %422 : vector<2x96xf32>
    %cst_76 = arith.constant 1.000000e+00 : f32
    %424 = vector.broadcast %cst_76 : f32 to vector<2x96xf32>
    %425 = arith.addf %424, %423 : vector<2x96xf32>
    %426 = arith.divf %424, %425 : vector<2x96xf32>
    %427 = vector.extract_strided_slice %420 {offsets = [0, 96], sizes = [2, 32], strides = [1, 1]} : vector<2x128xf32> to vector<2x32xf32>
    %428 = math.tanh %427 : vector<2x32xf32>
    %429 = vector.extract_strided_slice %426 {offsets = [0, 0], sizes = [2, 32], strides = [1, 1]} : vector<2x96xf32> to vector<2x32xf32>
    %430 = vector.extract_strided_slice %426 {offsets = [0, 32], sizes = [2, 32], strides = [1, 1]} : vector<2x96xf32> to vector<2x32xf32>
    %431 = vector.extract_strided_slice %426 {offsets = [0, 64], sizes = [2, 32], strides = [1, 1]} : vector<2x96xf32> to vector<2x32xf32>
    %432 = arith.mulf %430, %380 : vector<2x32xf32>
    %433 = arith.mulf %429, %428 : vector<2x32xf32>
    %434 = arith.addf %432, %433 : vector<2x32xf32>
    %435 = math.tanh %434 : vector<2x32xf32>
    %436 = arith.mulf %431, %435 : vector<2x32xf32>
    %437 = arith.truncf %436 : vector<2x32xf32> to vector<2x32xbf16>
    %cst_77 = arith.constant dense<0.000000e+00> : vector<2x132xf32>
    %438 = tpu.matmul %437, %5, %cst_77 {dimension_numbers = #tpu.dot_dimension_numbers<[1], [0], [0], [1], [0, 0, 1, 1], [], []>} : vector<2x32xbf16>, vector<32x132xbf16>, vector<2x132xf32> -> vector<2x132xf32>
    %439 = vector.extract_strided_slice %438 {offsets = [0, 128], sizes = [2, 4], strides = [1, 1]} : vector<2x132xf32> to vector<2x4xf32>
    %440 = arith.addf %439, %7 : vector<2x4xf32>
    %441 = vector.extract_strided_slice %438 {offsets = [0, 0], sizes = [2, 128], strides = [1, 1]} : vector<2x132xf32> to vector<2x128xf32>
    %442 = arith.addf %389, %441 : vector<2x128xf32>
    %443 = arith.addf %442, %8 : vector<2x128xf32>
    %cst_78 = arith.constant 0.00999999977 : f32
    %444 = vector.broadcast %cst_78 : f32 to vector<2x4xf32>
    %445 = arith.mulf %440, %444 : vector<2x4xf32>
    %446 = arith.addf %392, %445 : vector<2x4xf32>
    %447 = tpu.concatenate %446, %440 in 1 : vector<2x4xf32>, vector<2x4xf32> -> vector<2x8xf32>
    %c0_79 = arith.constant 0 : index
    %c0_80 = arith.constant 0 : index
    %c56 = arith.constant 56 : index
    %448 = vector.load %arg9[%c0_79, %c0_80, %c56] : memref<1x2x128xf32, #tpu.memory_space<vmem>>, vector<1x2x8xf32>
    %449 = vector.shape_cast %448 : vector<1x2x8xf32> to vector<2x8xf32>
    %450 = vector.shape_cast %447 : vector<2x8xf32> to vector<1x2x8xf32>
    tpu.vector_store %arg9[%c0_79, %c0_80, %c56], %450 {strides = array<i32>} : memref<1x2x128xf32, #tpu.memory_space<vmem>>, vector<1x2x8xf32>,
    %451 = arith.addf %443, %416 : vector<2x128xf32>
    %452 = vector.extract_strided_slice %451 {offsets = [0, 0], sizes = [2, 96], strides = [1, 1]} : vector<2x128xf32> to vector<2x96xf32>
    %453 = arith.negf %452 : vector<2x96xf32>
    %454 = math.exp %453 : vector<2x96xf32>
    %cst_81 = arith.constant 1.000000e+00 : f32
    %455 = vector.broadcast %cst_81 : f32 to vector<2x96xf32>
    %456 = arith.addf %455, %454 : vector<2x96xf32>
    %457 = arith.divf %455, %456 : vector<2x96xf32>
    %458 = vector.extract_strided_slice %451 {offsets = [0, 96], sizes = [2, 32], strides = [1, 1]} : vector<2x128xf32> to vector<2x32xf32>
    %459 = math.tanh %458 : vector<2x32xf32>
    %460 = vector.extract_strided_slice %457 {offsets = [0, 0], sizes = [2, 32], strides = [1, 1]} : vector<2x96xf32> to vector<2x32xf32>
    %461 = vector.extract_strided_slice %457 {offsets = [0, 32], sizes = [2, 32], strides = [1, 1]} : vector<2x96xf32> to vector<2x32xf32>
    %462 = vector.extract_strided_slice %457 {offsets = [0, 64], sizes = [2, 32], strides = [1, 1]} : vector<2x96xf32> to vector<2x32xf32>
    %463 = arith.mulf %461, %411 : vector<2x32xf32>
    %464 = arith.mulf %460, %459 : vector<2x32xf32>
    %465 = arith.addf %463, %464 : vector<2x32xf32>
    %466 = math.tanh %465 : vector<2x32xf32>
    %467 = arith.mulf %462, %466 : vector<2x32xf32>
    %468 = arith.truncf %467 : vector<2x32xf32> to vector<2x32xbf16>
    %cst_82 = arith.constant dense<0.000000e+00> : vector<2x256xf32>
    %469 = tpu.matmul %468, %3, %cst_82 {dimension_numbers = #tpu.dot_dimension_numbers<[1], [0], [0], [1], [0, 0, 1, 1], [], []>} : vector<2x32xbf16>, vector<32x256xbf16>, vector<2x256xf32> -> vector<2x256xf32>
    %470 = vector.extract_strided_slice %469 {offsets = [0, 128], sizes = [2, 128], strides = [1, 1]} : vector<2x256xf32> to vector<2x128xf32>
    %471 = vector.extract_strided_slice %469 {offsets = [0, 0], sizes = [2, 128], strides = [1, 1]} : vector<2x256xf32> to vector<2x128xf32>
    %472 = arith.addf %6, %471 : vector<2x128xf32>
    %cst_83 = arith.constant dense<0.000000e+00> : vector<2x128xf32>
    %473 = tpu.matmul %437, %4, %cst_83 {dimension_numbers = #tpu.dot_dimension_numbers<[1], [0], [0], [1], [0, 0, 1, 1], [], []>} : vector<2x32xbf16>, vector<32x128xbf16>, vector<2x128xf32> -> vector<2x128xf32>
    %474 = arith.addf %472, %473 : vector<2x128xf32>
    %475 = vector.extract_strided_slice %474 {offsets = [0, 0], sizes = [2, 96], strides = [1, 1]} : vector<2x128xf32> to vector<2x96xf32>
    %476 = arith.negf %475 : vector<2x96xf32>
    %477 = math.exp %476 : vector<2x96xf32>
    %cst_84 = arith.constant 1.000000e+00 : f32
    %478 = vector.broadcast %cst_84 : f32 to vector<2x96xf32>
    %479 = arith.addf %478, %477 : vector<2x96xf32>
    %480 = arith.divf %478, %479 : vector<2x96xf32>
    %481 = vector.extract_strided_slice %474 {offsets = [0, 96], sizes = [2, 32], strides = [1, 1]} : vector<2x128xf32> to vector<2x32xf32>
    %482 = math.tanh %481 : vector<2x32xf32>
    %483 = vector.extract_strided_slice %480 {offsets = [0, 0], sizes = [2, 32], strides = [1, 1]} : vector<2x96xf32> to vector<2x32xf32>
    %484 = vector.extract_strided_slice %480 {offsets = [0, 32], sizes = [2, 32], strides = [1, 1]} : vector<2x96xf32> to vector<2x32xf32>
    %485 = vector.extract_strided_slice %480 {offsets = [0, 64], sizes = [2, 32], strides = [1, 1]} : vector<2x96xf32> to vector<2x32xf32>
    %486 = arith.mulf %484, %434 : vector<2x32xf32>
    %487 = arith.mulf %483, %482 : vector<2x32xf32>
    %488 = arith.addf %486, %487 : vector<2x32xf32>
    %489 = math.tanh %488 : vector<2x32xf32>
    %490 = arith.mulf %485, %489 : vector<2x32xf32>
    %491 = arith.truncf %490 : vector<2x32xf32> to vector<2x32xbf16>
    %cst_85 = arith.constant dense<0.000000e+00> : vector<2x132xf32>
    %492 = tpu.matmul %491, %5, %cst_85 {dimension_numbers = #tpu.dot_dimension_numbers<[1], [0], [0], [1], [0, 0, 1, 1], [], []>} : vector<2x32xbf16>, vector<32x132xbf16>, vector<2x132xf32> -> vector<2x132xf32>
    %493 = vector.extract_strided_slice %492 {offsets = [0, 128], sizes = [2, 4], strides = [1, 1]} : vector<2x132xf32> to vector<2x4xf32>
    %494 = arith.addf %493, %7 : vector<2x4xf32>
    %495 = vector.extract_strided_slice %492 {offsets = [0, 0], sizes = [2, 128], strides = [1, 1]} : vector<2x132xf32> to vector<2x128xf32>
    %496 = arith.addf %443, %495 : vector<2x128xf32>
    %497 = arith.addf %496, %8 : vector<2x128xf32>
    %cst_86 = arith.constant 0.00999999977 : f32
    %498 = vector.broadcast %cst_86 : f32 to vector<2x4xf32>
    %499 = arith.mulf %494, %498 : vector<2x4xf32>
    %500 = arith.addf %446, %499 : vector<2x4xf32>
    %501 = tpu.concatenate %500, %494 in 1 : vector<2x4xf32>, vector<2x4xf32> -> vector<2x8xf32>
    %c0_87 = arith.constant 0 : index
    %c0_88 = arith.constant 0 : index
    %c64 = arith.constant 64 : index
    %502 = vector.load %arg9[%c0_87, %c0_88, %c64] : memref<1x2x128xf32, #tpu.memory_space<vmem>>, vector<1x2x8xf32>
    %503 = vector.shape_cast %502 : vector<1x2x8xf32> to vector<2x8xf32>
    %504 = vector.shape_cast %501 : vector<2x8xf32> to vector<1x2x8xf32>
    tpu.vector_store %arg9[%c0_87, %c0_88, %c64], %504 {strides = array<i32>} : memref<1x2x128xf32, #tpu.memory_space<vmem>>, vector<1x2x8xf32>,
    %505 = arith.addf %497, %470 : vector<2x128xf32>
    %506 = vector.extract_strided_slice %505 {offsets = [0, 0], sizes = [2, 96], strides = [1, 1]} : vector<2x128xf32> to vector<2x96xf32>
    %507 = arith.negf %506 : vector<2x96xf32>
    %508 = math.exp %507 : vector<2x96xf32>
    %cst_89 = arith.constant 1.000000e+00 : f32
    %509 = vector.broadcast %cst_89 : f32 to vector<2x96xf32>
    %510 = arith.addf %509, %508 : vector<2x96xf32>
    %511 = arith.divf %509, %510 : vector<2x96xf32>
    %512 = vector.extract_strided_slice %505 {offsets = [0, 96], sizes = [2, 32], strides = [1, 1]} : vector<2x128xf32> to vector<2x32xf32>
    %513 = math.tanh %512 : vector<2x32xf32>
    %514 = vector.extract_strided_slice %511 {offsets = [0, 0], sizes = [2, 32], strides = [1, 1]} : vector<2x96xf32> to vector<2x32xf32>
    %515 = vector.extract_strided_slice %511 {offsets = [0, 32], sizes = [2, 32], strides = [1, 1]} : vector<2x96xf32> to vector<2x32xf32>
    %516 = vector.extract_strided_slice %511 {offsets = [0, 64], sizes = [2, 32], strides = [1, 1]} : vector<2x96xf32> to vector<2x32xf32>
    %517 = arith.mulf %515, %465 : vector<2x32xf32>
    %518 = arith.mulf %514, %513 : vector<2x32xf32>
    %519 = arith.addf %517, %518 : vector<2x32xf32>
    %520 = math.tanh %519 : vector<2x32xf32>
    %521 = arith.mulf %516, %520 : vector<2x32xf32>
    %522 = arith.truncf %521 : vector<2x32xf32> to vector<2x32xbf16>
    %cst_90 = arith.constant dense<0.000000e+00> : vector<2x256xf32>
    %523 = tpu.matmul %522, %3, %cst_90 {dimension_numbers = #tpu.dot_dimension_numbers<[1], [0], [0], [1], [0, 0, 1, 1], [], []>} : vector<2x32xbf16>, vector<32x256xbf16>, vector<2x256xf32> -> vector<2x256xf32>
    %524 = vector.extract_strided_slice %523 {offsets = [0, 128], sizes = [2, 128], strides = [1, 1]} : vector<2x256xf32> to vector<2x128xf32>
    %525 = vector.extract_strided_slice %523 {offsets = [0, 0], sizes = [2, 128], strides = [1, 1]} : vector<2x256xf32> to vector<2x128xf32>
    %526 = arith.addf %6, %525 : vector<2x128xf32>
    %cst_91 = arith.constant dense<0.000000e+00> : vector<2x128xf32>
    %527 = tpu.matmul %491, %4, %cst_91 {dimension_numbers = #tpu.dot_dimension_numbers<[1], [0], [0], [1], [0, 0, 1, 1], [], []>} : vector<2x32xbf16>, vector<32x128xbf16>, vector<2x128xf32> -> vector<2x128xf32>
    %528 = arith.addf %526, %527 : vector<2x128xf32>
    %529 = vector.extract_strided_slice %528 {offsets = [0, 0], sizes = [2, 96], strides = [1, 1]} : vector<2x128xf32> to vector<2x96xf32>
    %530 = arith.negf %529 : vector<2x96xf32>
    %531 = math.exp %530 : vector<2x96xf32>
    %cst_92 = arith.constant 1.000000e+00 : f32
    %532 = vector.broadcast %cst_92 : f32 to vector<2x96xf32>
    %533 = arith.addf %532, %531 : vector<2x96xf32>
    %534 = arith.divf %532, %533 : vector<2x96xf32>
    %535 = vector.extract_strided_slice %528 {offsets = [0, 96], sizes = [2, 32], strides = [1, 1]} : vector<2x128xf32> to vector<2x32xf32>
    %536 = math.tanh %535 : vector<2x32xf32>
    %537 = vector.extract_strided_slice %534 {offsets = [0, 0], sizes = [2, 32], strides = [1, 1]} : vector<2x96xf32> to vector<2x32xf32>
    %538 = vector.extract_strided_slice %534 {offsets = [0, 32], sizes = [2, 32], strides = [1, 1]} : vector<2x96xf32> to vector<2x32xf32>
    %539 = vector.extract_strided_slice %534 {offsets = [0, 64], sizes = [2, 32], strides = [1, 1]} : vector<2x96xf32> to vector<2x32xf32>
    %540 = arith.mulf %538, %488 : vector<2x32xf32>
    %541 = arith.mulf %537, %536 : vector<2x32xf32>
    %542 = arith.addf %540, %541 : vector<2x32xf32>
    %543 = math.tanh %542 : vector<2x32xf32>
    %544 = arith.mulf %539, %543 : vector<2x32xf32>
    %545 = arith.truncf %544 : vector<2x32xf32> to vector<2x32xbf16>
    %cst_93 = arith.constant dense<0.000000e+00> : vector<2x132xf32>
    %546 = tpu.matmul %545, %5, %cst_93 {dimension_numbers = #tpu.dot_dimension_numbers<[1], [0], [0], [1], [0, 0, 1, 1], [], []>} : vector<2x32xbf16>, vector<32x132xbf16>, vector<2x132xf32> -> vector<2x132xf32>
    %547 = vector.extract_strided_slice %546 {offsets = [0, 128], sizes = [2, 4], strides = [1, 1]} : vector<2x132xf32> to vector<2x4xf32>
    %548 = arith.addf %547, %7 : vector<2x4xf32>
    %549 = vector.extract_strided_slice %546 {offsets = [0, 0], sizes = [2, 128], strides = [1, 1]} : vector<2x132xf32> to vector<2x128xf32>
    %550 = arith.addf %497, %549 : vector<2x128xf32>
    %551 = arith.addf %550, %8 : vector<2x128xf32>
    %cst_94 = arith.constant 0.00999999977 : f32
    %552 = vector.broadcast %cst_94 : f32 to vector<2x4xf32>
    %553 = arith.mulf %548, %552 : vector<2x4xf32>
    %554 = arith.addf %500, %553 : vector<2x4xf32>
    %555 = tpu.concatenate %554, %548 in 1 : vector<2x4xf32>, vector<2x4xf32> -> vector<2x8xf32>
    %c0_95 = arith.constant 0 : index
    %c0_96 = arith.constant 0 : index
    %c72 = arith.constant 72 : index
    %556 = vector.load %arg9[%c0_95, %c0_96, %c72] : memref<1x2x128xf32, #tpu.memory_space<vmem>>, vector<1x2x8xf32>
    %557 = vector.shape_cast %556 : vector<1x2x8xf32> to vector<2x8xf32>
    %558 = vector.shape_cast %555 : vector<2x8xf32> to vector<1x2x8xf32>
    tpu.vector_store %arg9[%c0_95, %c0_96, %c72], %558 {strides = array<i32>} : memref<1x2x128xf32, #tpu.memory_space<vmem>>, vector<1x2x8xf32>,
    %559 = arith.addf %551, %524 : vector<2x128xf32>
    %560 = vector.extract_strided_slice %559 {offsets = [0, 0], sizes = [2, 96], strides = [1, 1]} : vector<2x128xf32> to vector<2x96xf32>
    %561 = arith.negf %560 : vector<2x96xf32>
    %562 = math.exp %561 : vector<2x96xf32>
    %cst_97 = arith.constant 1.000000e+00 : f32
    %563 = vector.broadcast %cst_97 : f32 to vector<2x96xf32>
    %564 = arith.addf %563, %562 : vector<2x96xf32>
    %565 = arith.divf %563, %564 : vector<2x96xf32>
    %566 = vector.extract_strided_slice %559 {offsets = [0, 96], sizes = [2, 32], strides = [1, 1]} : vector<2x128xf32> to vector<2x32xf32>
    %567 = math.tanh %566 : vector<2x32xf32>
    %568 = vector.extract_strided_slice %565 {offsets = [0, 0], sizes = [2, 32], strides = [1, 1]} : vector<2x96xf32> to vector<2x32xf32>
    %569 = vector.extract_strided_slice %565 {offsets = [0, 32], sizes = [2, 32], strides = [1, 1]} : vector<2x96xf32> to vector<2x32xf32>
    %570 = vector.extract_strided_slice %565 {offsets = [0, 64], sizes = [2, 32], strides = [1, 1]} : vector<2x96xf32> to vector<2x32xf32>
    %571 = arith.mulf %569, %519 : vector<2x32xf32>
    %572 = arith.mulf %568, %567 : vector<2x32xf32>
    %573 = arith.addf %571, %572 : vector<2x32xf32>
    %574 = math.tanh %573 : vector<2x32xf32>
    %575 = arith.mulf %570, %574 : vector<2x32xf32>
    %576 = arith.truncf %575 : vector<2x32xf32> to vector<2x32xbf16>
    %cst_98 = arith.constant dense<0.000000e+00> : vector<2x256xf32>
    %577 = tpu.matmul %576, %3, %cst_98 {dimension_numbers = #tpu.dot_dimension_numbers<[1], [0], [0], [1], [0, 0, 1, 1], [], []>} : vector<2x32xbf16>, vector<32x256xbf16>, vector<2x256xf32> -> vector<2x256xf32>
    %578 = vector.extract_strided_slice %577 {offsets = [0, 128], sizes = [2, 128], strides = [1, 1]} : vector<2x256xf32> to vector<2x128xf32>
    %579 = vector.extract_strided_slice %577 {offsets = [0, 0], sizes = [2, 128], strides = [1, 1]} : vector<2x256xf32> to vector<2x128xf32>
    %580 = arith.addf %6, %579 : vector<2x128xf32>
    %cst_99 = arith.constant dense<0.000000e+00> : vector<2x128xf32>
    %581 = tpu.matmul %545, %4, %cst_99 {dimension_numbers = #tpu.dot_dimension_numbers<[1], [0], [0], [1], [0, 0, 1, 1], [], []>} : vector<2x32xbf16>, vector<32x128xbf16>, vector<2x128xf32> -> vector<2x128xf32>
    %582 = arith.addf %580, %581 : vector<2x128xf32>
    %583 = vector.extract_strided_slice %582 {offsets = [0, 0], sizes = [2, 96], strides = [1, 1]} : vector<2x128xf32> to vector<2x96xf32>
    %584 = arith.negf %583 : vector<2x96xf32>
    %585 = math.exp %584 : vector<2x96xf32>
    %cst_100 = arith.constant 1.000000e+00 : f32
    %586 = vector.broadcast %cst_100 : f32 to vector<2x96xf32>
    %587 = arith.addf %586, %585 : vector<2x96xf32>
    %588 = arith.divf %586, %587 : vector<2x96xf32>
    %589 = vector.extract_strided_slice %582 {offsets = [0, 96], sizes = [2, 32], strides = [1, 1]} : vector<2x128xf32> to vector<2x32xf32>
    %590 = math.tanh %589 : vector<2x32xf32>
    %591 = vector.extract_strided_slice %588 {offsets = [0, 0], sizes = [2, 32], strides = [1, 1]} : vector<2x96xf32> to vector<2x32xf32>
    %592 = vector.extract_strided_slice %588 {offsets = [0, 32], sizes = [2, 32], strides = [1, 1]} : vector<2x96xf32> to vector<2x32xf32>
    %593 = vector.extract_strided_slice %588 {offsets = [0, 64], sizes = [2, 32], strides = [1, 1]} : vector<2x96xf32> to vector<2x32xf32>
    %594 = arith.mulf %592, %542 : vector<2x32xf32>
    %595 = arith.mulf %591, %590 : vector<2x32xf32>
    %596 = arith.addf %594, %595 : vector<2x32xf32>
    %597 = math.tanh %596 : vector<2x32xf32>
    %598 = arith.mulf %593, %597 : vector<2x32xf32>
    %599 = arith.truncf %598 : vector<2x32xf32> to vector<2x32xbf16>
    %cst_101 = arith.constant dense<0.000000e+00> : vector<2x132xf32>
    %600 = tpu.matmul %599, %5, %cst_101 {dimension_numbers = #tpu.dot_dimension_numbers<[1], [0], [0], [1], [0, 0, 1, 1], [], []>} : vector<2x32xbf16>, vector<32x132xbf16>, vector<2x132xf32> -> vector<2x132xf32>
    %601 = vector.extract_strided_slice %600 {offsets = [0, 128], sizes = [2, 4], strides = [1, 1]} : vector<2x132xf32> to vector<2x4xf32>
    %602 = arith.addf %601, %7 : vector<2x4xf32>
    %603 = vector.extract_strided_slice %600 {offsets = [0, 0], sizes = [2, 128], strides = [1, 1]} : vector<2x132xf32> to vector<2x128xf32>
    %604 = arith.addf %551, %603 : vector<2x128xf32>
    %605 = arith.addf %604, %8 : vector<2x128xf32>
    %cst_102 = arith.constant 0.00999999977 : f32
    %606 = vector.broadcast %cst_102 : f32 to vector<2x4xf32>
    %607 = arith.mulf %602, %606 : vector<2x4xf32>
    %608 = arith.addf %554, %607 : vector<2x4xf32>
    %609 = tpu.concatenate %608, %602 in 1 : vector<2x4xf32>, vector<2x4xf32> -> vector<2x8xf32>
    %c0_103 = arith.constant 0 : index
    %c0_104 = arith.constant 0 : index
    %c80 = arith.constant 80 : index
    %610 = vector.load %arg9[%c0_103, %c0_104, %c80] : memref<1x2x128xf32, #tpu.memory_space<vmem>>, vector<1x2x8xf32>
    %611 = vector.shape_cast %610 : vector<1x2x8xf32> to vector<2x8xf32>
    %612 = vector.shape_cast %609 : vector<2x8xf32> to vector<1x2x8xf32>
    tpu.vector_store %arg9[%c0_103, %c0_104, %c80], %612 {strides = array<i32>} : memref<1x2x128xf32, #tpu.memory_space<vmem>>, vector<1x2x8xf32>,
    %613 = arith.addf %605, %578 : vector<2x128xf32>
    %614 = vector.extract_strided_slice %613 {offsets = [0, 0], sizes = [2, 96], strides = [1, 1]} : vector<2x128xf32> to vector<2x96xf32>
    %615 = arith.negf %614 : vector<2x96xf32>
    %616 = math.exp %615 : vector<2x96xf32>
    %cst_105 = arith.constant 1.000000e+00 : f32
    %617 = vector.broadcast %cst_105 : f32 to vector<2x96xf32>
    %618 = arith.addf %617, %616 : vector<2x96xf32>
    %619 = arith.divf %617, %618 : vector<2x96xf32>
    %620 = vector.extract_strided_slice %613 {offsets = [0, 96], sizes = [2, 32], strides = [1, 1]} : vector<2x128xf32> to vector<2x32xf32>
    %621 = math.tanh %620 : vector<2x32xf32>
    %622 = vector.extract_strided_slice %619 {offsets = [0, 0], sizes = [2, 32], strides = [1, 1]} : vector<2x96xf32> to vector<2x32xf32>
    %623 = vector.extract_strided_slice %619 {offsets = [0, 32], sizes = [2, 32], strides = [1, 1]} : vector<2x96xf32> to vector<2x32xf32>
    %624 = vector.extract_strided_slice %619 {offsets = [0, 64], sizes = [2, 32], strides = [1, 1]} : vector<2x96xf32> to vector<2x32xf32>
    %625 = arith.mulf %623, %573 : vector<2x32xf32>
    %626 = arith.mulf %622, %621 : vector<2x32xf32>
    %627 = arith.addf %625, %626 : vector<2x32xf32>
    %628 = math.tanh %627 : vector<2x32xf32>
    %629 = arith.mulf %624, %628 : vector<2x32xf32>
    %630 = arith.truncf %629 : vector<2x32xf32> to vector<2x32xbf16>
    %cst_106 = arith.constant dense<0.000000e+00> : vector<2x256xf32>
    %631 = tpu.matmul %630, %3, %cst_106 {dimension_numbers = #tpu.dot_dimension_numbers<[1], [0], [0], [1], [0, 0, 1, 1], [], []>} : vector<2x32xbf16>, vector<32x256xbf16>, vector<2x256xf32> -> vector<2x256xf32>
    %632 = vector.extract_strided_slice %631 {offsets = [0, 128], sizes = [2, 128], strides = [1, 1]} : vector<2x256xf32> to vector<2x128xf32>
    %633 = vector.extract_strided_slice %631 {offsets = [0, 0], sizes = [2, 128], strides = [1, 1]} : vector<2x256xf32> to vector<2x128xf32>
    %634 = arith.addf %6, %633 : vector<2x128xf32>
    %cst_107 = arith.constant dense<0.000000e+00> : vector<2x128xf32>
    %635 = tpu.matmul %599, %4, %cst_107 {dimension_numbers = #tpu.dot_dimension_numbers<[1], [0], [0], [1], [0, 0, 1, 1], [], []>} : vector<2x32xbf16>, vector<32x128xbf16>, vector<2x128xf32> -> vector<2x128xf32>
    %636 = arith.addf %634, %635 : vector<2x128xf32>
    %637 = vector.extract_strided_slice %636 {offsets = [0, 0], sizes = [2, 96], strides = [1, 1]} : vector<2x128xf32> to vector<2x96xf32>
    %638 = arith.negf %637 : vector<2x96xf32>
    %639 = math.exp %638 : vector<2x96xf32>
    %cst_108 = arith.constant 1.000000e+00 : f32
    %640 = vector.broadcast %cst_108 : f32 to vector<2x96xf32>
    %641 = arith.addf %640, %639 : vector<2x96xf32>
    %642 = arith.divf %640, %641 : vector<2x96xf32>
    %643 = vector.extract_strided_slice %636 {offsets = [0, 96], sizes = [2, 32], strides = [1, 1]} : vector<2x128xf32> to vector<2x32xf32>
    %644 = math.tanh %643 : vector<2x32xf32>
    %645 = vector.extract_strided_slice %642 {offsets = [0, 0], sizes = [2, 32], strides = [1, 1]} : vector<2x96xf32> to vector<2x32xf32>
    %646 = vector.extract_strided_slice %642 {offsets = [0, 32], sizes = [2, 32], strides = [1, 1]} : vector<2x96xf32> to vector<2x32xf32>
    %647 = vector.extract_strided_slice %642 {offsets = [0, 64], sizes = [2, 32], strides = [1, 1]} : vector<2x96xf32> to vector<2x32xf32>
    %648 = arith.mulf %646, %596 : vector<2x32xf32>
    %649 = arith.mulf %645, %644 : vector<2x32xf32>
    %650 = arith.addf %648, %649 : vector<2x32xf32>
    %651 = math.tanh %650 : vector<2x32xf32>
    %652 = arith.mulf %647, %651 : vector<2x32xf32>
    %653 = arith.truncf %652 : vector<2x32xf32> to vector<2x32xbf16>
    %cst_109 = arith.constant dense<0.000000e+00> : vector<2x132xf32>
    %654 = tpu.matmul %653, %5, %cst_109 {dimension_numbers = #tpu.dot_dimension_numbers<[1], [0], [0], [1], [0, 0, 1, 1], [], []>} : vector<2x32xbf16>, vector<32x132xbf16>, vector<2x132xf32> -> vector<2x132xf32>
    %655 = vector.extract_strided_slice %654 {offsets = [0, 128], sizes = [2, 4], strides = [1, 1]} : vector<2x132xf32> to vector<2x4xf32>
    %656 = arith.addf %655, %7 : vector<2x4xf32>
    %657 = vector.extract_strided_slice %654 {offsets = [0, 0], sizes = [2, 128], strides = [1, 1]} : vector<2x132xf32> to vector<2x128xf32>
    %658 = arith.addf %605, %657 : vector<2x128xf32>
    %659 = arith.addf %658, %8 : vector<2x128xf32>
    %cst_110 = arith.constant 0.00999999977 : f32
    %660 = vector.broadcast %cst_110 : f32 to vector<2x4xf32>
    %661 = arith.mulf %656, %660 : vector<2x4xf32>
    %662 = arith.addf %608, %661 : vector<2x4xf32>
    %663 = tpu.concatenate %662, %656 in 1 : vector<2x4xf32>, vector<2x4xf32> -> vector<2x8xf32>
    %c0_111 = arith.constant 0 : index
    %c0_112 = arith.constant 0 : index
    %c88 = arith.constant 88 : index
    %664 = vector.load %arg9[%c0_111, %c0_112, %c88] : memref<1x2x128xf32, #tpu.memory_space<vmem>>, vector<1x2x8xf32>
    %665 = vector.shape_cast %664 : vector<1x2x8xf32> to vector<2x8xf32>
    %666 = vector.shape_cast %663 : vector<2x8xf32> to vector<1x2x8xf32>
    tpu.vector_store %arg9[%c0_111, %c0_112, %c88], %666 {strides = array<i32>} : memref<1x2x128xf32, #tpu.memory_space<vmem>>, vector<1x2x8xf32>,
    %667 = arith.addf %659, %632 : vector<2x128xf32>
    %668 = vector.extract_strided_slice %667 {offsets = [0, 0], sizes = [2, 96], strides = [1, 1]} : vector<2x128xf32> to vector<2x96xf32>
    %669 = arith.negf %668 : vector<2x96xf32>
    %670 = math.exp %669 : vector<2x96xf32>
    %cst_113 = arith.constant 1.000000e+00 : f32
    %671 = vector.broadcast %cst_113 : f32 to vector<2x96xf32>
    %672 = arith.addf %671, %670 : vector<2x96xf32>
    %673 = arith.divf %671, %672 : vector<2x96xf32>
    %674 = vector.extract_strided_slice %667 {offsets = [0, 96], sizes = [2, 32], strides = [1, 1]} : vector<2x128xf32> to vector<2x32xf32>
    %675 = math.tanh %674 : vector<2x32xf32>
    %676 = vector.extract_strided_slice %673 {offsets = [0, 0], sizes = [2, 32], strides = [1, 1]} : vector<2x96xf32> to vector<2x32xf32>
    %677 = vector.extract_strided_slice %673 {offsets = [0, 32], sizes = [2, 32], strides = [1, 1]} : vector<2x96xf32> to vector<2x32xf32>
    %678 = vector.extract_strided_slice %673 {offsets = [0, 64], sizes = [2, 32], strides = [1, 1]} : vector<2x96xf32> to vector<2x32xf32>
    %679 = arith.mulf %677, %627 : vector<2x32xf32>
    %680 = arith.mulf %676, %675 : vector<2x32xf32>
    %681 = arith.addf %679, %680 : vector<2x32xf32>
    %682 = math.tanh %681 : vector<2x32xf32>
    %683 = arith.mulf %678, %682 : vector<2x32xf32>
    %684 = arith.truncf %683 : vector<2x32xf32> to vector<2x32xbf16>
    %cst_114 = arith.constant dense<0.000000e+00> : vector<2x256xf32>
    %685 = tpu.matmul %684, %3, %cst_114 {dimension_numbers = #tpu.dot_dimension_numbers<[1], [0], [0], [1], [0, 0, 1, 1], [], []>} : vector<2x32xbf16>, vector<32x256xbf16>, vector<2x256xf32> -> vector<2x256xf32>
    %686 = vector.extract_strided_slice %685 {offsets = [0, 128], sizes = [2, 128], strides = [1, 1]} : vector<2x256xf32> to vector<2x128xf32>
    %687 = vector.extract_strided_slice %685 {offsets = [0, 0], sizes = [2, 128], strides = [1, 1]} : vector<2x256xf32> to vector<2x128xf32>
    %688 = arith.addf %6, %687 : vector<2x128xf32>
    %cst_115 = arith.constant dense<0.000000e+00> : vector<2x128xf32>
    %689 = tpu.matmul %653, %4, %cst_115 {dimension_numbers = #tpu.dot_dimension_numbers<[1], [0], [0], [1], [0, 0, 1, 1], [], []>} : vector<2x32xbf16>, vector<32x128xbf16>, vector<2x128xf32> -> vector<2x128xf32>
    %690 = arith.addf %688, %689 : vector<2x128xf32>
    %691 = vector.extract_strided_slice %690 {offsets = [0, 0], sizes = [2, 96], strides = [1, 1]} : vector<2x128xf32> to vector<2x96xf32>
    %692 = arith.negf %691 : vector<2x96xf32>
    %693 = math.exp %692 : vector<2x96xf32>
    %cst_116 = arith.constant 1.000000e+00 : f32
    %694 = vector.broadcast %cst_116 : f32 to vector<2x96xf32>
    %695 = arith.addf %694, %693 : vector<2x96xf32>
    %696 = arith.divf %694, %695 : vector<2x96xf32>
    %697 = vector.extract_strided_slice %690 {offsets = [0, 96], sizes = [2, 32], strides = [1, 1]} : vector<2x128xf32> to vector<2x32xf32>
    %698 = math.tanh %697 : vector<2x32xf32>
    %699 = vector.extract_strided_slice %696 {offsets = [0, 0], sizes = [2, 32], strides = [1, 1]} : vector<2x96xf32> to vector<2x32xf32>
    %700 = vector.extract_strided_slice %696 {offsets = [0, 32], sizes = [2, 32], strides = [1, 1]} : vector<2x96xf32> to vector<2x32xf32>
    %701 = vector.extract_strided_slice %696 {offsets = [0, 64], sizes = [2, 32], strides = [1, 1]} : vector<2x96xf32> to vector<2x32xf32>
    %702 = arith.mulf %700, %650 : vector<2x32xf32>
    %703 = arith.mulf %699, %698 : vector<2x32xf32>
    %704 = arith.addf %702, %703 : vector<2x32xf32>
    %705 = math.tanh %704 : vector<2x32xf32>
    %706 = arith.mulf %701, %705 : vector<2x32xf32>
    %707 = arith.truncf %706 : vector<2x32xf32> to vector<2x32xbf16>
    %cst_117 = arith.constant dense<0.000000e+00> : vector<2x132xf32>
    %708 = tpu.matmul %707, %5, %cst_117 {dimension_numbers = #tpu.dot_dimension_numbers<[1], [0], [0], [1], [0, 0, 1, 1], [], []>} : vector<2x32xbf16>, vector<32x132xbf16>, vector<2x132xf32> -> vector<2x132xf32>
    %709 = vector.extract_strided_slice %708 {offsets = [0, 128], sizes = [2, 4], strides = [1, 1]} : vector<2x132xf32> to vector<2x4xf32>
    %710 = arith.addf %709, %7 : vector<2x4xf32>
    %711 = vector.extract_strided_slice %708 {offsets = [0, 0], sizes = [2, 128], strides = [1, 1]} : vector<2x132xf32> to vector<2x128xf32>
    %712 = arith.addf %659, %711 : vector<2x128xf32>
    %713 = arith.addf %712, %8 : vector<2x128xf32>
    %cst_118 = arith.constant 0.00999999977 : f32
    %714 = vector.broadcast %cst_118 : f32 to vector<2x4xf32>
    %715 = arith.mulf %710, %714 : vector<2x4xf32>
    %716 = arith.addf %662, %715 : vector<2x4xf32>
    %717 = tpu.concatenate %716, %710 in 1 : vector<2x4xf32>, vector<2x4xf32> -> vector<2x8xf32>
    %c0_119 = arith.constant 0 : index
    %c0_120 = arith.constant 0 : index
    %c96 = arith.constant 96 : index
    %718 = vector.load %arg9[%c0_119, %c0_120, %c96] : memref<1x2x128xf32, #tpu.memory_space<vmem>>, vector<1x2x8xf32>
    %719 = vector.shape_cast %718 : vector<1x2x8xf32> to vector<2x8xf32>
    %720 = vector.shape_cast %717 : vector<2x8xf32> to vector<1x2x8xf32>
    tpu.vector_store %arg9[%c0_119, %c0_120, %c96], %720 {strides = array<i32>} : memref<1x2x128xf32, #tpu.memory_space<vmem>>, vector<1x2x8xf32>,
    %721 = arith.addf %713, %686 : vector<2x128xf32>
    %722 = vector.extract_strided_slice %721 {offsets = [0, 0], sizes = [2, 96], strides = [1, 1]} : vector<2x128xf32> to vector<2x96xf32>
    %723 = arith.negf %722 : vector<2x96xf32>
    %724 = math.exp %723 : vector<2x96xf32>
    %cst_121 = arith.constant 1.000000e+00 : f32
    %725 = vector.broadcast %cst_121 : f32 to vector<2x96xf32>
    %726 = arith.addf %725, %724 : vector<2x96xf32>
    %727 = arith.divf %725, %726 : vector<2x96xf32>
    %728 = vector.extract_strided_slice %721 {offsets = [0, 96], sizes = [2, 32], strides = [1, 1]} : vector<2x128xf32> to vector<2x32xf32>
    %729 = math.tanh %728 : vector<2x32xf32>
    %730 = vector.extract_strided_slice %727 {offsets = [0, 0], sizes = [2, 32], strides = [1, 1]} : vector<2x96xf32> to vector<2x32xf32>
    %731 = vector.extract_strided_slice %727 {offsets = [0, 32], sizes = [2, 32], strides = [1, 1]} : vector<2x96xf32> to vector<2x32xf32>
    %732 = vector.extract_strided_slice %727 {offsets = [0, 64], sizes = [2, 32], strides = [1, 1]} : vector<2x96xf32> to vector<2x32xf32>
    %733 = arith.mulf %731, %681 : vector<2x32xf32>
    %734 = arith.mulf %730, %729 : vector<2x32xf32>
    %735 = arith.addf %733, %734 : vector<2x32xf32>
    %736 = math.tanh %735 : vector<2x32xf32>
    %737 = arith.mulf %732, %736 : vector<2x32xf32>
    %738 = arith.truncf %737 : vector<2x32xf32> to vector<2x32xbf16>
    %cst_122 = arith.constant dense<0.000000e+00> : vector<2x256xf32>
    %739 = tpu.matmul %738, %3, %cst_122 {dimension_numbers = #tpu.dot_dimension_numbers<[1], [0], [0], [1], [0, 0, 1, 1], [], []>} : vector<2x32xbf16>, vector<32x256xbf16>, vector<2x256xf32> -> vector<2x256xf32>
    %740 = vector.extract_strided_slice %739 {offsets = [0, 128], sizes = [2, 128], strides = [1, 1]} : vector<2x256xf32> to vector<2x128xf32>
    %741 = vector.extract_strided_slice %739 {offsets = [0, 0], sizes = [2, 128], strides = [1, 1]} : vector<2x256xf32> to vector<2x128xf32>
    %742 = arith.addf %6, %741 : vector<2x128xf32>
    %cst_123 = arith.constant dense<0.000000e+00> : vector<2x128xf32>
    %743 = tpu.matmul %707, %4, %cst_123 {dimension_numbers = #tpu.dot_dimension_numbers<[1], [0], [0], [1], [0, 0, 1, 1], [], []>} : vector<2x32xbf16>, vector<32x128xbf16>, vector<2x128xf32> -> vector<2x128xf32>
    %744 = arith.addf %742, %743 : vector<2x128xf32>
    %745 = vector.extract_strided_slice %744 {offsets = [0, 0], sizes = [2, 96], strides = [1, 1]} : vector<2x128xf32> to vector<2x96xf32>
    %746 = arith.negf %745 : vector<2x96xf32>
    %747 = math.exp %746 : vector<2x96xf32>
    %cst_124 = arith.constant 1.000000e+00 : f32
    %748 = vector.broadcast %cst_124 : f32 to vector<2x96xf32>
    %749 = arith.addf %748, %747 : vector<2x96xf32>
    %750 = arith.divf %748, %749 : vector<2x96xf32>
    %751 = vector.extract_strided_slice %744 {offsets = [0, 96], sizes = [2, 32], strides = [1, 1]} : vector<2x128xf32> to vector<2x32xf32>
    %752 = math.tanh %751 : vector<2x32xf32>
    %753 = vector.extract_strided_slice %750 {offsets = [0, 0], sizes = [2, 32], strides = [1, 1]} : vector<2x96xf32> to vector<2x32xf32>
    %754 = vector.extract_strided_slice %750 {offsets = [0, 32], sizes = [2, 32], strides = [1, 1]} : vector<2x96xf32> to vector<2x32xf32>
    %755 = vector.extract_strided_slice %750 {offsets = [0, 64], sizes = [2, 32], strides = [1, 1]} : vector<2x96xf32> to vector<2x32xf32>
    %756 = arith.mulf %754, %704 : vector<2x32xf32>
    %757 = arith.mulf %753, %752 : vector<2x32xf32>
    %758 = arith.addf %756, %757 : vector<2x32xf32>
    %759 = math.tanh %758 : vector<2x32xf32>
    %760 = arith.mulf %755, %759 : vector<2x32xf32>
    %761 = arith.truncf %760 : vector<2x32xf32> to vector<2x32xbf16>
    %cst_125 = arith.constant dense<0.000000e+00> : vector<2x132xf32>
    %762 = tpu.matmul %761, %5, %cst_125 {dimension_numbers = #tpu.dot_dimension_numbers<[1], [0], [0], [1], [0, 0, 1, 1], [], []>} : vector<2x32xbf16>, vector<32x132xbf16>, vector<2x132xf32> -> vector<2x132xf32>
    %763 = vector.extract_strided_slice %762 {offsets = [0, 128], sizes = [2, 4], strides = [1, 1]} : vector<2x132xf32> to vector<2x4xf32>
    %764 = arith.addf %763, %7 : vector<2x4xf32>
    %765 = vector.extract_strided_slice %762 {offsets = [0, 0], sizes = [2, 128], strides = [1, 1]} : vector<2x132xf32> to vector<2x128xf32>
    %766 = arith.addf %713, %765 : vector<2x128xf32>
    %767 = arith.addf %766, %8 : vector<2x128xf32>
    %cst_126 = arith.constant 0.00999999977 : f32
    %768 = vector.broadcast %cst_126 : f32 to vector<2x4xf32>
    %769 = arith.mulf %764, %768 : vector<2x4xf32>
    %770 = arith.addf %716, %769 : vector<2x4xf32>
    %771 = tpu.concatenate %770, %764 in 1 : vector<2x4xf32>, vector<2x4xf32> -> vector<2x8xf32>
    %c0_127 = arith.constant 0 : index
    %c0_128 = arith.constant 0 : index
    %c104 = arith.constant 104 : index
    %772 = vector.load %arg9[%c0_127, %c0_128, %c104] : memref<1x2x128xf32, #tpu.memory_space<vmem>>, vector<1x2x8xf32>
    %773 = vector.shape_cast %772 : vector<1x2x8xf32> to vector<2x8xf32>
    %774 = vector.shape_cast %771 : vector<2x8xf32> to vector<1x2x8xf32>
    tpu.vector_store %arg9[%c0_127, %c0_128, %c104], %774 {strides = array<i32>} : memref<1x2x128xf32, #tpu.memory_space<vmem>>, vector<1x2x8xf32>,
    %775 = arith.addf %767, %740 : vector<2x128xf32>
    %776 = vector.extract_strided_slice %775 {offsets = [0, 0], sizes = [2, 96], strides = [1, 1]} : vector<2x128xf32> to vector<2x96xf32>
    %777 = arith.negf %776 : vector<2x96xf32>
    %778 = math.exp %777 : vector<2x96xf32>
    %cst_129 = arith.constant 1.000000e+00 : f32
    %779 = vector.broadcast %cst_129 : f32 to vector<2x96xf32>
    %780 = arith.addf %779, %778 : vector<2x96xf32>
    %781 = arith.divf %779, %780 : vector<2x96xf32>
    %782 = vector.extract_strided_slice %775 {offsets = [0, 96], sizes = [2, 32], strides = [1, 1]} : vector<2x128xf32> to vector<2x32xf32>
    %783 = math.tanh %782 : vector<2x32xf32>
    %784 = vector.extract_strided_slice %781 {offsets = [0, 0], sizes = [2, 32], strides = [1, 1]} : vector<2x96xf32> to vector<2x32xf32>
    %785 = vector.extract_strided_slice %781 {offsets = [0, 32], sizes = [2, 32], strides = [1, 1]} : vector<2x96xf32> to vector<2x32xf32>
    %786 = vector.extract_strided_slice %781 {offsets = [0, 64], sizes = [2, 32], strides = [1, 1]} : vector<2x96xf32> to vector<2x32xf32>
    %787 = arith.mulf %785, %735 : vector<2x32xf32>
    %788 = arith.mulf %784, %783 : vector<2x32xf32>
    %789 = arith.addf %787, %788 : vector<2x32xf32>
    %790 = math.tanh %789 : vector<2x32xf32>
    %791 = arith.mulf %786, %790 : vector<2x32xf32>
    %792 = arith.truncf %791 : vector<2x32xf32> to vector<2x32xbf16>
    %cst_130 = arith.constant dense<0.000000e+00> : vector<2x256xf32>
    %793 = tpu.matmul %792, %3, %cst_130 {dimension_numbers = #tpu.dot_dimension_numbers<[1], [0], [0], [1], [0, 0, 1, 1], [], []>} : vector<2x32xbf16>, vector<32x256xbf16>, vector<2x256xf32> -> vector<2x256xf32>
    %794 = vector.extract_strided_slice %793 {offsets = [0, 128], sizes = [2, 128], strides = [1, 1]} : vector<2x256xf32> to vector<2x128xf32>
    %795 = vector.extract_strided_slice %793 {offsets = [0, 0], sizes = [2, 128], strides = [1, 1]} : vector<2x256xf32> to vector<2x128xf32>
    %796 = arith.addf %6, %795 : vector<2x128xf32>
    %cst_131 = arith.constant dense<0.000000e+00> : vector<2x128xf32>
    %797 = tpu.matmul %761, %4, %cst_131 {dimension_numbers = #tpu.dot_dimension_numbers<[1], [0], [0], [1], [0, 0, 1, 1], [], []>} : vector<2x32xbf16>, vector<32x128xbf16>, vector<2x128xf32> -> vector<2x128xf32>
    %798 = arith.addf %796, %797 : vector<2x128xf32>
    %799 = vector.extract_strided_slice %798 {offsets = [0, 0], sizes = [2, 96], strides = [1, 1]} : vector<2x128xf32> to vector<2x96xf32>
    %800 = arith.negf %799 : vector<2x96xf32>
    %801 = math.exp %800 : vector<2x96xf32>
    %cst_132 = arith.constant 1.000000e+00 : f32
    %802 = vector.broadcast %cst_132 : f32 to vector<2x96xf32>
    %803 = arith.addf %802, %801 : vector<2x96xf32>
    %804 = arith.divf %802, %803 : vector<2x96xf32>
    %805 = vector.extract_strided_slice %798 {offsets = [0, 96], sizes = [2, 32], strides = [1, 1]} : vector<2x128xf32> to vector<2x32xf32>
    %806 = math.tanh %805 : vector<2x32xf32>
    %807 = vector.extract_strided_slice %804 {offsets = [0, 0], sizes = [2, 32], strides = [1, 1]} : vector<2x96xf32> to vector<2x32xf32>
    %808 = vector.extract_strided_slice %804 {offsets = [0, 32], sizes = [2, 32], strides = [1, 1]} : vector<2x96xf32> to vector<2x32xf32>
    %809 = vector.extract_strided_slice %804 {offsets = [0, 64], sizes = [2, 32], strides = [1, 1]} : vector<2x96xf32> to vector<2x32xf32>
    %810 = arith.mulf %808, %758 : vector<2x32xf32>
    %811 = arith.mulf %807, %806 : vector<2x32xf32>
    %812 = arith.addf %810, %811 : vector<2x32xf32>
    %813 = math.tanh %812 : vector<2x32xf32>
    %814 = arith.mulf %809, %813 : vector<2x32xf32>
    %815 = arith.truncf %814 : vector<2x32xf32> to vector<2x32xbf16>
    %cst_133 = arith.constant dense<0.000000e+00> : vector<2x132xf32>
    %816 = tpu.matmul %815, %5, %cst_133 {dimension_numbers = #tpu.dot_dimension_numbers<[1], [0], [0], [1], [0, 0, 1, 1], [], []>} : vector<2x32xbf16>, vector<32x132xbf16>, vector<2x132xf32> -> vector<2x132xf32>
    %817 = vector.extract_strided_slice %816 {offsets = [0, 128], sizes = [2, 4], strides = [1, 1]} : vector<2x132xf32> to vector<2x4xf32>
    %818 = arith.addf %817, %7 : vector<2x4xf32>
    %819 = vector.extract_strided_slice %816 {offsets = [0, 0], sizes = [2, 128], strides = [1, 1]} : vector<2x132xf32> to vector<2x128xf32>
    %820 = arith.addf %767, %819 : vector<2x128xf32>
    %821 = arith.addf %820, %8 : vector<2x128xf32>
    %cst_134 = arith.constant 0.00999999977 : f32
    %822 = vector.broadcast %cst_134 : f32 to vector<2x4xf32>
    %823 = arith.mulf %818, %822 : vector<2x4xf32>
    %824 = arith.addf %770, %823 : vector<2x4xf32>
    %825 = tpu.concatenate %824, %818 in 1 : vector<2x4xf32>, vector<2x4xf32> -> vector<2x8xf32>
    %c0_135 = arith.constant 0 : index
    %c0_136 = arith.constant 0 : index
    %c112 = arith.constant 112 : index
    %826 = vector.load %arg9[%c0_135, %c0_136, %c112] : memref<1x2x128xf32, #tpu.memory_space<vmem>>, vector<1x2x8xf32>
    %827 = vector.shape_cast %826 : vector<1x2x8xf32> to vector<2x8xf32>
    %828 = vector.shape_cast %825 : vector<2x8xf32> to vector<1x2x8xf32>
    tpu.vector_store %arg9[%c0_135, %c0_136, %c112], %828 {strides = array<i32>} : memref<1x2x128xf32, #tpu.memory_space<vmem>>, vector<1x2x8xf32>,
    %829 = arith.addf %821, %794 : vector<2x128xf32>
    %830 = vector.extract_strided_slice %829 {offsets = [0, 0], sizes = [2, 96], strides = [1, 1]} : vector<2x128xf32> to vector<2x96xf32>
    %831 = arith.negf %830 : vector<2x96xf32>
    %832 = math.exp %831 : vector<2x96xf32>
    %cst_137 = arith.constant 1.000000e+00 : f32
    %833 = vector.broadcast %cst_137 : f32 to vector<2x96xf32>
    %834 = arith.addf %833, %832 : vector<2x96xf32>
    %835 = arith.divf %833, %834 : vector<2x96xf32>
    %836 = vector.extract_strided_slice %829 {offsets = [0, 96], sizes = [2, 32], strides = [1, 1]} : vector<2x128xf32> to vector<2x32xf32>
    %837 = math.tanh %836 : vector<2x32xf32>
    %838 = vector.extract_strided_slice %835 {offsets = [0, 0], sizes = [2, 32], strides = [1, 1]} : vector<2x96xf32> to vector<2x32xf32>
    %839 = vector.extract_strided_slice %835 {offsets = [0, 32], sizes = [2, 32], strides = [1, 1]} : vector<2x96xf32> to vector<2x32xf32>
    %840 = vector.extract_strided_slice %835 {offsets = [0, 64], sizes = [2, 32], strides = [1, 1]} : vector<2x96xf32> to vector<2x32xf32>
    %841 = arith.mulf %839, %789 : vector<2x32xf32>
    %842 = arith.mulf %838, %837 : vector<2x32xf32>
    %843 = arith.addf %841, %842 : vector<2x32xf32>
    %844 = math.tanh %843 : vector<2x32xf32>
    %845 = arith.mulf %840, %844 : vector<2x32xf32>
    %846 = arith.truncf %845 : vector<2x32xf32> to vector<2x32xbf16>
    %cst_138 = arith.constant dense<0.000000e+00> : vector<2x256xf32>
    %847 = tpu.matmul %846, %3, %cst_138 {dimension_numbers = #tpu.dot_dimension_numbers<[1], [0], [0], [1], [0, 0, 1, 1], [], []>} : vector<2x32xbf16>, vector<32x256xbf16>, vector<2x256xf32> -> vector<2x256xf32>
    %848 = vector.extract_strided_slice %847 {offsets = [0, 0], sizes = [2, 128], strides = [1, 1]} : vector<2x256xf32> to vector<2x128xf32>
    %849 = arith.addf %6, %848 : vector<2x128xf32>
    %cst_139 = arith.constant dense<0.000000e+00> : vector<2x128xf32>
    %850 = tpu.matmul %815, %4, %cst_139 {dimension_numbers = #tpu.dot_dimension_numbers<[1], [0], [0], [1], [0, 0, 1, 1], [], []>} : vector<2x32xbf16>, vector<32x128xbf16>, vector<2x128xf32> -> vector<2x128xf32>
    %851 = arith.addf %849, %850 : vector<2x128xf32>
    %852 = vector.extract_strided_slice %851 {offsets = [0, 0], sizes = [2, 96], strides = [1, 1]} : vector<2x128xf32> to vector<2x96xf32>
    %853 = arith.negf %852 : vector<2x96xf32>
    %854 = math.exp %853 : vector<2x96xf32>
    %cst_140 = arith.constant 1.000000e+00 : f32
    %855 = vector.broadcast %cst_140 : f32 to vector<2x96xf32>
    %856 = arith.addf %855, %854 : vector<2x96xf32>
    %857 = arith.divf %855, %856 : vector<2x96xf32>
    %858 = vector.extract_strided_slice %851 {offsets = [0, 96], sizes = [2, 32], strides = [1, 1]} : vector<2x128xf32> to vector<2x32xf32>
    %859 = math.tanh %858 : vector<2x32xf32>
    %860 = vector.extract_strided_slice %857 {offsets = [0, 0], sizes = [2, 32], strides = [1, 1]} : vector<2x96xf32> to vector<2x32xf32>
    %861 = vector.extract_strided_slice %857 {offsets = [0, 32], sizes = [2, 32], strides = [1, 1]} : vector<2x96xf32> to vector<2x32xf32>
    %862 = vector.extract_strided_slice %857 {offsets = [0, 64], sizes = [2, 32], strides = [1, 1]} : vector<2x96xf32> to vector<2x32xf32>
    %863 = arith.mulf %861, %812 : vector<2x32xf32>
    %864 = arith.mulf %860, %859 : vector<2x32xf32>
    %865 = arith.addf %863, %864 : vector<2x32xf32>
    %866 = math.tanh %865 : vector<2x32xf32>
    %867 = arith.mulf %862, %866 : vector<2x32xf32>
    %868 = arith.truncf %867 : vector<2x32xf32> to vector<2x32xbf16>
    %cst_141 = arith.constant dense<0.000000e+00> : vector<2x132xf32>
    %869 = tpu.matmul %868, %5, %cst_141 {dimension_numbers = #tpu.dot_dimension_numbers<[1], [0], [0], [1], [0, 0, 1, 1], [], []>} : vector<2x32xbf16>, vector<32x132xbf16>, vector<2x132xf32> -> vector<2x132xf32>
    %870 = vector.extract_strided_slice %869 {offsets = [0, 128], sizes = [2, 4], strides = [1, 1]} : vector<2x132xf32> to vector<2x4xf32>
    %871 = arith.addf %870, %7 : vector<2x4xf32>
    %872 = vector.extract_strided_slice %869 {offsets = [0, 0], sizes = [2, 128], strides = [1, 1]} : vector<2x132xf32> to vector<2x128xf32>
    %873 = arith.addf %821, %872 : vector<2x128xf32>
    %874 = arith.addf %873, %8 : vector<2x128xf32>
    %cst_142 = arith.constant 0.00999999977 : f32
    %875 = vector.broadcast %cst_142 : f32 to vector<2x4xf32>
    %876 = arith.mulf %871, %875 : vector<2x4xf32>
    %877 = arith.addf %824, %876 : vector<2x4xf32>
    %878 = tpu.concatenate %877, %871 in 1 : vector<2x4xf32>, vector<2x4xf32> -> vector<2x8xf32>
    %c0_143 = arith.constant 0 : index
    %c0_144 = arith.constant 0 : index
    %c120 = arith.constant 120 : index
    %879 = vector.load %arg9[%c0_143, %c0_144, %c120] : memref<1x2x128xf32, #tpu.memory_space<vmem>>, vector<1x2x8xf32>
    %880 = vector.shape_cast %879 : vector<1x2x8xf32> to vector<2x8xf32>
    %881 = vector.shape_cast %878 : vector<2x8xf32> to vector<1x2x8xf32>
    tpu.vector_store %arg9[%c0_143, %c0_144, %c120], %881 {strides = array<i32>} : memref<1x2x128xf32, #tpu.memory_space<vmem>>, vector<1x2x8xf32>,
    %882 = tpu.concatenate %874, %843, %865, %877 in 1 : vector<2x128xf32>, vector<2x32xf32>, vector<2x32xf32>, vector<2x4xf32> -> vector<2x196xf32>
    %c0_145 = arith.constant 0 : index
    %c0_146 = arith.constant 0 : index
    %883 = vector.load %arg10[%c0_145, %c0_146] : memref<2x196xf32, #tpu.memory_space<vmem>>, vector<2x196xf32>
    tpu.vector_store %arg10[%c0_145, %c0_146], %882 {strides = array<i32>} : memref<2x196xf32, #tpu.memory_space<vmem>>, vector<2x196xf32>,
    %884 = tpu.concatenate %846, %868 in 1 : vector<2x32xbf16>, vector<2x32xbf16> -> vector<2x64xbf16>
    %c0_147 = arith.constant 0 : index
    %c0_148 = arith.constant 0 : index
    %885 = vector.load %arg11[%c0_147, %c0_148] : memref<2x64xbf16, #tpu.memory_space<vmem>>, vector<2x64xbf16>
    tpu.vector_store %arg11[%c0_147, %c0_148], %884 {strides = array<i32>} : memref<2x64xbf16, #tpu.memory_space<vmem>>, vector<2x64xbf16>,
    return
  }
  func.func @transform_0(%arg0: i32) -> (i32, i32) {
    %c0_i32 = arith.constant 0 : i32
    %c0_i32_0 = arith.constant 0 : i32
    %c0_i32_1 = arith.constant 0 : i32
    return %c0_i32, %c0_i32_0 : i32, i32
  }
  func.func @transform_1(%arg0: i32) -> (i32, i32) {
    %c0_i32 = arith.constant 0 : i32
    %c0_i32_0 = arith.constant 0 : i32
    %c0_i32_1 = arith.constant 0 : i32
    return %c0_i32, %c0_i32_0 : i32, i32
  }
  func.func @transform_2(%arg0: i32) -> (i32, i32) {
    %c0_i32 = arith.constant 0 : i32
    %c0_i32_0 = arith.constant 0 : i32
    %c0_i32_1 = arith.constant 0 : i32
    return %c0_i32, %c0_i32_0 : i32, i32
  }
  func.func @transform_3(%arg0: i32) -> (i32, i32) {
    %c0_i32 = arith.constant 0 : i32
    %c0_i32_0 = arith.constant 0 : i32
    %c0_i32_1 = arith.constant 0 : i32
    return %c0_i32, %c0_i32_0 : i32, i32
  }
  func.func @transform_4(%arg0: i32) -> (i32, i32) {
    %c0_i32 = arith.constant 0 : i32
    %c0_i32_0 = arith.constant 0 : i32
    %c0_i32_1 = arith.constant 0 : i32
    return %c0_i32, %c0_i32_0 : i32, i32
  }
  func.func @transform_5(%arg0: i32) -> (i32, i32) {
    %c0_i32 = arith.constant 0 : i32
    %c0_i32_0 = arith.constant 0 : i32
    %c0_i32_1 = arith.constant 0 : i32
    return %c0_i32, %c0_i32_0 : i32, i32
  }
  func.func @transform_6(%arg0: i32) -> (i32, i32) {
    %c0_i32 = arith.constant 0 : i32
    %c0_i32_0 = arith.constant 0 : i32
    %c0_i32_1 = arith.constant 0 : i32
    return %c0_i32, %c0_i32_0 : i32, i32
  }
  func.func @transform_7(%arg0: i32) -> (i32, i32) {
    %c0_i32 = arith.constant 0 : i32
    %c0_i32_0 = arith.constant 0 : i32
    %c0_i32_1 = arith.constant 0 : i32
    return %c0_i32, %c0_i32_0 : i32, i32
  }
  func.func @transform_8(%arg0: i32) -> (i32, i32, i32) {
    %c0_i32 = arith.constant 0 : i32
    %c0_i32_0 = arith.constant 0 : i32
    %c0_i32_1 = arith.constant 0 : i32
    return %arg0, %c0_i32, %c0_i32_0 : i32, i32, i32
  }
}

</mosaic_0001>

<bundles_post_ra>
// kernel: tpu_custom_call.1
= control target key start
LH: loop header
LB: loop body
LE: loop exit
PB: predicated region body
PF: predicated region fallthrough
CT: control target
= control target key end

     0   :  { %13 = vsyncpa [#allocation5], 0  ;;  %s5351_s0 = inlined_call_operand.hbm [shape: f32[2,4], index: 0, kind: input, shape index: {}]   ;;  %s5352_s1 = inlined_call_operand.vmem [shape: f32[2,128], index: 1, kind: input, shape index: {}]   ;;  %s5353_s2 = inlined_call_operand.hbm [shape: bf16[32,256], index: 2, kind: input, shape index: {}]   ;;  %s5354_s3 = inlined_call_operand.hbm [shape: bf16[32,128], index: 3, kind: input, shape index: {}]   ;;  %s5355_s4 = inlined_call_operand.hbm [shape: bf16[32,132], index: 4, kind: input, shape index: {}]   ;;  %s5356_s5 = inlined_call_operand.vmem [shape: f32[2,128], index: 5, kind: input, shape index: {}]   ;;  %s5357_s6 = inlined_call_operand.vmem [shape: f32[2,4], index: 6, kind: input, shape index: {}]   ;;  %s5358_s7 = inlined_call_operand.vmem [shape: f32[2,128], index: 7, kind: input, shape index: {}]   ;;  %s5359_s8 = inlined_call_operand.hbm [shape: f32[1,2,128], index: 8, kind: output, shape index: {}]  }
   0x1   :  { %14 = vsyncpa [#allocation8], 0 }
   0x2   :  { %15 = vsyncpa [#allocation11], 0 }
   0x3   :  { %16 = vsyncpa [#allocation6], 0  ;;  %s4285_s27 = smov [#allocation7]   ;;  %s4167_s9 = scalar_lea.hbm %s5353_s2, 512 }
   0x4   :  { %s34_s28 = sshll.u32 %s4285_s27, 4  ;;  %p4168_p0 = scmp.ne.s32.totalorder %s5353_s2, %s4167_s9  ;;  %s35_s28 = int_to_ptr.vmem [resolvable:$true] %s34_s28 }
   0x5   :  { %p4171_p1 = scmp.lt.u32.totalorder %s4167_s9, %s5353_s2 }
   0x7   :  { %p4173_p2 = pnand %p4171_p1, %p4168_p0 }
   0x9   :  { %4176 = shalt.err (!%p4173_p2)
}
   0xa   :  { %s4177_s14 = scalar_lea.vmem %s35_s28, 512  ;;  %p4182_p4 = scmp.lt.s32.totalorder %s35_s28, %s35_s28 }
   0xb   :  { %p4178_p3 = scmp.ne.s32.totalorder %s35_s28, %s4177_s14  ;;  %p4183_p5 = scmp.lt.s32.totalorder %s4177_s14, %s4177_s14 }
   0xd   :  { %p4184_p6 = por %p4183_p5, %p4182_p4 }
   0xf   :  { %p4185_p7 = pnand %p4184_p6, %p4178_p3 }
  0x11   :  { %4188 = shalt.err (!%p4185_p7)
}
  0x12   :  { %s4286_s15 = smov 128   ;;  %s4287_s16 = smov 8  }
  0x13   :  { %40 = dma.hbm_to_vmem [thread:$0]  %s5353_s2, 512, %s35_s28, [#allocation8], %s4286_s15, %s4286_s15, %s4287_s16  }
  0x14   :  { %s4288_s19 = smov [#allocation4]   ;;  %s4289_s21 = smov [#allocation9]  }
  0x15   :  { %s23_s20 = sshll.u32 %s4288_s19, 4  ;;  %s46_s22 = sshll.u32 %s4289_s21, 4  ;;  %s24_s20 = int_to_ptr.vmem [resolvable:$true] %s23_s20  ;;  %s47_s22 = int_to_ptr.vmem [resolvable:$true] %s46_s22 }
  0x16   :  { %s4189_s25 = scalar_lea.hbm %s5351_s0, 32 }
  0x17   :  { %p4190_p8 = scmp.ne.s32.totalorder %s5351_s0, %s4189_s25  ;;  %p4193_p9 = scmp.lt.u32.totalorder %s4189_s25, %s5351_s0 }
  0x19   :  { %p4195_p10 = pnand %p4193_p9, %p4190_p8 }
  0x1b   :  { %4198 = shalt.err (!%p4195_p10)
}
  0x1c   :  { %s4199_s2 = scalar_lea.vmem %s24_s20, 32  ;;  %p4204_p12 = scmp.lt.s32.totalorder %s24_s20, %s24_s20 }
  0x1d   :  { %p4200_p11 = scmp.ne.s32.totalorder %s24_s20, %s4199_s2  ;;  %p4205_p13 = scmp.lt.s32.totalorder %s4199_s2, %s4199_s2 }
  0x1f   :  { %p4206_p0 = por %p4205_p13, %p4204_p12 }
  0x21   :  { %p4207_p1 = pnand %p4206_p0, %p4200_p11 }
  0x23   :  { %4210 = shalt.err (!%p4207_p1)
}
  0x24   :  { %26 = dma.hbm_to_vmem [thread:$0]  %s5351_s0, 32, %s24_s20, [#allocation5]  }
  0x25   :  { %s4211_s12 = scalar_lea.hbm %s5354_s3, 256 }
  0x26   :  { %p4212_p2 = scmp.ne.s32.totalorder %s5354_s3, %s4211_s12  ;;  %p4215_p3 = scmp.lt.u32.totalorder %s4211_s12, %s5354_s3 }
  0x28   :  { %p4217_p4 = pnand %p4215_p3, %p4212_p2 }
  0x2a   :  { %4220 = shalt.err (!%p4217_p4)
}
  0x2b   :  { %s4221_s19 = scalar_lea.vmem %s47_s22, 256  ;;  %p4226_p6 = scmp.lt.s32.totalorder %s47_s22, %s47_s22 }
  0x2c   :  { %p4222_p5 = scmp.ne.s32.totalorder %s47_s22, %s4221_s19  ;;  %p4227_p7 = scmp.lt.s32.totalorder %s4221_s19, %s4221_s19 }
  0x2e   :  { %p4228_p8 = por %p4227_p7, %p4226_p6 }
  0x30   :  { %p4229_p9 = pnand %p4228_p8, %p4222_p5 }
  0x32   :  { %4232 = shalt.err (!%p4229_p9)
}
  0x33   :  { %s4290_s0 = smov 64   ;;  %s4291_s20 = smov 4  }
  0x34   :  { %52 = dma.hbm_to_vmem [thread:$0]  %s5354_s3, 256, %s47_s22, [#allocation8], %s4290_s0, %s4290_s0, %s4291_s20  }
  0x35   :  { %s4292_s24 = smov [#allocation10]   ;;  %s4233_s29 = scalar_lea.hbm %s5355_s4, 512 }
  0x36   :  { %s58_s25 = sshll.u32 %s4292_s24, 4  ;;  %p4234_p10 = scmp.ne.s32.totalorder %s5355_s4, %s4233_s29  ;;  %s59_s25 = int_to_ptr.vmem [resolvable:$true] %s58_s25 }
  0x37   :  { %p4237_p11 = scmp.lt.u32.totalorder %s4233_s29, %s5355_s4 }
  0x39   :  { %p4239_p12 = pnand %p4237_p11, %p4234_p10 }
  0x3b   :  { %4242 = shalt.err (!%p4239_p12)
}
  0x3c   :  { %s4243_s10 = scalar_lea.vmem %s59_s25, 512  ;;  %p4248_p0 = scmp.lt.s32.totalorder %s59_s25, %s59_s25 }
  0x3d   :  { %p4244_p13 = scmp.ne.s32.totalorder %s59_s25, %s4243_s10  ;;  %p4249_p1 = scmp.lt.s32.totalorder %s4243_s10, %s4243_s10 }
  0x3f   :  { %p4250_p2 = por %p4249_p1, %p4248_p0 }
  0x41   :  { %p4251_p3 = pnand %p4250_p2, %p4244_p13 }
  0x43   :  { %4254 = shalt.err (!%p4251_p3)
}
  0x44   :  { %64 = dma.hbm_to_vmem [thread:$0]  %s5355_s4, 512, %s59_s25, [#allocation11], %s4286_s15, %s4286_s15, %s4287_s16  }
  0x45   :  { %4277 = dma.done.wait [#allocation5], 32  }
  0x46   :  { %4278 = vsyncadd [#allocation5], 4294967264 }
  0x47   :  { %4279 = dma.done.wait [#allocation8], 768  }
  0x48   :  { %4280 = vsyncadd [#allocation8], 4294966528 }
  0x49   :  { %4281 = dma.done.wait [#allocation11], 512  }
  0x4a   :  { %4282 = vsyncadd [#allocation11], 4294966784  ;;  %vm111_vm0 = vcmask 516096   ;;  %v4293_v0 = vmov 0   ;;  %v4418_v1 = vld [vmem:[#allocation7 + $0x4] ss:$8 sps:$4 sm:$0xff]   ;;  %v102_v9 = vlaneseq }
  0x4b   :  { %186 = vmatprep.mubr.bf16.mxu0 %v4293_v0  ;;  %112 = vst.msk [vmem:[#allocation3] sm:$0x1] %vm111_vm0, %v4293_v0  ;;  %264 = vmatprep.mubr.bf16.mxu1 %v4293_v0  ;;  %v4420_v2 = vld [vmem:[#allocation7] ss:$8 sps:$4 sm:$0xff]   ;;  %v89_v3 = vld [vmem:[#allocation4] sm:$0x3] }
  0x4c   :  { %154 = vmatprep.subr.bf16.mxu0 %v4418_v1  ;;  %91 = vrot.lane.b32.xlu0 %v89_v3, %s4290_s0  ;;  %v4424_v4 = vld [vmem:[#allocation7 + $0x14] ss:$8 sps:$4 sm:$0xff]   ;;  %v4427_v5 = vld [vmem:[#allocation7 + $0x10] ss:$8 sps:$4 sm:$0xff]   ;;  %vm150_vm1 = vcmask 261120   ;;  %v103_v11 = vshrl.u32 %v102_v9, 7 }
  0x4d   :  { %155 = vmatpush1.bf16.msra.mxu0 %v4420_v2  ;;  %232 = vmatprep.subr.bf16.mxu1 %v4418_v1  ;;  %v4294_v7 = vmov 1983009808   ;;  %vm94_vm2 = vcmask 523264   ;;  %v88_v12 = vld [vmem:[%s5352_s1] sm:$0x3]  ;;  %vm107_vm3 = vcmask 1041408  }
  0x4e   :  { %156 = vmatprep.subr.bf16.mxu0 %v4424_v4  ;;  %233 = vmatpush1.bf16.msra.mxu1 %v4420_v2  ;;  %v100_v8 = vunpack.c.l.s4 %v4294_v7  ;;  %vm108_vm4 = vcmask 551938   ;;  %s4295_s1 = smov 32   ;;  %v4296_v35 = vmov 1966171168   ;;  %v4463_v41 = vld [vmem:[#allocation9] sm:$0xff]   ;;  %v4297_v43 = vmov 0.0  }
  0x4f   :  { %234 = vmatprep.subr.bf16.mxu1 %v4424_v4  ;;  %vm4445_vm5 = vmor %vm108_vm4, %vm107_vm3  ;;  %v276_v36 = vunpack.c.l.s4 %v4296_v35  ;;  %vm4298_vm6 = vmmov 0   ;;  %v4469_v44 = vld [vmem:[#allocation9 + $0x8] sm:$0xff]   ;;  %s4299_s11 = smov 96   ;;  %v4488_v57 = vld [vmem:[%s5356_s5] sm:$0x3]  ;;  %vm461_vm7 = vcmask 31744  }
  0x50   :  { %v101_v10 = vunpack.c.0.s8 %v100_v8  ;;  %s4301_s29 = smov 48   ;;  %s4302_s30 = smov 80   ;;  %vm463_vm8 = vcmask 58368   ;;  %vm666_vm9 = vcmask 123968   ;;  %vm869_vm10 = vcmask 189568  }
  0x51   :  { %157 = vmatpush1.bf16.msra.mxu0 %v4427_v5  ;;  %v277_v40 = vunpack.c.0.s8 %v276_v36  ;;  %s4303_s2 = smov 88   ;;  %s4304_s28 = smov 112   ;;  %vm1072_vm11 = vcmask 255168   ;;  %vm1275_vm12 = vcmask 320768   ;;  %vm1478_vm13 = vcmask 386368  }
  0x52   :  { %v4434_v6 = vld [vmem:[#allocation3] sm:$0x1]  ;;  %235 = vmatpush1.bf16.msra.mxu1 %v4427_v5  ;;  %v4442_v13 = vsub.s32 %v101_v10, %v103_v11  ;;  %3712 = vmatprep.subr.bf16.mxu0 %v4297_v43  ;;  %s4305_s9 = smov 24   ;;  %s4306_s10 = smov 40   ;;  %vm1681_vm14 = vcmask 451968   ;;  %vm1884_vm15 = vcmask 517568  }
  0x53   :  { %v280_v42 = vsub.s32 %v277_v40, %v103_v11  ;;  %s4307_s3 = smov 56   ;;  %s4310_s22 = smov 120   ;;  %vm2290_vm3 = vcmask 648768   ;;  %vm2493_vm4 = vcmask 714368  }
  0x54   :  { %3577 = vmatmul.mubr.msk.bf16.vlgmr.msra.gmra.mrb[0].mxu0 %vm150_vm1, %v4434_v6 }
  0x55   :  { %3716 = vmatprep.mubr.msk.bf16.mxu0 %vm4298_vm6, %v4297_v43  ;;  %3713 = vmatpush3.bf16.msra.mxu0 %v4463_v41  ;;  %v281_v45 = vrot.slane %v4434_v6, %v280_v42 }
  0x56   :  { %3714 = vmatprep.subr.bf16.mxu0 %v4297_v43 }
  0x57   :  { %v288_v47 = vrot.slane %v281_v45, %v280_v42 }
  0x59   :  { %3715 = vmatpush3.bf16.msra.mxu0 %v4469_v44 }
  0x5a   :  { %497 = vmatprep.subr.bf16.mxu0 %v4418_v1 }
  0xbe   :  { %v92_v14 = vpop.permute.xlu0 %91 }
  0xbf   :  { %v95_v15 = vsel %vm94_vm2, 0.0, %v92_v14 }
  0xc0   :  { %v98_v16 = vcombine.low %v88_v12, %v95_v15 }
  0xc2   :  { %v105_v18 = vrot.slane %v98_v16, %v4442_v13 }
  0xc4   :  { %110 = vst.msk [vmem:[#allocation2] sm:$0xf] %vm4445_vm5, %v105_v18 }
  0xcb   :  { %v4452_v19 = vld [vmem:[#allocation2] sm:$0xf] }
  0xcc   :  { %203 = vrot.lane.b32.xlu1 %v4452_v19, %s4295_s1  ;;  %v360_v12 = vrot.slane %v4452_v19, %v4442_v13 }
  0xce   :  { %v361_v14 = vcombine.high %v360_v12, %v360_v12 }
 0x127   :  { %v188_v20 = vpop.f32.mrb[0].mxu0 }
 0x128   :  { %v189_v21 = vpop.f32.mrb[1].mxu0  ;;  %v4498_v20 = vld [vmem:[#allocation10 + $0x4] ss:$8 sps:$4 sm:$0xff]  }
 0x129   :  { %v194_v22 = vadd.f32 %v189_v21, %v4452_v19  ;;  %v191_v23 = vpop.f32.mrb[2].mxu0  ;;  %v4500_v21 = vld [vmem:[#allocation10] ss:$8 sps:$4 sm:$0xff]   ;;  %407 = vmatprep.subr.bf16.mxu1 %v4498_v20 }
 0x12a   :  { %v192_v24 = vpop.f32.mrb[3].mxu0  ;;  %v4507_v23 = vld [vmem:[#allocation10 + $0x10] ss:$8 sps:$4 sm:$0xff]  }
 0x12b   :  { %3886 = vtanh.f32 %v194_v22  ;;  %v3578_v26 = vmul.f32 -1.442695, %v194_v22  ;;  %v4502_v22 = vld [vmem:[#allocation10 + $0x14] ss:$8 sps:$4 sm:$0xff]  }
 0x12d   :  { %3888 = vpow2.f32 %v3578_v26 }
 0x135   :  { %v3887_v25 = vpop.eup %3886 }
 0x136   :  { %210 = vrot.lane.b32.xlu0 %v3887_v25, %s4295_s1 }
 0x137   :  { %v3889_v27 = vpop.eup %3888 }
 0x138   :  { %v198_v28 = vadd.f32 1.0, %v3889_v27 }
 0x13a   :  { %3890 = vrcp.f32 %v198_v28 }
 0x13e   :  { %v204_v32 = vpop.permute.xlu1 %203 }
 0x13f   :  { %v205_v33 = vrot.slane %v204_v32, 2 }
 0x141   :  { %v206_v34 = vsel %vm150_vm1, %v204_v32, %v205_v33 }
 0x144   :  { %v3891_v29 = vpop.eup %3890 }
 0x145   :  { %v208_v37 = vmul.f32 %v3891_v29, %v206_v34 }
 0x1a8   :  { %v211_v30 = vpop.permute.xlu0 %210 }
 0x1a9   :  { %v213_v31 = vmul.f32 %v3891_v29, %v211_v30 }
 0x1ab   :  { %215 = vrot.lane.b32.xlu1 %v213_v31, %s4295_s1 }
 0x21d   :  { %v216_v38 = vpop.permute.xlu1 %215 }
 0x21e   :  { %v4460_v39 = vadd.f32 %v216_v38, %v208_v37 }
 0x220   :  { %3892 = vtanh.f32 %v4460_v39 }
 0x22a   :  { %v3893_v46 = vpop.eup %3892 }
 0x22b   :  { %221 = vrot.lane.b32.xlu0 %v3893_v46, %s4295_s1 }
 0x22f   :  { %289 = vrot.lane.b32.xlu0 %v288_v47, %s4299_s11 }
 0x29d   :  { %v222_v48 = vpop.permute.xlu0 %221 }
 0x29e   :  { %v224_v49 = vmul.f32 %v3891_v29, %v222_v48  ;;  %v4530_v29 = vld [vmem:[%s5358_s7] sm:$0x3] }
 0x2a0   :  { %v225_v50 = vpack.c.bf16 %v224_v49, %v224_v49 }
 0x2a1   :  { %v290_v51 = vpop.permute.xlu0 %289 }
 0x2a2   :  { %227 = vrot.lane.b32.xlu1 %v225_v50, %s4290_s0  ;;  %3717 = vmatmul.mubr.msk.bf16.vlgmr.msra.gmra.mrb[4].mxu0 %vm150_vm1, %v290_v51 }
 0x2a3   :  { %498 = vmatpush1.bf16.msra.mxu0 %v4420_v2  ;;  %529 = vmatprep.mubr.bf16.mxu0 %v4293_v0 }
 0x2a4   :  { %499 = vmatprep.subr.bf16.mxu0 %v4424_v4 }
 0x2a7   :  { %500 = vmatpush1.bf16.msra.mxu0 %v4427_v5 }
 0x2a8   :  { %611 = vmatprep.subr.bf16.mxu0 %v4498_v20 }
 0x314   :  { %v228_v52 = vpop.permute.xlu1 %227 }
 0x315   :  { %3579 = vmatmul.mubr.msk.bf16.vlgmr.msra.gmra.mrb[0].mxu1 %vm150_vm1, %v228_v52 }
 0x316   :  { %439 = vmatprep.mubr.bf16.mxu1 %v4293_v0  ;;  %408 = vmatpush1.bf16.msra.mxu1 %v4500_v21 }
 0x317   :  { %409 = vmatprep.subr.bf16.mxu1 %v4502_v22 }
 0x31a   :  { %410 = vmatpush1.bf16.msra.mxu1 %v4507_v23 }
 0x31b   :  { %3720 = vmatprep.subr.bf16.mxu1 %v4297_v43 }
 0x375   :  { %v340_v53 = vpop.f32.mrb[4].mxu0 }
 0x376   :  { %v3718_v54 = vpop.f32.mrb[5].mxu0 }
 0x377   :  { %v343_v55 = vpop.f32.mrb[6].mxu0 }
 0x378   :  { %v3719_v56 = vpop.f32.mrb[7].mxu0 }
 0x3e8   :  { %v266_v58 = vpop.f32.mrb[0].mxu1 }
 0x3e9   :  { %v273_v59 = vadd.f32 %v266_v58, %v4488_v57  ;;  %v268_v60 = vpop.f32.mrb[1].mxu1 }
 0x3ea   :  { %v270_v61 = vpop.f32.mrb[2].mxu1 }
 0x3eb   :  { %v346_v62 = vadd.f32 %v340_v53, %v273_v59  ;;  %v271_v63 = vpop.f32.mrb[3].mxu1 }
 0x3ed   :  { %3894 = vtanh.f32 %v346_v62  ;;  %v3583_v6 = vmul.f32 -1.442695, %v346_v62 }
 0x3ef   :  { %3896 = vpow2.f32 %v3583_v6 }
 0x3f7   :  { %v3895_v3 = vpop.eup %3894 }
 0x3f8   :  { %365 = vrot.lane.b32.xlu1 %v3895_v3, %s4295_s1 }
 0x3f9   :  { %v3897_v7 = vpop.eup %3896 }
 0x3fa   :  { %v350_v8 = vadd.f32 1.0, %v3897_v7 }
 0x3fc   :  { %3898 = vrcp.f32 %v350_v8 }
 0x406   :  { %v3899_v9 = vpop.eup %3898 }
 0x407   :  { %v363_v15 = vmul.f32 %v3899_v9, %v361_v14 }
 0x46a   :  { %v366_v10 = vpop.permute.xlu1 %365 }
 0x46b   :  { %v368_v11 = vmul.f32 %v3899_v9, %v366_v10 }
 0x46d   :  { %370 = vrot.lane.b32.xlu0 %v368_v11, %s4295_s1 }
 0x4df   :  { %v371_v16 = vpop.permute.xlu0 %370 }
 0x4e0   :  { %v4495_v18 = vadd.f32 %v371_v16, %v363_v15 }
 0x4e2   :  { %3900 = vtanh.f32 %v4495_v18 }
 0x4ec   :  { %v3901_v24 = vpop.eup %3900 }
 0x4ed   :  { %376 = vrot.lane.b32.xlu1 %v3901_v24, %s4295_s1 }
 0x55f   :  { %v377_v25 = vpop.permute.xlu1 %376 }
 0x560   :  { %v379_v26 = vmul.f32 %v3899_v9, %v377_v25 }
 0x562   :  { %v380_v27 = vpack.c.bf16 %v379_v26, %v379_v26 }
 0x564   :  { %382 = vrot.lane.b32.xlu0 %v380_v27, %s4290_s0 }
 0x5d6   :  { %v383_v28 = vpop.permute.xlu0 %382 }
 0x5d7   :  { %3588 = vmatmul.mubr.msk.bf16.vlgmr.msra.gmra.mrb[4].mxu1 %vm150_vm1, %v383_v28 }
 0x5d8   :  { %3721 = vmatpush3.bf16.msra.mxu1 %v4463_v41  ;;  %3724 = vmatprep.mubr.msk.bf16.mxu1 %vm4298_vm6, %v4297_v43 }
 0x5d9   :  { %3722 = vmatprep.subr.bf16.mxu1 %v4297_v43 }
 0x5dc   :  { %3723 = vmatpush3.bf16.msra.mxu1 %v4469_v44 }
 0x5dd   :  { %700 = vmatprep.subr.bf16.mxu1 %v4418_v1 }
 0x5df   :  { %3725 = vmatmul.mubr.msk.bf16.vlgmr.msra.gmra.mrb[8].mxu1 %vm150_vm1, %v383_v28 }
 0x5e0   :  { %701 = vmatpush1.bf16.msra.mxu1 %v4420_v2  ;;  %732 = vmatprep.mubr.bf16.mxu1 %v4293_v0 }
 0x5e1   :  { %702 = vmatprep.subr.bf16.mxu1 %v4424_v4 }
 0x5e4   :  { %703 = vmatpush1.bf16.msra.mxu1 %v4427_v5 }
 0x5e5   :  { %814 = vmatprep.subr.bf16.mxu1 %v4498_v20 }
 0x6aa   :  { %v441_v30 = vpop.f32.mrb[4].mxu1 }
 0x6ab   :  { %v449_v31 = vadd.f32 %v441_v30, %v4452_v19  ;;  %v4533_v32 = vpop.f32.mrb[5].mxu1 }
 0x6ac   :  { %v445_v33 = vpop.f32.mrb[6].mxu1 }
 0x6ad   :  { %v4536_v34 = vadd.f32 %v449_v31, %v4530_v29  ;;  %v446_v35 = vpop.f32.mrb[7].mxu1 }
 0x6af   :  { %v465_v36 = vadd.f32 %v4536_v34, %v268_v60 }
 0x6b1   :  { %3902 = vtanh.f32 %v465_v36  ;;  %v3589_v46 = vmul.f32 -1.442695, %v465_v36 }
 0x6b2   :  { %v573_v37 = vpop.f32.mrb[8].mxu1 }
 0x6b3   :  { %v3726_v38 = vpop.f32.mrb[9].mxu1  ;;  %3904 = vpow2.f32 %v3589_v46 }
 0x6b4   :  { %v576_v40 = vpop.f32.mrb[10].mxu1 }
 0x6b5   :  { %v3727_v42 = vpop.f32.mrb[11].mxu1 }
 0x6bb   :  { %v3903_v45 = vpop.eup %3902 }
 0x6bc   :  { %475 = vrot.lane.b32.xlu1 %v3903_v45, %s4295_s1 }
 0x6bd   :  { %v3905_v19 = vpop.eup %3904 }
 0x6be   :  { %v469_v47 = vadd.f32 1.0, %v3905_v19 }
 0x6c0   :  { %3906 = vrcp.f32 %v469_v47 }
 0x6ca   :  { %v3907_v48 = vpop.eup %3906 }
 0x6cb   :  { %v473_v51 = vmul.f32 %v3907_v48, %v4460_v39 }
 0x72e   :  { %v476_v49 = vpop.permute.xlu1 %475 }
 0x72f   :  { %v478_v50 = vmul.f32 %v3907_v48, %v476_v49 }
 0x731   :  { %480 = vrot.lane.b32.xlu0 %v478_v50, %s4295_s1 }
 0x7a3   :  { %v481_v52 = vpop.permute.xlu0 %480 }
 0x7a4   :  { %v4542_v53 = vadd.f32 %v481_v52, %v473_v51 }
 0x7a6   :  { %3908 = vtanh.f32 %v4542_v53 }
 0x7b0   :  { %v3909_v54 = vpop.eup %3908 }
 0x7b1   :  { %486 = vrot.lane.b32.xlu1 %v3909_v54, %s4295_s1 }
 0x823   :  { %v487_v55 = vpop.permute.xlu1 %486 }
 0x824   :  { %v489_v56 = vmul.f32 %v3907_v48, %v487_v55 }
 0x826   :  { %v490_v58 = vpack.c.bf16 %v489_v56, %v489_v56 }
 0x828   :  { %492 = vrot.lane.b32.xlu0 %v490_v58, %s4290_s0 }
 0x89a   :  { %v493_v59 = vpop.permute.xlu0 %492 }
 0x89b   :  { %3590 = vmatmul.mubr.msk.bf16.vlgmr.msra.gmra.mrb[8].mxu0 %vm150_vm1, %v493_v59 }
 0x89c   :  { %612 = vmatpush1.bf16.msra.mxu0 %v4500_v21  ;;  %643 = vmatprep.mubr.bf16.mxu0 %v4293_v0 }
 0x89d   :  { %613 = vmatprep.subr.bf16.mxu0 %v4502_v22 }
 0x8a0   :  { %614 = vmatpush1.bf16.msra.mxu0 %v4507_v23 }
 0x8a1   :  { %3728 = vmatprep.subr.bf16.mxu0 %v4297_v43 }
 0x96e   :  { %v531_v39 = vpop.f32.mrb[8].mxu0 }
 0x96f   :  { %v538_v60 = vadd.f32 %v531_v39, %v4488_v57  ;;  %v533_v61 = vpop.f32.mrb[9].mxu0 }
 0x970   :  { %v535_v62 = vpop.f32.mrb[10].mxu0 }
 0x971   :  { %v579_v63 = vadd.f32 %v573_v37, %v538_v60  ;;  %v536_v3 = vpop.f32.mrb[11].mxu0 }
 0x973   :  { %3910 = vtanh.f32 %v579_v63  ;;  %v3592_v7 = vmul.f32 -1.442695, %v579_v63 }
 0x975   :  { %3912 = vpow2.f32 %v3592_v7 }
 0x97d   :  { %v3911_v6 = vpop.eup %3910 }
 0x97e   :  { %589 = vrot.lane.b32.xlu1 %v3911_v6, %s4295_s1 }
 0x97f   :  { %v3913_v8 = vpop.eup %3912 }
 0x980   :  { %v583_v9 = vadd.f32 1.0, %v3913_v8 }
 0x982   :  { %3914 = vrcp.f32 %v583_v9 }
 0x98c   :  { %v3915_v10 = vpop.eup %3914 }
 0x98d   :  { %v587_v14 = vmul.f32 %v3915_v10, %v4495_v18 }
 0x9f0   :  { %v590_v11 = vpop.permute.xlu1 %589 }
 0x9f1   :  { %v592_v12 = vmul.f32 %v3915_v10, %v590_v11 }
 0x9f3   :  { %594 = vrot.lane.b32.xlu0 %v592_v12, %s4295_s1 }
 0xa65   :  { %v595_v15 = vpop.permute.xlu0 %594 }
 0xa66   :  { %v4557_v16 = vadd.f32 %v595_v15, %v587_v14 }
 0xa68   :  { %3916 = vtanh.f32 %v4557_v16 }
 0xa72   :  { %v3917_v24 = vpop.eup %3916 }
 0xa73   :  { %600 = vrot.lane.b32.xlu1 %v3917_v24, %s4295_s1 }
 0xae5   :  { %v601_v25 = vpop.permute.xlu1 %600 }
 0xae6   :  { %v603_v26 = vmul.f32 %v3915_v10, %v601_v25 }
 0xae8   :  { %v604_v27 = vpack.c.bf16 %v603_v26, %v603_v26 }
 0xaea   :  { %606 = vrot.lane.b32.xlu0 %v604_v27, %s4290_s0 }
 0xb5c   :  { %v607_v28 = vpop.permute.xlu0 %606 }
 0xb5d   :  { %3593 = vmatmul.mubr.msk.bf16.vlgmr.msra.gmra.mrb[12].mxu0 %vm150_vm1, %v607_v28 }
 0xb5e   :  { %3729 = vmatpush3.bf16.msra.mxu0 %v4463_v41  ;;  %3732 = vmatprep.mubr.msk.bf16.mxu0 %vm4298_vm6, %v4297_v43 }
 0xb5f   :  { %3730 = vmatprep.subr.bf16.mxu0 %v4297_v43 }
 0xb62   :  { %3731 = vmatpush3.bf16.msra.mxu0 %v4469_v44 }
 0xb63   :  { %903 = vmatprep.subr.bf16.mxu0 %v4418_v1 }
 0xb65   :  { %3733 = vmatmul.mubr.msk.bf16.vlgmr.msra.gmra.mrb[16].mxu0 %vm150_vm1, %v607_v28 }
 0xb66   :  { %904 = vmatpush1.bf16.msra.mxu0 %v4420_v2  ;;  %935 = vmatprep.mubr.bf16.mxu0 %v4293_v0 }
 0xb67   :  { %905 = vmatprep.subr.bf16.mxu0 %v4424_v4 }
 0xb6a   :  { %906 = vmatpush1.bf16.msra.mxu0 %v4427_v5 }
 0xb6b   :  { %1017 = vmatprep.subr.bf16.mxu0 %v4498_v20 }
 0xc30   :  { %v645_v18 = vpop.f32.mrb[12].mxu0 }
 0xc31   :  { %v653_v30 = vadd.f32 %v645_v18, %v4536_v34  ;;  %v4576_v31 = vpop.f32.mrb[13].mxu0 }
 0xc32   :  { %v649_v33 = vpop.f32.mrb[14].mxu0 }
 0xc33   :  { %v4579_v35 = vadd.f32 %v653_v30, %v4530_v29  ;;  %v650_v36 = vpop.f32.mrb[15].mxu0 }
 0xc35   :  { %v668_v37 = vadd.f32 %v4579_v35, %v533_v61 }
 0xc37   :  { %3918 = vtanh.f32 %v668_v37  ;;  %v3594_v19 = vmul.f32 -1.442695, %v668_v37 }
 0xc38   :  { %v776_v38 = vpop.f32.mrb[16].mxu0 }
 0xc39   :  { %v3734_v40 = vpop.f32.mrb[17].mxu0  ;;  %3920 = vpow2.f32 %v3594_v19 }
 0xc3a   :  { %v779_v42 = vpop.f32.mrb[18].mxu0 }
 0xc3b   :  { %v3735_v45 = vpop.f32.mrb[19].mxu0 }
 0xc41   :  { %v3919_v46 = vpop.eup %3918 }
 0xc42   :  { %678 = vrot.lane.b32.xlu1 %v3919_v46, %s4295_s1 }
 0xc43   :  { %v3921_v34 = vpop.eup %3920 }
 0xc44   :  { %v672_v47 = vadd.f32 1.0, %v3921_v34 }
 0xc46   :  { %3922 = vrcp.f32 %v672_v47 }
 0xc50   :  { %v3923_v48 = vpop.eup %3922 }
 0xc51   :  { %v676_v51 = vmul.f32 %v3923_v48, %v4542_v53 }
 0xcb4   :  { %v679_v49 = vpop.permute.xlu1 %678 }
 0xcb5   :  { %v681_v50 = vmul.f32 %v3923_v48, %v679_v49 }
 0xcb7   :  { %683 = vrot.lane.b32.xlu0 %v681_v50, %s4295_s1 }
 0xd29   :  { %v684_v52 = vpop.permute.xlu0 %683 }
 0xd2a   :  { %v4585_v54 = vadd.f32 %v684_v52, %v676_v51 }
 0xd2c   :  { %3924 = vtanh.f32 %v4585_v54 }
 0xd36   :  { %v3925_v55 = vpop.eup %3924 }
 0xd37   :  { %689 = vrot.lane.b32.xlu1 %v3925_v55, %s4295_s1 }
 0xda9   :  { %v690_v56 = vpop.permute.xlu1 %689 }
 0xdaa   :  { %v692_v58 = vmul.f32 %v3923_v48, %v690_v56 }
 0xdac   :  { %v693_v59 = vpack.c.bf16 %v692_v58, %v692_v58 }
 0xdae   :  { %695 = vrot.lane.b32.xlu0 %v693_v59, %s4290_s0 }
 0xe20   :  { %v696_v39 = vpop.permute.xlu0 %695 }
 0xe21   :  { %3595 = vmatmul.mubr.msk.bf16.vlgmr.msra.gmra.mrb[12].mxu1 %vm150_vm1, %v696_v39 }
 0xe22   :  { %815 = vmatpush1.bf16.msra.mxu1 %v4500_v21  ;;  %846 = vmatprep.mubr.bf16.mxu1 %v4293_v0 }
 0xe23   :  { %816 = vmatprep.subr.bf16.mxu1 %v4502_v22 }
 0xe26   :  { %817 = vmatpush1.bf16.msra.mxu1 %v4507_v23 }
 0xe27   :  { %3736 = vmatprep.subr.bf16.mxu1 %v4297_v43 }
 0xef4   :  { %v734_v53 = vpop.f32.mrb[12].mxu1 }
 0xef5   :  { %v741_v60 = vadd.f32 %v734_v53, %v4488_v57  ;;  %v736_v61 = vpop.f32.mrb[13].mxu1 }
 0xef6   :  { %v738_v62 = vpop.f32.mrb[14].mxu1 }
 0xef7   :  { %v782_v63 = vadd.f32 %v776_v38, %v741_v60  ;;  %v739_v3 = vpop.f32.mrb[15].mxu1 }
 0xef9   :  { %3926 = vtanh.f32 %v782_v63  ;;  %v3597_v7 = vmul.f32 -1.442695, %v782_v63 }
 0xefb   :  { %3928 = vpow2.f32 %v3597_v7 }
 0xf03   :  { %v3927_v6 = vpop.eup %3926 }
 0xf04   :  { %792 = vrot.lane.b32.xlu1 %v3927_v6, %s4295_s1 }
 0xf05   :  { %v3929_v8 = vpop.eup %3928 }
 0xf06   :  { %v786_v9 = vadd.f32 1.0, %v3929_v8 }
 0xf08   :  { %3930 = vrcp.f32 %v786_v9 }
 0xf12   :  { %v3931_v10 = vpop.eup %3930 }
 0xf13   :  { %v790_v14 = vmul.f32 %v3931_v10, %v4557_v16 }
 0xf76   :  { %v793_v11 = vpop.permute.xlu1 %792 }
 0xf77   :  { %v795_v12 = vmul.f32 %v3931_v10, %v793_v11 }
 0xf79   :  { %797 = vrot.lane.b32.xlu0 %v795_v12, %s4295_s1 }
 0xfeb   :  { %v798_v15 = vpop.permute.xlu0 %797 }
 0xfec   :  { %v4600_v24 = vadd.f32 %v798_v15, %v790_v14 }
 0xfee   :  { %3932 = vtanh.f32 %v4600_v24 }
 0xff8   :  { %v3933_v25 = vpop.eup %3932 }
 0xff9   :  { %803 = vrot.lane.b32.xlu1 %v3933_v25, %s4295_s1 }
0x106b   :  { %v804_v26 = vpop.permute.xlu1 %803 }
0x106c   :  { %v806_v27 = vmul.f32 %v3931_v10, %v804_v26 }
0x106e   :  { %v807_v28 = vpack.c.bf16 %v806_v27, %v806_v27 }
0x1070   :  { %809 = vrot.lane.b32.xlu0 %v807_v28, %s4290_s0 }
0x10e2   :  { %v810_v18 = vpop.permute.xlu0 %809 }
0x10e3   :  { %3598 = vmatmul.mubr.msk.bf16.vlgmr.msra.gmra.mrb[16].mxu1 %vm150_vm1, %v810_v18 }
0x10e4   :  { %3737 = vmatpush3.bf16.msra.mxu1 %v4463_v41  ;;  %3740 = vmatprep.mubr.msk.bf16.mxu1 %vm4298_vm6, %v4297_v43 }
0x10e5   :  { %3738 = vmatprep.subr.bf16.mxu1 %v4297_v43 }
0x10e8   :  { %3739 = vmatpush3.bf16.msra.mxu1 %v4469_v44 }
0x10e9   :  { %1106 = vmatprep.subr.bf16.mxu1 %v4418_v1 }
0x10eb   :  { %3741 = vmatmul.mubr.msk.bf16.vlgmr.msra.gmra.mrb[20].mxu1 %vm150_vm1, %v810_v18 }
0x10ec   :  { %1107 = vmatpush1.bf16.msra.mxu1 %v4420_v2  ;;  %1138 = vmatprep.mubr.bf16.mxu1 %v4293_v0 }
0x10ed   :  { %1108 = vmatprep.subr.bf16.mxu1 %v4424_v4 }
0x10f0   :  { %1109 = vmatpush1.bf16.msra.mxu1 %v4427_v5 }
0x10f1   :  { %1220 = vmatprep.subr.bf16.mxu1 %v4498_v20 }
0x11b6   :  { %v848_v16 = vpop.f32.mrb[16].mxu1 }
0x11b7   :  { %v856_v30 = vadd.f32 %v848_v16, %v4579_v35  ;;  %v4619_v33 = vpop.f32.mrb[17].mxu1 }
0x11b8   :  { %v852_v36 = vpop.f32.mrb[18].mxu1 }
0x11b9   :  { %v4622_v37 = vadd.f32 %v856_v30, %v4530_v29  ;;  %v853_v38 = vpop.f32.mrb[19].mxu1 }
0x11bb   :  { %v871_v40 = vadd.f32 %v4622_v37, %v736_v61 }
0x11bd   :  { %3934 = vtanh.f32 %v871_v40  ;;  %v3599_v47 = vmul.f32 -1.442695, %v871_v40 }
0x11be   :  { %v979_v42 = vpop.f32.mrb[20].mxu1 }
0x11bf   :  { %v3742_v45 = vpop.f32.mrb[21].mxu1  ;;  %3936 = vpow2.f32 %v3599_v47 }
0x11c0   :  { %v982_v46 = vpop.f32.mrb[22].mxu1 }
0x11c1   :  { %v3743_v19 = vpop.f32.mrb[23].mxu1 }
0x11c7   :  { %v3935_v34 = vpop.eup %3934 }
0x11c8   :  { %881 = vrot.lane.b32.xlu1 %v3935_v34, %s4295_s1 }
0x11c9   :  { %v3937_v35 = vpop.eup %3936 }
0x11ca   :  { %v875_v48 = vadd.f32 1.0, %v3937_v35 }
0x11cc   :  { %3938 = vrcp.f32 %v875_v48 }
0x11d6   :  { %v3939_v49 = vpop.eup %3938 }
0x11d7   :  { %v879_v52 = vmul.f32 %v3939_v49, %v4585_v54 }
0x123a   :  { %v882_v50 = vpop.permute.xlu1 %881 }
0x123b   :  { %v884_v51 = vmul.f32 %v3939_v49, %v882_v50 }
0x123d   :  { %886 = vrot.lane.b32.xlu0 %v884_v51, %s4295_s1 }
0x12af   :  { %v887_v55 = vpop.permute.xlu0 %886 }
0x12b0   :  { %v4628_v56 = vadd.f32 %v887_v55, %v879_v52 }
0x12b2   :  { %3940 = vtanh.f32 %v4628_v56 }
0x12bc   :  { %v3941_v58 = vpop.eup %3940 }
0x12bd   :  { %892 = vrot.lane.b32.xlu1 %v3941_v58, %s4295_s1 }
0x132f   :  { %v893_v59 = vpop.permute.xlu1 %892 }
0x1330   :  { %v895_v39 = vmul.f32 %v3939_v49, %v893_v59 }
0x1332   :  { %v896_v53 = vpack.c.bf16 %v895_v39, %v895_v39 }
0x1334   :  { %898 = vrot.lane.b32.xlu0 %v896_v53, %s4290_s0 }
0x13a6   :  { %v899_v60 = vpop.permute.xlu0 %898 }
0x13a7   :  { %3600 = vmatmul.mubr.msk.bf16.vlgmr.msra.gmra.mrb[20].mxu0 %vm150_vm1, %v899_v60 }
0x13a8   :  { %1018 = vmatpush1.bf16.msra.mxu0 %v4500_v21  ;;  %1049 = vmatprep.mubr.bf16.mxu0 %v4293_v0 }
0x13a9   :  { %1019 = vmatprep.subr.bf16.mxu0 %v4502_v22 }
0x13ac   :  { %1020 = vmatpush1.bf16.msra.mxu0 %v4507_v23 }
0x13ad   :  { %3744 = vmatprep.subr.bf16.mxu0 %v4297_v43 }
0x147a   :  { %v937_v54 = vpop.f32.mrb[20].mxu0 }
0x147b   :  { %v944_v61 = vadd.f32 %v937_v54, %v4488_v57  ;;  %v939_v62 = vpop.f32.mrb[21].mxu0 }
0x147c   :  { %v941_v63 = vpop.f32.mrb[22].mxu0 }
0x147d   :  { %v985_v3 = vadd.f32 %v979_v42, %v944_v61  ;;  %v942_v6 = vpop.f32.mrb[23].mxu0 }
0x147f   :  { %3942 = vtanh.f32 %v985_v3  ;;  %v3602_v8 = vmul.f32 -1.442695, %v985_v3 }
0x1481   :  { %3944 = vpow2.f32 %v3602_v8 }
0x1489   :  { %v3943_v7 = vpop.eup %3942 }
0x148a   :  { %995 = vrot.lane.b32.xlu1 %v3943_v7, %s4295_s1 }
0x148b   :  { %v3945_v9 = vpop.eup %3944 }
0x148c   :  { %v989_v10 = vadd.f32 1.0, %v3945_v9 }
0x148e   :  { %3946 = vrcp.f32 %v989_v10 }
0x1498   :  { %v3947_v11 = vpop.eup %3946 }
0x1499   :  { %v993_v15 = vmul.f32 %v3947_v11, %v4600_v24 }
0x14fc   :  { %v996_v12 = vpop.permute.xlu1 %995 }
0x14fd   :  { %v998_v14 = vmul.f32 %v3947_v11, %v996_v12 }
0x14ff   :  { %1000 = vrot.lane.b32.xlu0 %v998_v14, %s4295_s1 }
0x1571   :  { %v1001_v25 = vpop.permute.xlu0 %1000 }
0x1572   :  { %v4643_v26 = vadd.f32 %v1001_v25, %v993_v15 }
0x1574   :  { %3948 = vtanh.f32 %v4643_v26 }
0x157e   :  { %v3949_v27 = vpop.eup %3948 }
0x157f   :  { %1006 = vrot.lane.b32.xlu1 %v3949_v27, %s4295_s1 }
0x15f1   :  { %v1007_v28 = vpop.permute.xlu1 %1006 }
0x15f2   :  { %v1009_v18 = vmul.f32 %v3947_v11, %v1007_v28 }
0x15f4   :  { %v1010_v16 = vpack.c.bf16 %v1009_v18, %v1009_v18 }
0x15f6   :  { %1012 = vrot.lane.b32.xlu0 %v1010_v16, %s4290_s0 }
0x1668   :  { %v1013_v30 = vpop.permute.xlu0 %1012 }
0x1669   :  { %3603 = vmatmul.mubr.msk.bf16.vlgmr.msra.gmra.mrb[24].mxu0 %vm150_vm1, %v1013_v30 }
0x166a   :  { %3745 = vmatpush3.bf16.msra.mxu0 %v4463_v41  ;;  %3748 = vmatprep.mubr.msk.bf16.mxu0 %vm4298_vm6, %v4297_v43 }
0x166b   :  { %3746 = vmatprep.subr.bf16.mxu0 %v4297_v43 }
0x166e   :  { %3747 = vmatpush3.bf16.msra.mxu0 %v4469_v44 }
0x166f   :  { %1309 = vmatprep.subr.bf16.mxu0 %v4418_v1 }
0x1671   :  { %3749 = vmatmul.mubr.msk.bf16.vlgmr.msra.gmra.mrb[28].mxu0 %vm150_vm1, %v1013_v30 }
0x1672   :  { %1310 = vmatpush1.bf16.msra.mxu0 %v4420_v2  ;;  %1341 = vmatprep.mubr.bf16.mxu0 %v4293_v0 }
0x1673   :  { %1311 = vmatprep.subr.bf16.mxu0 %v4424_v4 }
0x1676   :  { %1312 = vmatpush1.bf16.msra.mxu0 %v4427_v5 }
0x1677   :  { %1423 = vmatprep.subr.bf16.mxu0 %v4498_v20 }
0x173c   :  { %v1051_v24 = vpop.f32.mrb[24].mxu0 }
0x173d   :  { %v1059_v36 = vadd.f32 %v1051_v24, %v4622_v37  ;;  %v4662_v38 = vpop.f32.mrb[25].mxu0 }
0x173e   :  { %v1055_v40 = vpop.f32.mrb[26].mxu0 }
0x173f   :  { %v4665_v42 = vadd.f32 %v1059_v36, %v4530_v29  ;;  %v1056_v45 = vpop.f32.mrb[27].mxu0 }
0x1741   :  { %v1074_v46 = vadd.f32 %v4665_v42, %v939_v62 }
0x1743   :  { %3950 = vtanh.f32 %v1074_v46  ;;  %v3604_v49 = vmul.f32 -1.442695, %v1074_v46 }
0x1744   :  { %v1182_v19 = vpop.f32.mrb[28].mxu0 }
0x1745   :  { %v3750_v34 = vpop.f32.mrb[29].mxu0  ;;  %3952 = vpow2.f32 %v3604_v49 }
0x1746   :  { %v1185_v47 = vpop.f32.mrb[30].mxu0 }
0x1747   :  { %v3751_v35 = vpop.f32.mrb[31].mxu0 }
0x174d   :  { %v3951_v48 = vpop.eup %3950 }
0x174e   :  { %1084 = vrot.lane.b32.xlu1 %v3951_v48, %s4295_s1 }
0x174f   :  { %v3953_v37 = vpop.eup %3952 }
0x1750   :  { %v1078_v50 = vadd.f32 1.0, %v3953_v37 }
0x1752   :  { %3954 = vrcp.f32 %v1078_v50 }
0x175c   :  { %v3955_v51 = vpop.eup %3954 }
0x175d   :  { %v1082_v58 = vmul.f32 %v3955_v51, %v4628_v56 }
0x17c0   :  { %v1085_v52 = vpop.permute.xlu1 %1084 }
0x17c1   :  { %v1087_v55 = vmul.f32 %v3955_v51, %v1085_v52 }
0x17c3   :  { %1089 = vrot.lane.b32.xlu0 %v1087_v55, %s4295_s1 }
0x1835   :  { %v1090_v59 = vpop.permute.xlu0 %1089 }
0x1836   :  { %v4671_v39 = vadd.f32 %v1090_v59, %v1082_v58 }
0x1838   :  { %3956 = vtanh.f32 %v4671_v39 }
0x1842   :  { %v3957_v53 = vpop.eup %3956 }
0x1843   :  { %1095 = vrot.lane.b32.xlu1 %v3957_v53, %s4295_s1 }
0x18b5   :  { %v1096_v60 = vpop.permute.xlu1 %1095 }
0x18b6   :  { %v1098_v54 = vmul.f32 %v3955_v51, %v1096_v60 }
0x18b8   :  { %v1099_v61 = vpack.c.bf16 %v1098_v54, %v1098_v54 }
0x18ba   :  { %1101 = vrot.lane.b32.xlu0 %v1099_v61, %s4290_s0 }
0x192c   :  { %v1102_v62 = vpop.permute.xlu0 %1101 }
0x192d   :  { %3605 = vmatmul.mubr.msk.bf16.vlgmr.msra.gmra.mrb[24].mxu1 %vm150_vm1, %v1102_v62 }
0x192e   :  { %1221 = vmatpush1.bf16.msra.mxu1 %v4500_v21  ;;  %1252 = vmatprep.mubr.bf16.mxu1 %v4293_v0 }
0x192f   :  { %1222 = vmatprep.subr.bf16.mxu1 %v4502_v22 }
0x1932   :  { %1223 = vmatpush1.bf16.msra.mxu1 %v4507_v23 }
0x1933   :  { %3752 = vmatprep.subr.bf16.mxu1 %v4297_v43 }
0x1a00   :  { %v1140_v56 = vpop.f32.mrb[24].mxu1 }
0x1a01   :  { %v1147_v63 = vadd.f32 %v1140_v56, %v4488_v57  ;;  %v1142_v3 = vpop.f32.mrb[25].mxu1 }
0x1a02   :  { %v1144_v6 = vpop.f32.mrb[26].mxu1 }
0x1a03   :  { %v1188_v7 = vadd.f32 %v1182_v19, %v1147_v63  ;;  %v1145_v8 = vpop.f32.mrb[27].mxu1 }
0x1a05   :  { %3958 = vtanh.f32 %v1188_v7  ;;  %v3607_v10 = vmul.f32 -1.442695, %v1188_v7 }
0x1a07   :  { %3960 = vpow2.f32 %v3607_v10 }
0x1a0f   :  { %v3959_v9 = vpop.eup %3958 }
0x1a10   :  { %1198 = vrot.lane.b32.xlu1 %v3959_v9, %s4295_s1 }
0x1a11   :  { %v3961_v11 = vpop.eup %3960 }
0x1a12   :  { %v1192_v12 = vadd.f32 1.0, %v3961_v11 }
0x1a14   :  { %3962 = vrcp.f32 %v1192_v12 }
0x1a1e   :  { %v3963_v14 = vpop.eup %3962 }
0x1a1f   :  { %v1196_v27 = vmul.f32 %v3963_v14, %v4643_v26 }
0x1a82   :  { %v1199_v15 = vpop.permute.xlu1 %1198 }
0x1a83   :  { %v1201_v25 = vmul.f32 %v3963_v14, %v1199_v15 }
0x1a85   :  { %1203 = vrot.lane.b32.xlu0 %v1201_v25, %s4295_s1 }
0x1af7   :  { %v1204_v28 = vpop.permute.xlu0 %1203 }
0x1af8   :  { %v4686_v18 = vadd.f32 %v1204_v28, %v1196_v27 }
0x1afa   :  { %3964 = vtanh.f32 %v4686_v18 }
0x1b04   :  { %v3965_v16 = vpop.eup %3964 }
0x1b05   :  { %1209 = vrot.lane.b32.xlu1 %v3965_v16, %s4295_s1 }
0x1b77   :  { %v1210_v30 = vpop.permute.xlu1 %1209 }
0x1b78   :  { %v1212_v24 = vmul.f32 %v3963_v14, %v1210_v30 }
0x1b7a   :  { %v1213_v36 = vpack.c.bf16 %v1212_v24, %v1212_v24 }
0x1b7c   :  { %1215 = vrot.lane.b32.xlu0 %v1213_v36, %s4290_s0 }
0x1bee   :  { %v1216_v40 = vpop.permute.xlu0 %1215 }
0x1bef   :  { %3608 = vmatmul.mubr.msk.bf16.vlgmr.msra.gmra.mrb[28].mxu1 %vm150_vm1, %v1216_v40 }
0x1bf0   :  { %3753 = vmatpush3.bf16.msra.mxu1 %v4463_v41  ;;  %3756 = vmatprep.mubr.msk.bf16.mxu1 %vm4298_vm6, %v4297_v43 }
0x1bf1   :  { %3754 = vmatprep.subr.bf16.mxu1 %v4297_v43 }
0x1bf4   :  { %3755 = vmatpush3.bf16.msra.mxu1 %v4469_v44 }
0x1bf5   :  { %1512 = vmatprep.subr.bf16.mxu1 %v4418_v1 }
0x1bf7   :  { %3757 = vmatmul.mubr.msk.bf16.vlgmr.msra.gmra.mrb[32].mxu1 %vm150_vm1, %v1216_v40 }
0x1bf8   :  { %1513 = vmatpush1.bf16.msra.mxu1 %v4420_v2  ;;  %1544 = vmatprep.mubr.bf16.mxu1 %v4293_v0 }
0x1bf9   :  { %1514 = vmatprep.subr.bf16.mxu1 %v4424_v4 }
0x1bfc   :  { %1515 = vmatpush1.bf16.msra.mxu1 %v4427_v5 }
0x1bfd   :  { %1626 = vmatprep.subr.bf16.mxu1 %v4498_v20 }
0x1cc2   :  { %v1254_v26 = vpop.f32.mrb[28].mxu1 }
0x1cc3   :  { %v1262_v45 = vadd.f32 %v1254_v26, %v4665_v42  ;;  %v4705_v46 = vpop.f32.mrb[29].mxu1  ;;  %v4744_v26 = vld [vmem:[#allocation7] ss:$8 sps:$4 sm:$0xff]  }
0x1cc4   :  { %v1258_v19 = vpop.f32.mrb[30].mxu1 }
0x1cc5   :  { %v4708_v1 = vadd.f32 %v1262_v45, %v4530_v29  ;;  %v1259_v34 = vpop.f32.mrb[31].mxu1  ;;  %v4751_v45 = vld [vmem:[#allocation7 + $0x10] ss:$8 sps:$4 sm:$0xff]  }
0x1cc7   :  { %v1277_v2 = vadd.f32 %v4708_v1, %v1142_v3 }
0x1cc9   :  { %3966 = vtanh.f32 %v1277_v2  ;;  %v3609_v49 = vmul.f32 -1.442695, %v1277_v2 }
0x1cca   :  { %v1385_v47 = vpop.f32.mrb[32].mxu1 }
0x1ccb   :  { %v3758_v35 = vpop.f32.mrb[33].mxu1  ;;  %3968 = vpow2.f32 %v3609_v49 }
0x1ccc   :  { %v1388_v4 = vpop.f32.mrb[34].mxu1 }
0x1ccd   :  { %v3759_v48 = vpop.f32.mrb[35].mxu1 }
0x1cd3   :  { %v3967_v5 = vpop.eup %3966 }
0x1cd4   :  { %1287 = vrot.lane.b32.xlu1 %v3967_v5, %s4295_s1 }
0x1cd5   :  { %v3969_v42 = vpop.eup %3968 }
0x1cd6   :  { %v1281_v37 = vadd.f32 1.0, %v3969_v42 }
0x1cd8   :  { %3970 = vrcp.f32 %v1281_v37 }
0x1ce2   :  { %v3971_v50 = vpop.eup %3970 }
0x1ce3   :  { %v1285_v55 = vmul.f32 %v3971_v50, %v4671_v39 }
0x1d46   :  { %v1288_v51 = vpop.permute.xlu1 %1287 }
0x1d47   :  { %v1290_v52 = vmul.f32 %v3971_v50, %v1288_v51 }
0x1d49   :  { %1292 = vrot.lane.b32.xlu0 %v1290_v52, %s4295_s1 }
0x1dbb   :  { %v1293_v58 = vpop.permute.xlu0 %1292 }
0x1dbc   :  { %v4714_v59 = vadd.f32 %v1293_v58, %v1285_v55 }
0x1dbe   :  { %3972 = vtanh.f32 %v4714_v59 }
0x1dc8   :  { %v3973_v53 = vpop.eup %3972 }
0x1dc9   :  { %1298 = vrot.lane.b32.xlu1 %v3973_v53, %s4295_s1 }
0x1e3b   :  { %v1299_v60 = vpop.permute.xlu1 %1298 }
0x1e3c   :  { %v1301_v54 = vmul.f32 %v3971_v50, %v1299_v60 }
0x1e3e   :  { %v1302_v61 = vpack.c.bf16 %v1301_v54, %v1301_v54 }
0x1e40   :  { %1304 = vrot.lane.b32.xlu0 %v1302_v61, %s4290_s0 }
0x1eb2   :  { %v1305_v62 = vpop.permute.xlu0 %1304 }
0x1eb3   :  { %3610 = vmatmul.mubr.msk.bf16.vlgmr.msra.gmra.mrb[32].mxu0 %vm150_vm1, %v1305_v62 }
0x1eb4   :  { %1424 = vmatpush1.bf16.msra.mxu0 %v4500_v21  ;;  %1455 = vmatprep.mubr.bf16.mxu0 %v4293_v0 }
0x1eb5   :  { %1425 = vmatprep.subr.bf16.mxu0 %v4502_v22 }
0x1eb8   :  { %1426 = vmatpush1.bf16.msra.mxu0 %v4507_v23 }
0x1eb9   :  { %3760 = vmatprep.subr.bf16.mxu0 %v4297_v43 }
0x1f86   :  { %v1343_v39 = vpop.f32.mrb[32].mxu0 }
0x1f87   :  { %v1350_v56 = vadd.f32 %v1343_v39, %v4488_v57  ;;  %v1345_v63 = vpop.f32.mrb[33].mxu0 }
0x1f88   :  { %v1347_v3 = vpop.f32.mrb[34].mxu0 }
0x1f89   :  { %v1391_v6 = vadd.f32 %v1385_v47, %v1350_v56  ;;  %v1348_v7 = vpop.f32.mrb[35].mxu0 }
0x1f8b   :  { %3974 = vtanh.f32 %v1391_v6  ;;  %v3612_v9 = vmul.f32 -1.442695, %v1391_v6 }
0x1f8d   :  { %3976 = vpow2.f32 %v3612_v9 }
0x1f95   :  { %v3975_v8 = vpop.eup %3974 }
0x1f96   :  { %1401 = vrot.lane.b32.xlu1 %v3975_v8, %s4295_s1 }
0x1f97   :  { %v3977_v10 = vpop.eup %3976 }
0x1f98   :  { %v1395_v11 = vadd.f32 1.0, %v3977_v10 }
0x1f9a   :  { %3978 = vrcp.f32 %v1395_v11 }
0x1fa4   :  { %v3979_v12 = vpop.eup %3978 }
0x1fa5   :  { %v1399_v25 = vmul.f32 %v3979_v12, %v4686_v18  ;;  %v4740_v18 = vld [vmem:[#allocation7 + $0x4] ss:$8 sps:$4 sm:$0xff]  }
0x2008   :  { %v1402_v14 = vpop.permute.xlu1 %1401 }
0x2009   :  { %v1404_v15 = vmul.f32 %v3979_v12, %v1402_v14 }
0x200b   :  { %1406 = vrot.lane.b32.xlu0 %v1404_v15, %s4295_s1 }
0x207d   :  { %v1407_v27 = vpop.permute.xlu0 %1406 }
0x207e   :  { %v4729_v28 = vadd.f32 %v1407_v27, %v1399_v25 }
0x2080   :  { %3980 = vtanh.f32 %v4729_v28 }
0x208a   :  { %v3981_v16 = vpop.eup %3980 }
0x208b   :  { %1412 = vrot.lane.b32.xlu1 %v3981_v16, %s4295_s1 }
0x20fd   :  { %v1413_v30 = vpop.permute.xlu1 %1412 }
0x20fe   :  { %v1415_v24 = vmul.f32 %v3979_v12, %v1413_v30 }
0x2100   :  { %v1416_v36 = vpack.c.bf16 %v1415_v24, %v1415_v24 }
0x2102   :  { %1418 = vrot.lane.b32.xlu0 %v1416_v36, %s4290_s0  ;;  %v4786_v36 = vld [vmem:[#allocation9] sm:$0xff]  }
0x2174   :  { %v1419_v40 = vpop.permute.xlu0 %1418 }
0x2175   :  { %3613 = vmatmul.mubr.msk.bf16.vlgmr.msra.gmra.mrb[36].mxu0 %vm150_vm1, %v1419_v40 }
0x2176   :  { %3761 = vmatpush3.bf16.msra.mxu0 %v4463_v41  ;;  %3764 = vmatprep.mubr.msk.bf16.mxu0 %vm4298_vm6, %v4297_v43  ;;  %v4748_v41 = vld [vmem:[#allocation7 + $0x14] ss:$8 sps:$4 sm:$0xff]  }
0x2177   :  { %3762 = vmatprep.subr.bf16.mxu0 %v4297_v43 }
0x217a   :  { %3763 = vmatpush3.bf16.msra.mxu0 %v4469_v44 }
0x217b   :  { %1715 = vmatprep.subr.bf16.mxu0 %v4740_v18 }
0x217d   :  { %3765 = vmatmul.mubr.msk.bf16.vlgmr.msra.gmra.mrb[40].mxu0 %vm150_vm1, %v1419_v40  ;;  %v4801_v40 = vld [vmem:[#allocation10 + $0x4] ss:$8 sps:$4 sm:$0xff]  }
0x217e   :  { %1716 = vmatpush1.bf16.msra.mxu0 %v4744_v26  ;;  %1747 = vmatprep.mubr.bf16.mxu0 %v4293_v0 }
0x217f   :  { %1717 = vmatprep.subr.bf16.mxu0 %v4748_v41 }
0x2182   :  { %1718 = vmatpush1.bf16.msra.mxu0 %v4751_v45 }
0x2183   :  { %1829 = vmatprep.subr.bf16.mxu0 %v4498_v20 }
0x2248   :  { %v1457_v44 = vpop.f32.mrb[36].mxu0 }
0x2249   :  { %v1465_v19 = vadd.f32 %v1457_v44, %v4708_v1  ;;  %v4756_v34 = vpop.f32.mrb[37].mxu0 }
0x224a   :  { %v1461_v2 = vpop.f32.mrb[38].mxu0 }
0x224b   :  { %v4759_v47 = vadd.f32 %v1465_v19, %v4530_v29  ;;  %v1462_v35 = vpop.f32.mrb[39].mxu0 }
0x224d   :  { %v1480_v4 = vadd.f32 %v4759_v47, %v1345_v63 }
0x224f   :  { %3982 = vtanh.f32 %v1480_v4  ;;  %v3614_v20 = vmul.f32 -1.442695, %v1480_v4 }
0x2250   :  { %v1588_v48 = vpop.f32.mrb[40].mxu0 }
0x2251   :  { %v3766_v5 = vpop.f32.mrb[41].mxu0  ;;  %3984 = vpow2.f32 %v3614_v20 }
0x2252   :  { %v1591_v49 = vpop.f32.mrb[42].mxu0 }
0x2253   :  { %v3767_v42 = vpop.f32.mrb[43].mxu0 }
0x2259   :  { %v3983_v37 = vpop.eup %3982 }
0x225a   :  { %1490 = vrot.lane.b32.xlu1 %v3983_v37, %s4295_s1 }
0x225b   :  { %v3985_v1 = vpop.eup %3984 }
0x225c   :  { %v1484_v50 = vadd.f32 1.0, %v3985_v1 }
0x225e   :  { %3986 = vrcp.f32 %v1484_v50 }
0x2268   :  { %v3987_v51 = vpop.eup %3986 }
0x2269   :  { %v1488_v58 = vmul.f32 %v3987_v51, %v4714_v59 }
0x22cc   :  { %v1491_v52 = vpop.permute.xlu1 %1490 }
0x22cd   :  { %v1493_v55 = vmul.f32 %v3987_v51, %v1491_v52 }
0x22cf   :  { %1495 = vrot.lane.b32.xlu0 %v1493_v55, %s4295_s1 }
0x2341   :  { %v1496_v53 = vpop.permute.xlu0 %1495 }
0x2342   :  { %v4765_v60 = vadd.f32 %v1496_v53, %v1488_v58 }
0x2344   :  { %3988 = vtanh.f32 %v4765_v60 }
0x234e   :  { %v3989_v54 = vpop.eup %3988 }
0x234f   :  { %1501 = vrot.lane.b32.xlu1 %v3989_v54, %s4295_s1 }
0x23c1   :  { %v1502_v61 = vpop.permute.xlu1 %1501 }
0x23c2   :  { %v1504_v62 = vmul.f32 %v3987_v51, %v1502_v61 }
0x23c4   :  { %v1505_v39 = vpack.c.bf16 %v1504_v62, %v1504_v62 }
0x23c6   :  { %1507 = vrot.lane.b32.xlu0 %v1505_v39, %s4290_s0 }
0x2438   :  { %v1508_v56 = vpop.permute.xlu0 %1507 }
0x2439   :  { %3615 = vmatmul.mubr.msk.bf16.vlgmr.msra.gmra.mrb[36].mxu1 %vm150_vm1, %v1508_v56 }
0x243a   :  { %1627 = vmatpush1.bf16.msra.mxu1 %v4500_v21  ;;  %1658 = vmatprep.mubr.bf16.mxu1 %v4293_v0 }
0x243b   :  { %1628 = vmatprep.subr.bf16.mxu1 %v4502_v22 }
0x243e   :  { %1629 = vmatpush1.bf16.msra.mxu1 %v4507_v23 }
0x243f   :  { %3768 = vmatprep.subr.bf16.mxu1 %v4297_v43 }
0x250c   :  { %v1546_v59 = vpop.f32.mrb[36].mxu1 }
0x250d   :  { %v1553_v63 = vadd.f32 %v1546_v59, %v4488_v57  ;;  %v1548_v3 = vpop.f32.mrb[37].mxu1 }
0x250e   :  { %v1550_v6 = vpop.f32.mrb[38].mxu1 }
0x250f   :  { %v1594_v7 = vadd.f32 %v1588_v48, %v1553_v63  ;;  %v1551_v8 = vpop.f32.mrb[39].mxu1  ;;  %v4820_v63 = vld [vmem:[#allocation10] ss:$8 sps:$4 sm:$0xff]  }
0x2511   :  { %3990 = vtanh.f32 %v1594_v7  ;;  %v3617_v21 = vmul.f32 -1.442695, %v1594_v7  ;;  %v4834_v7 = vld [vmem:[%s5356_s5] sm:$0x3] }
0x2513   :  { %3992 = vpow2.f32 %v3617_v21 }
0x251b   :  { %v3991_v9 = vpop.eup %3990 }
0x251c   :  { %1604 = vrot.lane.b32.xlu1 %v3991_v9, %s4295_s1 }
0x251d   :  { %v3993_v10 = vpop.eup %3992 }
0x251e   :  { %v1598_v11 = vadd.f32 1.0, %v3993_v10 }
0x2520   :  { %3994 = vrcp.f32 %v1598_v11 }
0x252a   :  { %v3995_v22 = vpop.eup %3994 }
0x252b   :  { %v1602_v57 = vmul.f32 %v3995_v22, %v4729_v28  ;;  %v4792_v28 = vld [vmem:[#allocation9 + $0x8] sm:$0xff]  }
0x258e   :  { %v1605_v23 = vpop.permute.xlu1 %1604 }
0x258f   :  { %v1607_v12 = vmul.f32 %v3995_v22, %v1605_v23 }
0x2591   :  { %1609 = vrot.lane.b32.xlu0 %v1607_v12, %s4295_s1 }
0x2603   :  { %v1610_v14 = vpop.permute.xlu0 %1609 }
0x2604   :  { %v4780_v15 = vadd.f32 %v1610_v14, %v1602_v57 }
0x2606   :  { %3996 = vtanh.f32 %v4780_v15 }
0x2610   :  { %v3997_v25 = vpop.eup %3996 }
0x2611   :  { %1615 = vrot.lane.b32.xlu1 %v3997_v25, %s4295_s1 }
0x2683   :  { %v1616_v27 = vpop.permute.xlu1 %1615 }
0x2684   :  { %v1618_v16 = vmul.f32 %v3995_v22, %v1616_v27 }
0x2686   :  { %v1619_v30 = vpack.c.bf16 %v1618_v16, %v1618_v16 }
0x2688   :  { %1621 = vrot.lane.b32.xlu0 %v1619_v30, %s4290_s0 }
0x26fa   :  { %v1622_v24 = vpop.permute.xlu0 %1621 }
0x26fb   :  { %3618 = vmatmul.mubr.msk.bf16.vlgmr.msra.gmra.mrb[40].mxu1 %vm150_vm1, %v1622_v24 }
0x26fc   :  { %3769 = vmatpush3.bf16.msra.mxu1 %v4786_v36  ;;  %3772 = vmatprep.mubr.msk.bf16.mxu1 %vm4298_vm6, %v4297_v43 }
0x26fd   :  { %3770 = vmatprep.subr.bf16.mxu1 %v4297_v43 }
0x2700   :  { %3771 = vmatpush3.bf16.msra.mxu1 %v4792_v28 }
0x2701   :  { %1918 = vmatprep.subr.bf16.mxu1 %v4740_v18 }
0x2703   :  { %3773 = vmatmul.mubr.msk.bf16.vlgmr.msra.gmra.mrb[44].mxu1 %vm150_vm1, %v1622_v24 }
0x2704   :  { %1919 = vmatpush1.bf16.msra.mxu1 %v4744_v26  ;;  %1950 = vmatprep.mubr.bf16.mxu1 %v4293_v0 }
0x2705   :  { %1920 = vmatprep.subr.bf16.mxu1 %v4748_v41 }
0x2708   :  { %1921 = vmatpush1.bf16.msra.mxu1 %v4751_v45 }
0x2709   :  { %2032 = vmatprep.subr.bf16.mxu1 %v4801_v40 }
0x27ce   :  { %v1660_v44 = vpop.f32.mrb[40].mxu1 }
0x27cf   :  { %v1668_v19 = vadd.f32 %v1660_v44, %v4759_v47  ;;  %v4805_v2 = vpop.f32.mrb[41].mxu1 }
0x27d0   :  { %v1664_v35 = vpop.f32.mrb[42].mxu1 }
0x27d1   :  { %v4808_v4 = vadd.f32 %v1668_v19, %v4530_v29  ;;  %v1665_v48 = vpop.f32.mrb[43].mxu1 }
0x27d3   :  { %v1683_v5 = vadd.f32 %v4808_v4, %v1548_v3  ;;  %v4827_v3 = vld [vmem:[#allocation10 + $0x10] ss:$8 sps:$4 sm:$0xff]  }
0x27d5   :  { %3998 = vtanh.f32 %v1683_v5  ;;  %v3619_v50 = vmul.f32 -1.442695, %v1683_v5 }
0x27d6   :  { %v1791_v49 = vpop.f32.mrb[44].mxu1 }
0x27d7   :  { %v3774_v42 = vpop.f32.mrb[45].mxu1  ;;  %4000 = vpow2.f32 %v3619_v50 }
0x27d8   :  { %v1794_v37 = vpop.f32.mrb[46].mxu1 }
0x27d9   :  { %v3775_v20 = vpop.f32.mrb[47].mxu1 }
0x27da   :  { %v4864_v20 = vld [vmem:[%s5358_s7] sm:$0x3] }
0x27df   :  { %v3999_v1 = vpop.eup %3998 }
0x27e0   :  { %1693 = vrot.lane.b32.xlu1 %v3999_v1, %s4295_s1 }
0x27e1   :  { %v4001_v47 = vpop.eup %4000 }
0x27e2   :  { %v1687_v51 = vadd.f32 1.0, %v4001_v47 }
0x27e4   :  { %4002 = vrcp.f32 %v1687_v51 }
0x27ee   :  { %v4003_v52 = vpop.eup %4002 }
0x27ef   :  { %v1691_v58 = vmul.f32 %v4003_v52, %v4765_v60  ;;  %v4824_v60 = vld [vmem:[#allocation10 + $0x14] ss:$8 sps:$4 sm:$0xff]  }
0x2852   :  { %v1694_v55 = vpop.permute.xlu1 %1693 }
0x2853   :  { %v1696_v29 = vmul.f32 %v4003_v52, %v1694_v55 }
0x2855   :  { %1698 = vrot.lane.b32.xlu0 %v1696_v29, %s4295_s1 }
0x28c7   :  { %v1699_v53 = vpop.permute.xlu0 %1698 }
0x28c8   :  { %v4814_v54 = vadd.f32 %v1699_v53, %v1691_v58 }
0x28ca   :  { %4004 = vtanh.f32 %v4814_v54 }
0x28d4   :  { %v4005_v61 = vpop.eup %4004 }
0x28d5   :  { %1704 = vrot.lane.b32.xlu1 %v4005_v61, %s4295_s1 }
0x2947   :  { %v1705_v62 = vpop.permute.xlu1 %1704 }
0x2948   :  { %v1707_v39 = vmul.f32 %v4003_v52, %v1705_v62 }
0x294a   :  { %v1708_v56 = vpack.c.bf16 %v1707_v39, %v1707_v39 }
0x294c   :  { %1710 = vrot.lane.b32.xlu0 %v1708_v56, %s4290_s0 }
0x29be   :  { %v1711_v59 = vpop.permute.xlu0 %1710 }
0x29bf   :  { %3620 = vmatmul.mubr.msk.bf16.vlgmr.msra.gmra.mrb[44].mxu0 %vm150_vm1, %v1711_v59 }
0x29c0   :  { %1830 = vmatpush1.bf16.msra.mxu0 %v4820_v63  ;;  %1861 = vmatprep.mubr.bf16.mxu0 %v4293_v0 }
0x29c1   :  { %1831 = vmatprep.subr.bf16.mxu0 %v4824_v60 }
0x29c4   :  { %1832 = vmatpush1.bf16.msra.mxu0 %v4827_v3 }
0x29c5   :  { %3776 = vmatprep.subr.bf16.mxu0 %v4297_v43 }
0x2a92   :  { %v1749_v6 = vpop.f32.mrb[44].mxu0 }
0x2a93   :  { %v1756_v8 = vadd.f32 %v4834_v7, %v1749_v6  ;;  %v1751_v9 = vpop.f32.mrb[45].mxu0 }
0x2a94   :  { %v1753_v21 = vpop.f32.mrb[46].mxu0 }
0x2a95   :  { %v1797_v10 = vadd.f32 %v1791_v49, %v1756_v8  ;;  %v1754_v11 = vpop.f32.mrb[47].mxu0 }
0x2a97   :  { %4006 = vtanh.f32 %v1797_v10  ;;  %v3622_v23 = vmul.f32 -1.442695, %v1797_v10 }
0x2a99   :  { %4008 = vpow2.f32 %v3622_v23 }
0x2aa1   :  { %v4007_v22 = vpop.eup %4006 }
0x2aa2   :  { %1807 = vrot.lane.b32.xlu1 %v4007_v22, %s4295_s1 }
0x2aa3   :  { %v4009_v12 = vpop.eup %4008 }
0x2aa4   :  { %v1801_v57 = vadd.f32 1.0, %v4009_v12 }
0x2aa6   :  { %4010 = vrcp.f32 %v1801_v57 }
0x2ab0   :  { %v4011_v14 = vpop.eup %4010 }
0x2ab1   :  { %v1805_v16 = vmul.f32 %v4011_v14, %v4780_v15 }
0x2b14   :  { %v1808_v25 = vpop.permute.xlu1 %1807 }
0x2b15   :  { %v1810_v27 = vmul.f32 %v4011_v14, %v1808_v25 }
0x2b17   :  { %1812 = vrot.lane.b32.xlu0 %v1810_v27, %s4295_s1 }
0x2b89   :  { %v1813_v30 = vpop.permute.xlu0 %1812 }
0x2b8a   :  { %v4840_v24 = vadd.f32 %v1813_v30, %v1805_v16 }
0x2b8c   :  { %4012 = vtanh.f32 %v4840_v24 }
0x2b96   :  { %v4013_v44 = vpop.eup %4012 }
0x2b97   :  { %1818 = vrot.lane.b32.xlu1 %v4013_v44, %s4295_s1 }
0x2c09   :  { %v1819_v19 = vpop.permute.xlu1 %1818 }
0x2c0a   :  { %v1821_v35 = vmul.f32 %v4011_v14, %v1819_v19 }
0x2c0c   :  { %v1822_v48 = vpack.c.bf16 %v1821_v35, %v1821_v35 }
0x2c0e   :  { %1824 = vrot.lane.b32.xlu0 %v1822_v48, %s4290_s0 }
0x2c80   :  { %v1825_v5 = vpop.permute.xlu0 %1824 }
0x2c81   :  { %3623 = vmatmul.mubr.msk.bf16.vlgmr.msra.gmra.mrb[48].mxu0 %vm150_vm1, %v1825_v5 }
0x2c82   :  { %3777 = vmatpush3.bf16.msra.mxu0 %v4786_v36  ;;  %3780 = vmatprep.mubr.msk.bf16.mxu0 %vm4298_vm6, %v4297_v43 }
0x2c83   :  { %3778 = vmatprep.subr.bf16.mxu0 %v4297_v43 }
0x2c86   :  { %3779 = vmatpush3.bf16.msra.mxu0 %v4792_v28 }
0x2c87   :  { %2121 = vmatprep.subr.bf16.mxu0 %v4740_v18 }
0x2c89   :  { %3781 = vmatmul.mubr.msk.bf16.vlgmr.msra.gmra.mrb[52].mxu0 %vm150_vm1, %v1825_v5 }
0x2c8a   :  { %2122 = vmatpush1.bf16.msra.mxu0 %v4744_v26  ;;  %2153 = vmatprep.mubr.bf16.mxu0 %v4293_v0 }
0x2c8b   :  { %2123 = vmatprep.subr.bf16.mxu0 %v4748_v41 }
0x2c8e   :  { %2124 = vmatpush1.bf16.msra.mxu0 %v4751_v45 }
0x2c8f   :  { %2235 = vmatprep.subr.bf16.mxu0 %v4801_v40 }
0x2d54   :  { %v1863_v15 = vpop.f32.mrb[48].mxu0 }
0x2d55   :  { %v1871_v49 = vadd.f32 %v1863_v15, %v4808_v4  ;;  %v4859_v42 = vpop.f32.mrb[49].mxu0 }
0x2d56   :  { %v1867_v37 = vpop.f32.mrb[50].mxu0 }
0x2d57   :  { %v4867_v1 = vadd.f32 %v4864_v20, %v1871_v49  ;;  %v1868_v50 = vpop.f32.mrb[51].mxu0 }
0x2d59   :  { %v1886_v47 = vadd.f32 %v4867_v1, %v1751_v9 }
0x2d5b   :  { %4014 = vtanh.f32 %v1886_v47  ;;  %v3624_v58 = vmul.f32 -1.442695, %v1886_v47 }
0x2d5c   :  { %v1994_v51 = vpop.f32.mrb[52].mxu0 }
0x2d5d   :  { %v3782_v52 = vpop.f32.mrb[53].mxu0  ;;  %4016 = vpow2.f32 %v3624_v58 }
0x2d5e   :  { %v1997_v55 = vpop.f32.mrb[54].mxu0 }
0x2d5f   :  { %v3783_v29 = vpop.f32.mrb[55].mxu0 }
0x2d65   :  { %v4015_v4 = vpop.eup %4014 }
0x2d66   :  { %1896 = vrot.lane.b32.xlu1 %v4015_v4, %s4295_s1 }
0x2d67   :  { %v4017_v53 = vpop.eup %4016 }
0x2d68   :  { %v1890_v61 = vadd.f32 1.0, %v4017_v53 }
0x2d6a   :  { %4018 = vrcp.f32 %v1890_v61 }
0x2d74   :  { %v4019_v62 = vpop.eup %4018 }
0x2d75   :  { %v1894_v59 = vmul.f32 %v4019_v62, %v4814_v54 }
0x2dd8   :  { %v1897_v39 = vpop.permute.xlu1 %1896 }
0x2dd9   :  { %v1899_v56 = vmul.f32 %v4019_v62, %v1897_v39 }
0x2ddb   :  { %1901 = vrot.lane.b32.xlu0 %v1899_v56, %s4295_s1 }
0x2e4d   :  { %v1902_v6 = vpop.permute.xlu0 %1901 }
0x2e4e   :  { %v4873_v8 = vadd.f32 %v1902_v6, %v1894_v59 }
0x2e50   :  { %4020 = vtanh.f32 %v4873_v8 }
0x2e5a   :  { %v4021_v9 = vpop.eup %4020 }
0x2e5b   :  { %1907 = vrot.lane.b32.xlu1 %v4021_v9, %s4295_s1 }
0x2ecd   :  { %v1908_v21 = vpop.permute.xlu1 %1907 }
0x2ece   :  { %v1910_v10 = vmul.f32 %v4019_v62, %v1908_v21 }
0x2ed0   :  { %v1911_v11 = vpack.c.bf16 %v1910_v10, %v1910_v10 }
0x2ed2   :  { %1913 = vrot.lane.b32.xlu0 %v1911_v11, %s4290_s0 }
0x2f44   :  { %v1914_v22 = vpop.permute.xlu0 %1913 }
0x2f45   :  { %3625 = vmatmul.mubr.msk.bf16.vlgmr.msra.gmra.mrb[48].mxu1 %vm150_vm1, %v1914_v22 }
0x2f46   :  { %2033 = vmatpush1.bf16.msra.mxu1 %v4820_v63  ;;  %2064 = vmatprep.mubr.bf16.mxu1 %v4293_v0 }
0x2f47   :  { %2034 = vmatprep.subr.bf16.mxu1 %v4824_v60 }
0x2f4a   :  { %2035 = vmatpush1.bf16.msra.mxu1 %v4827_v3 }
0x2f4b   :  { %3784 = vmatprep.subr.bf16.mxu1 %v4297_v43 }
0x3018   :  { %v1952_v54 = vpop.f32.mrb[48].mxu1 }
0x3019   :  { %v1959_v23 = vadd.f32 %v4834_v7, %v1952_v54  ;;  %v1954_v12 = vpop.f32.mrb[49].mxu1 }
0x301a   :  { %v1956_v57 = vpop.f32.mrb[50].mxu1 }
0x301b   :  { %v2000_v14 = vadd.f32 %v1994_v51, %v1959_v23  ;;  %v1957_v25 = vpop.f32.mrb[51].mxu1 }
0x301d   :  { %4022 = vtanh.f32 %v2000_v14  ;;  %v3627_v16 = vmul.f32 -1.442695, %v2000_v14 }
0x301f   :  { %4024 = vpow2.f32 %v3627_v16 }
0x3027   :  { %v4023_v27 = vpop.eup %4022 }
0x3028   :  { %2010 = vrot.lane.b32.xlu1 %v4023_v27, %s4295_s1 }
0x3029   :  { %v4025_v30 = vpop.eup %4024 }
0x302a   :  { %v2004_v44 = vadd.f32 1.0, %v4025_v30 }
0x302c   :  { %4026 = vrcp.f32 %v2004_v44 }
0x3036   :  { %v4027_v19 = vpop.eup %4026 }
0x3037   :  { %v2008_v5 = vmul.f32 %v4027_v19, %v4840_v24 }
0x309a   :  { %v2011_v35 = vpop.permute.xlu1 %2010 }
0x309b   :  { %v2013_v48 = vmul.f32 %v4027_v19, %v2011_v35 }
0x309d   :  { %2015 = vrot.lane.b32.xlu0 %v2013_v48, %s4295_s1 }
0x310f   :  { %v2016_v15 = vpop.permute.xlu0 %2015 }
0x3110   :  { %v4888_v49 = vadd.f32 %v2016_v15, %v2008_v5 }
0x3112   :  { %4028 = vtanh.f32 %v4888_v49 }
0x311c   :  { %v4029_v37 = vpop.eup %4028 }
0x311d   :  { %2021 = vrot.lane.b32.xlu1 %v4029_v37, %s4295_s1 }
0x318f   :  { %v2022_v50 = vpop.permute.xlu1 %2021 }
0x3190   :  { %v2024_v47 = vmul.f32 %v4027_v19, %v2022_v50 }
0x3192   :  { %v2025_v51 = vpack.c.bf16 %v2024_v47, %v2024_v47 }
0x3194   :  { %2027 = vrot.lane.b32.xlu0 %v2025_v51, %s4290_s0 }
0x3206   :  { %v2028_v52 = vpop.permute.xlu0 %2027 }
0x3207   :  { %3628 = vmatmul.mubr.msk.bf16.vlgmr.msra.gmra.mrb[52].mxu1 %vm150_vm1, %v2028_v52 }
0x3208   :  { %3785 = vmatpush3.bf16.msra.mxu1 %v4786_v36  ;;  %3788 = vmatprep.mubr.msk.bf16.mxu1 %vm4298_vm6, %v4297_v43 }
0x3209   :  { %3786 = vmatprep.subr.bf16.mxu1 %v4297_v43 }
0x320c   :  { %3787 = vmatpush3.bf16.msra.mxu1 %v4792_v28 }
0x320d   :  { %2324 = vmatprep.subr.bf16.mxu1 %v4740_v18 }
0x320f   :  { %3789 = vmatmul.mubr.msk.bf16.vlgmr.msra.gmra.mrb[56].mxu1 %vm150_vm1, %v2028_v52 }
0x3210   :  { %2325 = vmatpush1.bf16.msra.mxu1 %v4744_v26  ;;  %2356 = vmatprep.mubr.bf16.mxu1 %v4293_v0 }
0x3211   :  { %2326 = vmatprep.subr.bf16.mxu1 %v4748_v41 }
0x3214   :  { %2327 = vmatpush1.bf16.msra.mxu1 %v4751_v45 }
0x3215   :  { %2438 = vmatprep.subr.bf16.mxu1 %v4801_v40 }
0x32da   :  { %v2066_v24 = vpop.f32.mrb[52].mxu1 }
0x32db   :  { %v2074_v55 = vadd.f32 %v2066_v24, %v4867_v1  ;;  %v4907_v29 = vpop.f32.mrb[53].mxu1 }
0x32dc   :  { %v2070_v4 = vpop.f32.mrb[54].mxu1 }
0x32dd   :  { %v4910_v58 = vadd.f32 %v4864_v20, %v2074_v55  ;;  %v2071_v53 = vpop.f32.mrb[55].mxu1 }
0x32df   :  { %v2089_v61 = vadd.f32 %v4910_v58, %v1954_v12 }
0x32e1   :  { %4030 = vtanh.f32 %v2089_v61  ;;  %v3629_v9 = vmul.f32 -1.442695, %v2089_v61 }
0x32e2   :  { %v2197_v62 = vpop.f32.mrb[56].mxu1 }
0x32e3   :  { %v3790_v39 = vpop.f32.mrb[57].mxu1  ;;  %4032 = vpow2.f32 %v3629_v9 }
0x32e4   :  { %v2200_v56 = vpop.f32.mrb[58].mxu1 }
0x32e5   :  { %v3791_v59 = vpop.f32.mrb[59].mxu1 }
0x32eb   :  { %v4031_v6 = vpop.eup %4030 }
0x32ec   :  { %2099 = vrot.lane.b32.xlu1 %v4031_v6, %s4295_s1 }
0x32ed   :  { %v4033_v1 = vpop.eup %4032 }
0x32ee   :  { %v2093_v21 = vadd.f32 1.0, %v4033_v1 }
0x32f0   :  { %4034 = vrcp.f32 %v2093_v21 }
0x32fa   :  { %v4035_v10 = vpop.eup %4034 }
0x32fb   :  { %v2097_v54 = vmul.f32 %v4035_v10, %v4873_v8 }
0x335e   :  { %v2100_v11 = vpop.permute.xlu1 %2099 }
0x335f   :  { %v2102_v22 = vmul.f32 %v4035_v10, %v2100_v11 }
0x3361   :  { %2104 = vrot.lane.b32.xlu0 %v2102_v22, %s4295_s1 }
0x33d3   :  { %v2105_v23 = vpop.permute.xlu0 %2104 }
0x33d4   :  { %v4916_v12 = vadd.f32 %v2105_v23, %v2097_v54 }
0x33d6   :  { %4036 = vtanh.f32 %v4916_v12 }
0x33e0   :  { %v4037_v57 = vpop.eup %4036 }
0x33e1   :  { %2110 = vrot.lane.b32.xlu1 %v4037_v57, %s4295_s1 }
0x3453   :  { %v2111_v14 = vpop.permute.xlu1 %2110 }
0x3454   :  { %v2113_v25 = vmul.f32 %v4035_v10, %v2111_v14 }
0x3456   :  { %v2114_v27 = vpack.c.bf16 %v2113_v25, %v2113_v25 }
0x3458   :  { %2116 = vrot.lane.b32.xlu0 %v2114_v27, %s4290_s0 }
0x34ca   :  { %v2117_v16 = vpop.permute.xlu0 %2116 }
0x34cb   :  { %3630 = vmatmul.mubr.msk.bf16.vlgmr.msra.gmra.mrb[56].mxu0 %vm150_vm1, %v2117_v16 }
0x34cc   :  { %2236 = vmatpush1.bf16.msra.mxu0 %v4820_v63  ;;  %2267 = vmatprep.mubr.bf16.mxu0 %v4293_v0 }
0x34cd   :  { %2237 = vmatprep.subr.bf16.mxu0 %v4824_v60 }
0x34d0   :  { %2238 = vmatpush1.bf16.msra.mxu0 %v4827_v3 }
0x34d1   :  { %3792 = vmatprep.subr.bf16.mxu0 %v4297_v43 }
0x359e   :  { %v2155_v8 = vpop.f32.mrb[56].mxu0 }
0x359f   :  { %v2162_v30 = vadd.f32 %v4834_v7, %v2155_v8  ;;  %v2157_v44 = vpop.f32.mrb[57].mxu0 }
0x35a0   :  { %v2159_v19 = vpop.f32.mrb[58].mxu0 }
0x35a1   :  { %v2203_v35 = vadd.f32 %v2197_v62, %v2162_v30  ;;  %v2160_v48 = vpop.f32.mrb[59].mxu0 }
0x35a3   :  { %4038 = vtanh.f32 %v2203_v35  ;;  %v3632_v15 = vmul.f32 -1.442695, %v2203_v35 }
0x35a5   :  { %4040 = vpow2.f32 %v3632_v15 }
0x35ad   :  { %v4039_v5 = vpop.eup %4038 }
0x35ae   :  { %2213 = vrot.lane.b32.xlu1 %v4039_v5, %s4295_s1 }
0x35af   :  { %v4041_v37 = vpop.eup %4040 }
0x35b0   :  { %v2207_v50 = vadd.f32 1.0, %v4041_v37 }
0x35b2   :  { %4042 = vrcp.f32 %v2207_v50 }
0x35bc   :  { %v4043_v47 = vpop.eup %4042 }
0x35bd   :  { %v2211_v24 = vmul.f32 %v4043_v47, %v4888_v49 }
0x3620   :  { %v2214_v51 = vpop.permute.xlu1 %2213 }
0x3621   :  { %v2216_v52 = vmul.f32 %v4043_v47, %v2214_v51 }
0x3623   :  { %2218 = vrot.lane.b32.xlu0 %v2216_v52, %s4295_s1 }
0x3695   :  { %v2219_v55 = vpop.permute.xlu0 %2218 }
0x3696   :  { %v4931_v4 = vadd.f32 %v2219_v55, %v2211_v24 }
0x3698   :  { %4044 = vtanh.f32 %v4931_v4 }
0x36a2   :  { %v4045_v53 = vpop.eup %4044 }
0x36a3   :  { %2224 = vrot.lane.b32.xlu1 %v4045_v53, %s4295_s1 }
0x3715   :  { %v2225_v61 = vpop.permute.xlu1 %2224 }
0x3716   :  { %v2227_v62 = vmul.f32 %v4043_v47, %v2225_v61 }
0x3718   :  { %v2228_v39 = vpack.c.bf16 %v2227_v62, %v2227_v62 }
0x371a   :  { %2230 = vrot.lane.b32.xlu0 %v2228_v39, %s4290_s0 }
0x378c   :  { %v2231_v56 = vpop.permute.xlu0 %2230 }
0x378d   :  { %3633 = vmatmul.mubr.msk.bf16.vlgmr.msra.gmra.mrb[60].mxu0 %vm150_vm1, %v2231_v56 }
0x378e   :  { %3793 = vmatpush3.bf16.msra.mxu0 %v4786_v36  ;;  %3796 = vmatprep.mubr.msk.bf16.mxu0 %vm4298_vm6, %v4297_v43 }
0x378f   :  { %3794 = vmatprep.subr.bf16.mxu0 %v4297_v43 }
0x3792   :  { %3795 = vmatpush3.bf16.msra.mxu0 %v4792_v28 }
0x3793   :  { %2527 = vmatprep.subr.bf16.mxu0 %v4740_v18 }
0x3795   :  { %3797 = vmatmul.mubr.msk.bf16.vlgmr.msra.gmra.mrb[64].mxu0 %vm150_vm1, %v2231_v56 }
0x3796   :  { %2528 = vmatpush1.bf16.msra.mxu0 %v4744_v26  ;;  %2559 = vmatprep.mubr.bf16.mxu0 %v4293_v0 }
0x3797   :  { %2529 = vmatprep.subr.bf16.mxu0 %v4748_v41 }
0x379a   :  { %2530 = vmatpush1.bf16.msra.mxu0 %v4751_v45 }
0x379b   :  { %2641 = vmatprep.subr.bf16.mxu0 %v4801_v40 }
0x3860   :  { %v2269_v49 = vpop.f32.mrb[60].mxu0 }
0x3861   :  { %v2277_v59 = vadd.f32 %v2269_v49, %v4910_v58  ;;  %v4950_v6 = vpop.f32.mrb[61].mxu0 }
0x3862   :  { %v2273_v9 = vpop.f32.mrb[62].mxu0 }
0x3863   :  { %v4953_v1 = vadd.f32 %v4864_v20, %v2277_v59  ;;  %v2274_v21 = vpop.f32.mrb[63].mxu0 }
0x3865   :  { %v2292_v10 = vadd.f32 %v4953_v1, %v2157_v44 }
0x3867   :  { %4046 = vtanh.f32 %v2292_v10  ;;  %v3634_v14 = vmul.f32 -1.442695, %v2292_v10 }
0x3868   :  { %v2400_v11 = vpop.f32.mrb[64].mxu0 }
0x3869   :  { %v3798_v22 = vpop.f32.mrb[65].mxu0  ;;  %4048 = vpow2.f32 %v3634_v14 }
0x386a   :  { %v2403_v54 = vpop.f32.mrb[66].mxu0 }
0x386b   :  { %v3799_v23 = vpop.f32.mrb[67].mxu0 }
0x3871   :  { %v4047_v57 = vpop.eup %4046 }
0x3872   :  { %2302 = vrot.lane.b32.xlu1 %v4047_v57, %s4295_s1 }
0x3873   :  { %v4049_v58 = vpop.eup %4048 }
0x3874   :  { %v2296_v25 = vadd.f32 1.0, %v4049_v58 }
0x3876   :  { %4050 = vrcp.f32 %v2296_v25 }
0x3880   :  { %v4051_v27 = vpop.eup %4050 }
0x3881   :  { %v2300_v30 = vmul.f32 %v4051_v27, %v4916_v12 }
0x38e4   :  { %v2303_v16 = vpop.permute.xlu1 %2302 }
0x38e5   :  { %v2305_v8 = vmul.f32 %v4051_v27, %v2303_v16 }
0x38e7   :  { %2307 = vrot.lane.b32.xlu0 %v2305_v8, %s4295_s1 }
0x3959   :  { %v2308_v44 = vpop.permute.xlu0 %2307 }
0x395a   :  { %v4959_v19 = vadd.f32 %v2308_v44, %v2300_v30 }
0x395c   :  { %4052 = vtanh.f32 %v4959_v19 }
0x3966   :  { %v4053_v35 = vpop.eup %4052 }
0x3967   :  { %2313 = vrot.lane.b32.xlu1 %v4053_v35, %s4295_s1 }
0x39d9   :  { %v2314_v48 = vpop.permute.xlu1 %2313 }
0x39da   :  { %v2316_v5 = vmul.f32 %v4051_v27, %v2314_v48 }
0x39dc   :  { %v2317_v15 = vpack.c.bf16 %v2316_v5, %v2316_v5 }
0x39de   :  { %2319 = vrot.lane.b32.xlu0 %v2317_v15, %s4290_s0 }
0x3a50   :  { %v2320_v37 = vpop.permute.xlu0 %2319 }
0x3a51   :  { %3635 = vmatmul.mubr.msk.bf16.vlgmr.msra.gmra.mrb[60].mxu1 %vm150_vm1, %v2320_v37 }
0x3a52   :  { %2439 = vmatpush1.bf16.msra.mxu1 %v4820_v63  ;;  %2470 = vmatprep.mubr.bf16.mxu1 %v4293_v0 }
0x3a53   :  { %2440 = vmatprep.subr.bf16.mxu1 %v4824_v60 }
0x3a56   :  { %2441 = vmatpush1.bf16.msra.mxu1 %v4827_v3 }
0x3a57   :  { %3800 = vmatprep.subr.bf16.mxu1 %v4297_v43 }
0x3b24   :  { %v2358_v12 = vpop.f32.mrb[60].mxu1 }
0x3b25   :  { %v2365_v50 = vadd.f32 %v4834_v7, %v2358_v12  ;;  %v2360_v47 = vpop.f32.mrb[61].mxu1 }
0x3b26   :  { %v2362_v51 = vpop.f32.mrb[62].mxu1 }
0x3b27   :  { %v2406_v52 = vadd.f32 %v2400_v11, %v2365_v50  ;;  %v2363_v24 = vpop.f32.mrb[63].mxu1 }
0x3b29   :  { %4054 = vtanh.f32 %v2406_v52  ;;  %v3637_v53 = vmul.f32 -1.442695, %v2406_v52 }
0x3b2b   :  { %4056 = vpow2.f32 %v3637_v53 }
0x3b33   :  { %v4055_v55 = vpop.eup %4054 }
0x3b34   :  { %2416 = vrot.lane.b32.xlu1 %v4055_v55, %s4295_s1 }
0x3b35   :  { %v4057_v61 = vpop.eup %4056 }
0x3b36   :  { %v2410_v62 = vadd.f32 1.0, %v4057_v61 }
0x3b38   :  { %4058 = vrcp.f32 %v2410_v62 }
0x3b42   :  { %v4059_v39 = vpop.eup %4058 }
0x3b43   :  { %v2414_v59 = vmul.f32 %v4059_v39, %v4931_v4 }
0x3ba6   :  { %v2417_v56 = vpop.permute.xlu1 %2416 }
0x3ba7   :  { %v2419_v49 = vmul.f32 %v4059_v39, %v2417_v56 }
0x3ba9   :  { %2421 = vrot.lane.b32.xlu0 %v2419_v49, %s4295_s1 }
0x3c1b   :  { %v2422_v9 = vpop.permute.xlu0 %2421 }
0x3c1c   :  { %v4974_v21 = vadd.f32 %v2422_v9, %v2414_v59 }
0x3c1e   :  { %4060 = vtanh.f32 %v4974_v21 }
0x3c28   :  { %v4061_v10 = vpop.eup %4060 }
0x3c29   :  { %2427 = vrot.lane.b32.xlu1 %v4061_v10, %s4295_s1 }
0x3c9b   :  { %v2428_v11 = vpop.permute.xlu1 %2427 }
0x3c9c   :  { %v2430_v22 = vmul.f32 %v4059_v39, %v2428_v11 }
0x3c9e   :  { %v2431_v54 = vpack.c.bf16 %v2430_v22, %v2430_v22 }
0x3ca0   :  { %2433 = vrot.lane.b32.xlu0 %v2431_v54, %s4290_s0 }
0x3d12   :  { %v2434_v23 = vpop.permute.xlu0 %2433 }
0x3d13   :  { %3638 = vmatmul.mubr.msk.bf16.vlgmr.msra.gmra.mrb[64].mxu1 %vm150_vm1, %v2434_v23 }
0x3d14   :  { %3801 = vmatpush3.bf16.msra.mxu1 %v4786_v36  ;;  %3804 = vmatprep.mubr.msk.bf16.mxu1 %vm4298_vm6, %v4297_v43 }
0x3d15   :  { %3802 = vmatprep.subr.bf16.mxu1 %v4297_v43 }
0x3d18   :  { %3803 = vmatpush3.bf16.msra.mxu1 %v4792_v28 }
0x3d19   :  { %2730 = vmatprep.subr.bf16.mxu1 %v4740_v18 }
0x3d1b   :  { %3805 = vmatmul.mubr.msk.bf16.vlgmr.msra.gmra.mrb[68].mxu1 %vm150_vm1, %v2434_v23 }
0x3d1c   :  { %2731 = vmatpush1.bf16.msra.mxu1 %v4744_v26  ;;  %2762 = vmatprep.mubr.bf16.mxu1 %v4293_v0 }
0x3d1d   :  { %2732 = vmatprep.subr.bf16.mxu1 %v4748_v41 }
0x3d20   :  { %2733 = vmatpush1.bf16.msra.mxu1 %v4751_v45 }
0x3d21   :  { %2844 = vmatprep.subr.bf16.mxu1 %v4801_v40 }
0x3de6   :  { %v2472_v4 = vpop.f32.mrb[64].mxu1 }
0x3de7   :  { %v2480_v57 = vadd.f32 %v2472_v4, %v4953_v1  ;;  %v4993_v14 = vpop.f32.mrb[65].mxu1 }
0x3de8   :  { %v2476_v58 = vpop.f32.mrb[66].mxu1 }
0x3de9   :  { %v4996_v25 = vadd.f32 %v4864_v20, %v2480_v57  ;;  %v2477_v27 = vpop.f32.mrb[67].mxu1 }
0x3deb   :  { %v2495_v16 = vadd.f32 %v4996_v25, %v2360_v47 }
0x3ded   :  { %4062 = vtanh.f32 %v2495_v16  ;;  %v3639_v5 = vmul.f32 -1.442695, %v2495_v16 }
0x3dee   :  { %v2603_v8 = vpop.f32.mrb[68].mxu1 }
0x3def   :  { %v3806_v30 = vpop.f32.mrb[69].mxu1  ;;  %4064 = vpow2.f32 %v3639_v5 }
0x3df0   :  { %v2606_v44 = vpop.f32.mrb[70].mxu1 }
0x3df1   :  { %v3807_v35 = vpop.f32.mrb[71].mxu1 }
0x3df7   :  { %v4063_v48 = vpop.eup %4062 }
0x3df8   :  { %2505 = vrot.lane.b32.xlu1 %v4063_v48, %s4295_s1 }
0x3df9   :  { %v4065_v1 = vpop.eup %4064 }
0x3dfa   :  { %v2499_v15 = vadd.f32 1.0, %v4065_v1 }
0x3dfc   :  { %4066 = vrcp.f32 %v2499_v15 }
0x3e06   :  { %v4067_v37 = vpop.eup %4066 }
0x3e07   :  { %v2503_v47 = vmul.f32 %v4067_v37, %v4959_v19 }
0x3e6a   :  { %v2506_v12 = vpop.permute.xlu1 %2505 }
0x3e6b   :  { %v2508_v50 = vmul.f32 %v4067_v37, %v2506_v12 }
0x3e6d   :  { %2510 = vrot.lane.b32.xlu0 %v2508_v50, %s4295_s1 }
0x3edf   :  { %v2511_v51 = vpop.permute.xlu0 %2510 }
0x3ee0   :  { %v5002_v52 = vadd.f32 %v2511_v51, %v2503_v47 }
0x3ee2   :  { %4068 = vtanh.f32 %v5002_v52 }
0x3eec   :  { %v4069_v24 = vpop.eup %4068 }
0x3eed   :  { %2516 = vrot.lane.b32.xlu1 %v4069_v24, %s4295_s1 }
0x3f5f   :  { %v2517_v55 = vpop.permute.xlu1 %2516 }
0x3f60   :  { %v2519_v53 = vmul.f32 %v4067_v37, %v2517_v55 }
0x3f62   :  { %v2520_v61 = vpack.c.bf16 %v2519_v53, %v2519_v53 }
0x3f64   :  { %2522 = vrot.lane.b32.xlu0 %v2520_v61, %s4290_s0 }
0x3fd6   :  { %v2523_v62 = vpop.permute.xlu0 %2522 }
0x3fd7   :  { %3640 = vmatmul.mubr.msk.bf16.vlgmr.msra.gmra.mrb[68].mxu0 %vm150_vm1, %v2523_v62 }
0x3fd8   :  { %2642 = vmatpush1.bf16.msra.mxu0 %v4820_v63  ;;  %2673 = vmatprep.mubr.bf16.mxu0 %v4293_v0 }
0x3fd9   :  { %2643 = vmatprep.subr.bf16.mxu0 %v4824_v60 }
0x3fdc   :  { %2644 = vmatpush1.bf16.msra.mxu0 %v4827_v3 }
0x3fdd   :  { %3808 = vmatprep.subr.bf16.mxu0 %v4297_v43 }
0x40aa   :  { %v2561_v19 = vpop.f32.mrb[68].mxu0 }
0x40ab   :  { %v2568_v39 = vadd.f32 %v4834_v7, %v2561_v19  ;;  %v2563_v56 = vpop.f32.mrb[69].mxu0 }
0x40ac   :  { %v2565_v49 = vpop.f32.mrb[70].mxu0 }
0x40ad   :  { %v2609_v59 = vadd.f32 %v2603_v8, %v2568_v39  ;;  %v2566_v9 = vpop.f32.mrb[71].mxu0 }
0x40af   :  { %4070 = vtanh.f32 %v2609_v59  ;;  %v3642_v11 = vmul.f32 -1.442695, %v2609_v59 }
0x40b1   :  { %4072 = vpow2.f32 %v3642_v11 }
0x40b9   :  { %v4071_v10 = vpop.eup %4070 }
0x40ba   :  { %2619 = vrot.lane.b32.xlu1 %v4071_v10, %s4295_s1 }
0x40bb   :  { %v4073_v22 = vpop.eup %4072 }
0x40bc   :  { %v2613_v54 = vadd.f32 1.0, %v4073_v22 }
0x40be   :  { %4074 = vrcp.f32 %v2613_v54 }
0x40c8   :  { %v4075_v23 = vpop.eup %4074 }
0x40c9   :  { %v2617_v58 = vmul.f32 %v4075_v23, %v4974_v21 }
0x412c   :  { %v2620_v4 = vpop.permute.xlu1 %2619 }
0x412d   :  { %v2622_v57 = vmul.f32 %v4075_v23, %v2620_v4 }
0x412f   :  { %2624 = vrot.lane.b32.xlu0 %v2622_v57, %s4295_s1 }
0x41a1   :  { %v2625_v27 = vpop.permute.xlu0 %2624 }
0x41a2   :  { %v5017_v16 = vadd.f32 %v2625_v27, %v2617_v58 }
0x41a4   :  { %4076 = vtanh.f32 %v5017_v16 }
0x41ae   :  { %v4077_v8 = vpop.eup %4076 }
0x41af   :  { %2630 = vrot.lane.b32.xlu1 %v4077_v8, %s4295_s1 }
0x4221   :  { %v2631_v30 = vpop.permute.xlu1 %2630 }
0x4222   :  { %v2633_v44 = vmul.f32 %v4075_v23, %v2631_v30 }
0x4224   :  { %v2634_v35 = vpack.c.bf16 %v2633_v44, %v2633_v44 }
0x4226   :  { %2636 = vrot.lane.b32.xlu0 %v2634_v35, %s4290_s0 }
0x4298   :  { %v2637_v48 = vpop.permute.xlu0 %2636 }
0x4299   :  { %3643 = vmatmul.mubr.msk.bf16.vlgmr.msra.gmra.mrb[72].mxu0 %vm150_vm1, %v2637_v48 }
0x429a   :  { %3809 = vmatpush3.bf16.msra.mxu0 %v4786_v36  ;;  %3812 = vmatprep.mubr.msk.bf16.mxu0 %vm4298_vm6, %v4297_v43 }
0x429b   :  { %3810 = vmatprep.subr.bf16.mxu0 %v4297_v43 }
0x429e   :  { %3811 = vmatpush3.bf16.msra.mxu0 %v4792_v28 }
0x429f   :  { %2933 = vmatprep.subr.bf16.mxu0 %v4740_v18 }
0x42a1   :  { %3813 = vmatmul.mubr.msk.bf16.vlgmr.msra.gmra.mrb[76].mxu0 %vm150_vm1, %v2637_v48 }
0x42a2   :  { %2934 = vmatpush1.bf16.msra.mxu0 %v4744_v26  ;;  %2965 = vmatprep.mubr.bf16.mxu0 %v4293_v0 }
0x42a3   :  { %2935 = vmatprep.subr.bf16.mxu0 %v4748_v41 }
0x42a6   :  { %2936 = vmatpush1.bf16.msra.mxu0 %v4751_v45 }
0x42a7   :  { %3047 = vmatprep.subr.bf16.mxu0 %v4801_v40 }
0x436c   :  { %v2675_v21 = vpop.f32.mrb[72].mxu0 }
0x436d   :  { %v2683_v5 = vadd.f32 %v2675_v21, %v4996_v25  ;;  %v5036_v1 = vpop.f32.mrb[73].mxu0 }
0x436e   :  { %v2679_v15 = vpop.f32.mrb[74].mxu0 }
0x436f   :  { %v5039_v18 = vadd.f32 %v4864_v20, %v2683_v5  ;;  %v2680_v37 = vpop.f32.mrb[75].mxu0 }
0x4371   :  { %v2698_v26 = vadd.f32 %v5039_v18, %v2563_v56 }
0x4373   :  { %4078 = vtanh.f32 %v2698_v26  ;;  %v3644_v51 = vmul.f32 -1.442695, %v2698_v26 }
0x4374   :  { %v2806_v12 = vpop.f32.mrb[76].mxu0 }
0x4375   :  { %v3814_v50 = vpop.f32.mrb[77].mxu0  ;;  %4080 = vpow2.f32 %v3644_v51 }
0x4376   :  { %v2809_v41 = vpop.f32.mrb[78].mxu0 }
0x4377   :  { %v3815_v47 = vpop.f32.mrb[79].mxu0  ;;  %v5075_v41 = vld [vmem:[#allocation7] ss:$8 sps:$4 sm:$0xff]  }
0x4378   :  { %v5082_v47 = vld [vmem:[#allocation7 + $0x10] ss:$8 sps:$4 sm:$0xff]  }
0x437d   :  { %v4079_v45 = vpop.eup %4078 }
0x437e   :  { %2708 = vrot.lane.b32.xlu1 %v4079_v45, %s4295_s1 }
0x437f   :  { %v4081_v25 = vpop.eup %4080 }
0x4380   :  { %v2702_v24 = vadd.f32 1.0, %v4081_v25 }
0x4382   :  { %4082 = vrcp.f32 %v2702_v24 }
0x438c   :  { %v4083_v55 = vpop.eup %4082 }
0x438d   :  { %v2706_v62 = vmul.f32 %v4083_v55, %v5002_v52 }
0x43f0   :  { %v2709_v53 = vpop.permute.xlu1 %2708 }
0x43f1   :  { %v2711_v61 = vmul.f32 %v4083_v55, %v2709_v53 }
0x43f3   :  { %2713 = vrot.lane.b32.xlu0 %v2711_v61, %s4295_s1 }
0x4465   :  { %v2714_v19 = vpop.permute.xlu0 %2713 }
0x4466   :  { %v5045_v39 = vadd.f32 %v2714_v19, %v2706_v62 }
0x4468   :  { %4084 = vtanh.f32 %v5045_v39 }
0x4472   :  { %v4085_v56 = vpop.eup %4084 }
0x4473   :  { %2719 = vrot.lane.b32.xlu1 %v4085_v56, %s4295_s1 }
0x44e5   :  { %v2720_v49 = vpop.permute.xlu1 %2719 }
0x44e6   :  { %v2722_v59 = vmul.f32 %v4083_v55, %v2720_v49 }
0x44e8   :  { %v2723_v9 = vpack.c.bf16 %v2722_v59, %v2722_v59 }
0x44ea   :  { %2725 = vrot.lane.b32.xlu0 %v2723_v9, %s4290_s0 }
0x455c   :  { %v2726_v10 = vpop.permute.xlu0 %2725 }
0x455d   :  { %3645 = vmatmul.mubr.msk.bf16.vlgmr.msra.gmra.mrb[72].mxu1 %vm150_vm1, %v2726_v10 }
0x455e   :  { %2845 = vmatpush1.bf16.msra.mxu1 %v4820_v63  ;;  %2876 = vmatprep.mubr.bf16.mxu1 %v4293_v0 }
0x455f   :  { %2846 = vmatprep.subr.bf16.mxu1 %v4824_v60 }
0x4562   :  { %2847 = vmatpush1.bf16.msra.mxu1 %v4827_v3 }
0x4563   :  { %3816 = vmatprep.subr.bf16.mxu1 %v4297_v43 }
0x4630   :  { %v2764_v52 = vpop.f32.mrb[72].mxu1 }
0x4631   :  { %v2771_v11 = vadd.f32 %v4834_v7, %v2764_v52  ;;  %v2766_v22 = vpop.f32.mrb[73].mxu1 }
0x4632   :  { %v2768_v54 = vpop.f32.mrb[74].mxu1 }
0x4633   :  { %v2812_v23 = vadd.f32 %v2806_v12, %v2771_v11  ;;  %v2769_v4 = vpop.f32.mrb[75].mxu1 }
0x4635   :  { %4086 = vtanh.f32 %v2812_v23  ;;  %v3647_v58 = vmul.f32 -1.442695, %v2812_v23 }
0x4637   :  { %4088 = vpow2.f32 %v3647_v58 }
0x463f   :  { %v4087_v57 = vpop.eup %4086 }
0x4640   :  { %2822 = vrot.lane.b32.xlu1 %v4087_v57, %s4295_s1 }
0x4641   :  { %v4089_v27 = vpop.eup %4088 }
0x4642   :  { %v2816_v8 = vadd.f32 1.0, %v4089_v27 }
0x4644   :  { %4090 = vrcp.f32 %v2816_v8 }
0x464e   :  { %v4091_v30 = vpop.eup %4090 }
0x464f   :  { %v2820_v48 = vmul.f32 %v4091_v30, %v5017_v16  ;;  %v5071_v16 = vld [vmem:[#allocation7 + $0x4] ss:$8 sps:$4 sm:$0xff]  }
0x46b2   :  { %v2823_v44 = vpop.permute.xlu1 %2822 }
0x46b3   :  { %v2825_v35 = vmul.f32 %v4091_v30, %v2823_v44 }
0x46b5   :  { %2827 = vrot.lane.b32.xlu0 %v2825_v35, %s4295_s1 }
0x4727   :  { %v2828_v21 = vpop.permute.xlu0 %2827 }
0x4728   :  { %v5060_v5 = vadd.f32 %v2828_v21, %v2820_v48 }
0x472a   :  { %4092 = vtanh.f32 %v5060_v5 }
0x4734   :  { %v4093_v15 = vpop.eup %4092 }
0x4735   :  { %2833 = vrot.lane.b32.xlu1 %v4093_v15, %s4295_s1 }
0x47a7   :  { %v2834_v37 = vpop.permute.xlu1 %2833 }
0x47a8   :  { %v2836_v26 = vmul.f32 %v4091_v30, %v2834_v37 }
0x47aa   :  { %v2837_v12 = vpack.c.bf16 %v2836_v26, %v2836_v26 }
0x47ac   :  { %2839 = vrot.lane.b32.xlu0 %v2837_v12, %s4290_s0 }
0x481e   :  { %v2840_v50 = vpop.permute.xlu0 %2839 }
0x481f   :  { %3648 = vmatmul.mubr.msk.bf16.vlgmr.msra.gmra.mrb[76].mxu1 %vm150_vm1, %v2840_v50 }
0x4820   :  { %3817 = vmatpush3.bf16.msra.mxu1 %v4786_v36  ;;  %3820 = vmatprep.mubr.msk.bf16.mxu1 %vm4298_vm6, %v4297_v43  ;;  %v5079_v36 = vld [vmem:[#allocation7 + $0x14] ss:$8 sps:$4 sm:$0xff]  }
0x4821   :  { %3818 = vmatprep.subr.bf16.mxu1 %v4297_v43 }
0x4824   :  { %3819 = vmatpush3.bf16.msra.mxu1 %v4792_v28 }
0x4825   :  { %3136 = vmatprep.subr.bf16.mxu1 %v5071_v16 }
0x4827   :  { %3821 = vmatmul.mubr.msk.bf16.vlgmr.msra.gmra.mrb[80].mxu1 %vm150_vm1, %v2840_v50 }
0x4828   :  { %3137 = vmatpush1.bf16.msra.mxu1 %v5075_v41  ;;  %3168 = vmatprep.mubr.bf16.mxu1 %v4293_v0 }
0x4829   :  { %3138 = vmatprep.subr.bf16.mxu1 %v5079_v36 }
0x482c   :  { %3139 = vmatpush1.bf16.msra.mxu1 %v5082_v47 }
0x482d   :  { %3250 = vmatprep.subr.bf16.mxu1 %v4801_v40 }
0x48f2   :  { %v2878_v28 = vpop.f32.mrb[76].mxu1 }
0x48f3   :  { %v2886_v45 = vadd.f32 %v2878_v28, %v5039_v18  ;;  %v5087_v51 = vpop.f32.mrb[77].mxu1 }
0x48f4   :  { %v2882_v25 = vpop.f32.mrb[78].mxu1 }
0x48f5   :  { %v5090_v24 = vadd.f32 %v4864_v20, %v2886_v45  ;;  %v2883_v55 = vpop.f32.mrb[79].mxu1 }
0x48f7   :  { %v2901_v53 = vadd.f32 %v5090_v24, %v2766_v22 }
0x48f9   :  { %4094 = vtanh.f32 %v2901_v53  ;;  %v3649_v40 = vmul.f32 -1.442695, %v2901_v53 }
0x48fa   :  { %v3009_v61 = vpop.f32.mrb[80].mxu1 }
0x48fb   :  { %v3822_v62 = vpop.f32.mrb[81].mxu1  ;;  %4096 = vpow2.f32 %v3649_v40 }
0x48fc   :  { %v3012_v19 = vpop.f32.mrb[82].mxu1 }
0x48fd   :  { %v3823_v56 = vpop.f32.mrb[83].mxu1 }
0x4903   :  { %v4095_v49 = vpop.eup %4094 }
0x4904   :  { %2911 = vrot.lane.b32.xlu1 %v4095_v49, %s4295_s1 }
0x4905   :  { %v4097_v18 = vpop.eup %4096 }
0x4906   :  { %v2905_v59 = vadd.f32 1.0, %v4097_v18 }
0x4908   :  { %4098 = vrcp.f32 %v2905_v59 }
0x4912   :  { %v4099_v9 = vpop.eup %4098 }
0x4913   :  { %v2909_v11 = vmul.f32 %v4099_v9, %v5045_v39 }
0x4976   :  { %v2912_v10 = vpop.permute.xlu1 %2911 }
0x4977   :  { %v2914_v52 = vmul.f32 %v4099_v9, %v2912_v10 }
0x4979   :  { %2916 = vrot.lane.b32.xlu0 %v2914_v52, %s4295_s1 }
0x49eb   :  { %v2917_v22 = vpop.permute.xlu0 %2916 }
0x49ec   :  { %v5096_v54 = vadd.f32 %v2917_v22, %v2909_v11 }
0x49ee   :  { %4100 = vtanh.f32 %v5096_v54 }
0x49f8   :  { %v4101_v23 = vpop.eup %4100 }
0x49f9   :  { %2922 = vrot.lane.b32.xlu1 %v4101_v23, %s4295_s1 }
0x4a6b   :  { %v2923_v4 = vpop.permute.xlu1 %2922 }
0x4a6c   :  { %v2925_v57 = vmul.f32 %v4099_v9, %v2923_v4 }
0x4a6e   :  { %v2926_v58 = vpack.c.bf16 %v2925_v57, %v2925_v57 }
0x4a70   :  { %2928 = vrot.lane.b32.xlu0 %v2926_v58, %s4290_s0 }
0x4ae2   :  { %v2929_v27 = vpop.permute.xlu0 %2928 }
0x4ae3   :  { %3650 = vmatmul.mubr.msk.bf16.vlgmr.msra.gmra.mrb[80].mxu0 %vm150_vm1, %v2929_v27 }
0x4ae4   :  { %3048 = vmatpush1.bf16.msra.mxu0 %v4820_v63  ;;  %3079 = vmatprep.mubr.bf16.mxu0 %v4293_v0 }
0x4ae5   :  { %3049 = vmatprep.subr.bf16.mxu0 %v4824_v60 }
0x4ae8   :  { %3050 = vmatpush1.bf16.msra.mxu0 %v4827_v3 }
0x4ae9   :  { %3824 = vmatprep.subr.bf16.mxu0 %v4297_v43 }
0x4bb6   :  { %v2967_v39 = vpop.f32.mrb[80].mxu0 }
0x4bb7   :  { %v2974_v8 = vadd.f32 %v4834_v7, %v2967_v39  ;;  %v2969_v30 = vpop.f32.mrb[81].mxu0 }
0x4bb8   :  { %v2971_v44 = vpop.f32.mrb[82].mxu0 }
0x4bb9   :  { %v3015_v35 = vadd.f32 %v3009_v61, %v2974_v8  ;;  %v2972_v48 = vpop.f32.mrb[83].mxu0  ;;  %v5117_v61 = vld [vmem:[#allocation9] sm:$0xff]   ;;  %v4160_v44 = vld [vmem:[#allocation10] ss:$8 sps:$4 sm:$0xff]  }
0x4bba   :  { %v4163_v48 = vld [vmem:[#allocation10 + $0x4] ss:$8 sps:$4 sm:$0xff]  }
0x4bbb   :  { %4102 = vtanh.f32 %v3015_v35  ;;  %v3652_v63 = vmul.f32 -1.442695, %v3015_v35  ;;  %v4162_v35 = vld [vmem:[#allocation10 + $0x10] ss:$8 sps:$4 sm:$0xff]  }
0x4bbd   :  { %4104 = vpow2.f32 %v3652_v63  ;;  %v5153_v63 = vld [vmem:[%s5356_s5] sm:$0x3] }
0x4bc5   :  { %v4103_v21 = vpop.eup %4102 }
0x4bc6   :  { %3025 = vrot.lane.b32.xlu1 %v4103_v21, %s4295_s1 }
0x4bc7   :  { %v4105_v15 = vpop.eup %4104 }
0x4bc8   :  { %v3019_v37 = vadd.f32 1.0, %v4105_v15 }
0x4bca   :  { %4106 = vrcp.f32 %v3019_v37 }
0x4bd4   :  { %v4107_v60 = vpop.eup %4106 }
0x4bd5   :  { %v3023_v7 = vmul.f32 %v4107_v60, %v5060_v5  ;;  %v5123_v5 = vld [vmem:[#allocation9 + $0x8] sm:$0xff]  }
0x4c38   :  { %v3026_v3 = vpop.permute.xlu1 %3025 }
0x4c39   :  { %v3028_v26 = vmul.f32 %v4107_v60, %v3026_v3 }
0x4c3b   :  { %3030 = vrot.lane.b32.xlu0 %v3028_v26, %s4295_s1 }
0x4cad   :  { %v3031_v12 = vpop.permute.xlu0 %3030 }
0x4cae   :  { %v5111_v50 = vadd.f32 %v3031_v12, %v3023_v7 }
0x4cb0   :  { %4108 = vtanh.f32 %v5111_v50 }
0x4cba   :  { %v4109_v28 = vpop.eup %4108 }
0x4cbb   :  { %3036 = vrot.lane.b32.xlu1 %v4109_v28, %s4295_s1 }
0x4d2d   :  { %v3037_v45 = vpop.permute.xlu1 %3036 }
0x4d2e   :  { %v3039_v25 = vmul.f32 %v4107_v60, %v3037_v45 }
0x4d30   :  { %v3040_v55 = vpack.c.bf16 %v3039_v25, %v3039_v25 }
0x4d32   :  { %3042 = vrot.lane.b32.xlu0 %v3040_v55, %s4290_s0 }
0x4da4   :  { %v3043_v53 = vpop.permute.xlu0 %3042 }
0x4da5   :  { %3653 = vmatmul.mubr.msk.bf16.vlgmr.msra.gmra.mrb[84].mxu0 %vm150_vm1, %v3043_v53 }
0x4da6   :  { %3825 = vmatpush3.bf16.msra.mxu0 %v5117_v61  ;;  %3828 = vmatprep.mubr.msk.bf16.mxu0 %vm4298_vm6, %v4297_v43 }
0x4da7   :  { %3826 = vmatprep.subr.bf16.mxu0 %v4297_v43 }
0x4daa   :  { %3827 = vmatpush3.bf16.msra.mxu0 %v5123_v5 }
0x4dab   :  { %3339 = vmatprep.subr.bf16.mxu0 %v5071_v16 }
0x4dad   :  { %3829 = vmatmul.mubr.msk.bf16.vlgmr.msra.gmra.mrb[88].mxu0 %vm150_vm1, %v3043_v53 }
0x4dae   :  { %3340 = vmatpush1.bf16.msra.mxu0 %v5075_v41  ;;  %3371 = vmatprep.mubr.bf16.mxu0 %v4293_v0 }
0x4daf   :  { %3341 = vmatprep.subr.bf16.mxu0 %v5079_v36 }
0x4db2   :  { %3342 = vmatpush1.bf16.msra.mxu0 %v5082_v47 }
0x4db3   :  { %3832 = vmatprep.subr.bf16.mxu0 %v4297_v43 }
0x4e78   :  { %v3081_v62 = vpop.f32.mrb[84].mxu0 }
0x4e79   :  { %v3089_v19 = vadd.f32 %v3081_v62, %v5090_v24  ;;  %v5134_v56 = vpop.f32.mrb[85].mxu0 }
0x4e7a   :  { %v3085_v49 = vpop.f32.mrb[86].mxu0 }
0x4e7b   :  { %v5137_v16 = vadd.f32 %v4864_v20, %v3089_v19  ;;  %v3086_v40 = vpop.f32.mrb[87].mxu0 }
0x4e7d   :  { %v3104_v41 = vadd.f32 %v5137_v16, %v2969_v30 }
0x4e7f   :  { %4110 = vtanh.f32 %v3104_v41  ;;  %v3654_v10 = vmul.f32 -1.442695, %v3104_v41 }
0x4e80   :  { %v3212_v18 = vpop.f32.mrb[88].mxu0 }
0x4e81   :  { %v3830_v59 = vpop.f32.mrb[89].mxu0  ;;  %4112 = vpow2.f32 %v3654_v10 }
0x4e82   :  { %v3215_v36 = vpop.f32.mrb[90].mxu0 }
0x4e83   :  { %v3831_v9 = vpop.f32.mrb[91].mxu0 }
0x4e89   :  { %v4111_v47 = vpop.eup %4110 }
0x4e8a   :  { %3114 = vrot.lane.b32.xlu1 %v4111_v47, %s4295_s1 }
0x4e8b   :  { %v4113_v24 = vpop.eup %4112 }
0x4e8c   :  { %v3108_v52 = vadd.f32 1.0, %v4113_v24  ;;  %v5172_v24 = vld [vmem:[%s5358_s7] sm:$0x3] }
0x4e8e   :  { %4114 = vrcp.f32 %v3108_v52 }
0x4e98   :  { %v4115_v11 = vpop.eup %4114 }
0x4e99   :  { %v3112_v23 = vmul.f32 %v4115_v11, %v5096_v54  ;;  %v4161_v54 = vld [vmem:[#allocation10 + $0x14] ss:$8 sps:$4 sm:$0xff]  }
0x4efc   :  { %v3115_v22 = vpop.permute.xlu1 %3114 }
0x4efd   :  { %v3117_v20 = vmul.f32 %v4115_v11, %v3115_v22 }
0x4eff   :  { %3119 = vrot.lane.b32.xlu0 %v3117_v20, %s4295_s1 }
0x4f71   :  { %v3120_v4 = vpop.permute.xlu0 %3119 }
0x4f72   :  { %v5143_v57 = vadd.f32 %v3120_v4, %v3112_v23 }
0x4f74   :  { %4116 = vtanh.f32 %v5143_v57 }
0x4f7e   :  { %v4117_v58 = vpop.eup %4116 }
0x4f7f   :  { %3125 = vrot.lane.b32.xlu1 %v4117_v58, %s4295_s1 }
0x4ff1   :  { %v3126_v27 = vpop.permute.xlu1 %3125 }
0x4ff2   :  { %v3128_v39 = vmul.f32 %v4115_v11, %v3126_v27 }
0x4ff4   :  { %v3129_v8 = vpack.c.bf16 %v3128_v39, %v3128_v39 }
0x4ff6   :  { %3131 = vrot.lane.b32.xlu0 %v3129_v8, %s4290_s0 }
0x5068   :  { %v3132_v30 = vpop.permute.xlu0 %3131 }
0x5069   :  { %3655 = vmatmul.mubr.msk.bf16.vlgmr.msra.gmra.mrb[84].mxu1 %vm150_vm1, %v3132_v30 }
0x506a   :  { %3251 = vmatpush1.bf16.msra.mxu1 %v4160_v44  ;;  %3282 = vmatprep.mubr.bf16.mxu1 %v4293_v0 }
0x506b   :  { %3252 = vmatprep.subr.bf16.mxu1 %v4161_v54 }
0x506e   :  { %3253 = vmatpush1.bf16.msra.mxu1 %v4162_v35 }
0x506f   :  { %3452 = vmatprep.subr.bf16.mxu1 %v4163_v48 }
0x513c   :  { %v3170_v21 = vpop.f32.mrb[84].mxu1 }
0x513d   :  { %v3177_v15 = vadd.f32 %v5153_v63, %v3170_v21  ;;  %v3172_v37 = vpop.f32.mrb[85].mxu1 }
0x513e   :  { %v3174_v60 = vpop.f32.mrb[86].mxu1 }
0x513f   :  { %v3218_v3 = vadd.f32 %v3212_v18, %v3177_v15  ;;  %v3175_v26 = vpop.f32.mrb[87].mxu1 }
0x5141   :  { %4118 = vtanh.f32 %v3218_v3  ;;  %v3657_v12 = vmul.f32 -1.442695, %v3218_v3 }
0x5143   :  { %4120 = vpow2.f32 %v3657_v12 }
0x514b   :  { %v4119_v7 = vpop.eup %4118 }
0x514c   :  { %3228 = vrot.lane.b32.xlu1 %v4119_v7, %s4295_s1 }
0x514d   :  { %v4121_v28 = vpop.eup %4120 }
0x514e   :  { %v3222_v45 = vadd.f32 1.0, %v4121_v28 }
0x5150   :  { %4122 = vrcp.f32 %v3222_v45 }
0x515a   :  { %v4123_v25 = vpop.eup %4122 }
0x515b   :  { %v3226_v62 = vmul.f32 %v4123_v25, %v5111_v50 }
0x51be   :  { %v3229_v55 = vpop.permute.xlu1 %3228 }
0x51bf   :  { %v3231_v53 = vmul.f32 %v4123_v25, %v3229_v55 }
0x51c1   :  { %3233 = vrot.lane.b32.xlu0 %v3231_v53, %s4295_s1  ;;  %v4166_v53 = vld [vmem:[#allocation2] sm:$0xf] }
0x5233   :  { %v3234_v19 = vpop.permute.xlu0 %3233 }
0x5234   :  { %v5159_v49 = vadd.f32 %v3234_v19, %v3226_v62  ;;  %v5208_v62 = vld [vmem:[%s5357_s6] sm:$0x3]  ;;  %s4300_s6 = smov 16  }
0x5235   :  { %v855_v19 = vadd.f32 %v4619_v33, %v5208_v62  ;;  %v2479_v33 = vadd.f32 %v4993_v14, %v5208_v62 }
0x5236   :  { %4124 = vtanh.f32 %v5159_v49 }
0x5240   :  { %v4125_v40 = vpop.eup %4124 }
0x5241   :  { %3239 = vrot.lane.b32.xlu1 %v4125_v40, %s4295_s1  ;;  %v1667_v40 = vadd.f32 %v4805_v2, %v5208_v62 }
0x52b3   :  { %v3240_v41 = vpop.permute.xlu1 %3239 }
0x52b4   :  { %v3242_v18 = vmul.f32 %v4123_v25, %v3240_v41  ;;  %v2073_v41 = vadd.f32 %v4907_v29, %v5208_v62  ;;  %v448_v29 = vadd.f32 %v4533_v32, %v5208_v62 }
0x52b6   :  { %v3243_v59 = vpack.c.bf16 %v3242_v18, %v3242_v18 }
0x52b8   :  { %3245 = vrot.lane.b32.xlu0 %v3243_v59, %s4290_s0  ;;  %v652_v59 = vadd.f32 %v4576_v31, %v5208_v62 }
0x532a   :  { %v3246_v36 = vpop.permute.xlu0 %3245 }
0x532b   :  { %3658 = vmatmul.mubr.msk.bf16.vlgmr.msra.gmra.mrb[88].mxu1 %vm150_vm1, %v3246_v36 }
0x532c   :  { %3453 = vmatpush1.bf16.msra.mxu1 %v4160_v44  ;;  %3484 = vmatprep.mubr.bf16.mxu1 %v4293_v0 }
0x532d   :  { %3454 = vmatprep.subr.bf16.mxu1 %v4161_v54 }
0x5330   :  { %3455 = vmatpush1.bf16.msra.mxu1 %v4162_v35 }
0x53fe   :  { %v3284_v50 = vpop.f32.mrb[88].mxu1 }
0x53ff   :  { %v3292_v9 = vadd.f32 %v3284_v50, %v5137_v16  ;;  %v5167_v47 = vpop.f32.mrb[89].mxu1  ;;  %v451_v50 = vmul.f32 0.01, %v448_v29 }
0x5400   :  { %v3288_v10 = vpop.f32.mrb[90].mxu1  ;;  %v5230_v2 = vadd.f32 %v5167_v47, %v5208_v62  ;;  %v655_v47 = vmul.f32 0.01, %v652_v59 }
0x5401   :  { %v5175_v52 = vadd.f32 %v5172_v24, %v3292_v9  ;;  %v3289_v11 = vpop.f32.mrb[91].mxu1  ;;  %v1058_v10 = vadd.f32 %v4662_v38, %v5208_v62 }
0x5403   :  { %v3307_v22 = vadd.f32 %v5175_v52, %v3172_v37  ;;  %v1061_v31 = vmul.f32 0.01, %v1058_v10 }
0x5405   :  { %4126 = vtanh.f32 %v3307_v22  ;;  %v3659_v20 = vmul.f32 -1.442695, %v3307_v22  ;;  %v858_v22 = vmul.f32 0.01, %v855_v19 }
0x5407   :  { %4128 = vpow2.f32 %v3659_v20  ;;  %v1464_v20 = vadd.f32 %v4756_v34, %v5208_v62  ;;  %v1670_v34 = vmul.f32 0.01, %v1667_v40 }
0x5409   :  { %v1467_v38 = vmul.f32 0.01, %v1464_v20 }
0x540f   :  { %v4127_v0 = vpop.eup %4126 }
0x5410   :  { %3317 = vrot.lane.b32.xlu1 %v4127_v0, %s4295_s1 }
0x5411   :  { %v4129_v16 = vpop.eup %4128 }
0x5412   :  { %v3311_v23 = vadd.f32 1.0, %v4129_v16 }
0x5414   :  { %4130 = vrcp.f32 %v3311_v23 }
0x541e   :  { %v4131_v4 = vpop.eup %4130 }
0x541f   :  { %v3315_v39 = vmul.f32 %v4131_v4, %v5143_v57 }
0x5482   :  { %v3318_v58 = vpop.permute.xlu1 %3317 }
0x5483   :  { %v3320_v27 = vmul.f32 %v4131_v4, %v3318_v58 }
0x5485   :  { %3322 = vrot.lane.b32.xlu0 %v3320_v27, %s4295_s1 }
0x54f7   :  { %v3323_v8 = vpop.permute.xlu0 %3322 }
0x54f8   :  { %v5181_v30 = vadd.f32 %v3323_v8, %v3315_v39  ;;  %v1870_v39 = vadd.f32 %v4859_v42, %v5208_v62  ;;  %v2076_v42 = vmul.f32 0.01, %v2073_v41 }
0x54fa   :  { %4132 = vtanh.f32 %v5181_v30 }
0x5504   :  { %v4133_v44 = vpop.eup %4132 }
0x5505   :  { %3328 = vrot.lane.b32.xlu1 %v4133_v44, %s4295_s1 }
0x5577   :  { %v3329_v54 = vpop.permute.xlu1 %3328 }
0x5578   :  { %v3331_v35 = vmul.f32 %v4131_v4, %v3329_v54 }
0x557a   :  { %v3332_v48 = vpack.c.bf16 %v3331_v35, %v3331_v35 }
0x557c   :  { %3334 = vrot.lane.b32.xlu0 %v3332_v48, %s4290_s0  ;;  %v1873_v48 = vmul.f32 0.01, %v1870_v39 }
0x55ee   :  { %v5186_v21 = vpop.permute.xlu0 %3334 }
0x55ef   :  { %3660 = vmatmul.mubr.msk.bf16.vlgmr.msra.gmra.mrb[92].mxu0 %vm150_vm1, %v5186_v21 }
0x55f0   :  { %3833 = vmatpush3.bf16.msra.mxu0 %v5117_v61  ;;  %3836 = vmatprep.mubr.msk.bf16.mxu0 %vm4298_vm6, %v4297_v43  ;;  %vm2696_vm6 = vcmask 779968  }
0x55f1   :  { %3834 = vmatprep.subr.bf16.mxu0 %v4297_v43 }
0x55f4   :  { %3835 = vmatpush3.bf16.msra.mxu0 %v5123_v5 }
0x55fb   :  { %3837 = vmatmul.mubr.msk.bf16.vlgmr.msra.gmra.mrb[92].mxu0 %vm150_vm1, %v3246_v36 }
0x56ce   :  { %v3414_v57 = vpop.f32.mrb[92].mxu0 }
0x56cf   :  { %v3840_v15 = vadd.f32 %v5153_v63, %v3414_v57  ;;  %v3838_v37 = vpop.f32.mrb[93].mxu0  ;;  %v2276_v57 = vadd.f32 %v4950_v6, %v5208_v62  ;;  %v2482_v6 = vmul.f32 0.01, %v2479_v33 }
0x56d0   :  { %v3417_v60 = vpop.f32.mrb[94].mxu0 }
0x56d1   :  { %4134 = vtanh.f32 %v3840_v15  ;;  %v3839_v3 = vpop.f32.mrb[95].mxu0  ;;  %v3662_v61 = vmul.f32 -1.442695, %v3840_v15 }
0x56d3   :  { %4136 = vpow2.f32 %v3662_v61  ;;  %v2682_v61 = vadd.f32 %v5036_v1, %v5208_v62 }
0x56db   :  { %v4135_v26 = vpop.eup %4134 }
0x56dc   :  { %3430 = vrot.lane.b32.xlu1 %v4135_v26, %s4295_s1  ;;  %v2279_v26 = vmul.f32 0.01, %v2276_v57 }
0x56dd   :  { %v4137_v7 = vpop.eup %4136 }
0x56de   :  { %v3424_v12 = vadd.f32 1.0, %v4137_v7 }
0x56e0   :  { %4138 = vrcp.f32 %v3424_v12 }
0x56ea   :  { %v4139_v43 = vpop.eup %4138 }
0x56eb   :  { %v3428_v45 = vmul.f32 %v4139_v43, %v5159_v49  ;;  %v1261_v49 = vadd.f32 %v4705_v46, %v5208_v62  ;;  %v2885_v46 = vadd.f32 %v5087_v51, %v5208_v62 }
0x56ed   :  { %v1264_v4 = vmul.f32 0.01, %v1261_v49 }
0x574e   :  { %v3431_v28 = vpop.permute.xlu1 %3430 }
0x574f   :  { %v3433_v5 = vmul.f32 %v4139_v43, %v3431_v28 }
0x5751   :  { %3435 = vrot.lane.b32.xlu0 %v3433_v5, %s4295_s1  ;;  %v2685_v5 = vmul.f32 0.01, %v2682_v61 }
0x57c3   :  { %v3436_v63 = vpop.permute.xlu0 %3435 }
0x57c4   :  { %v5200_v25 = vadd.f32 %v3436_v63, %v3428_v45 }
0x57c6   :  { %4140 = vtanh.f32 %v5200_v25 }
0x57d0   :  { %v4141_v55 = vpop.eup %4140 }
0x57d1   :  { %3441 = vrot.lane.b32.xlu1 %v4141_v55, %s4295_s1  ;;  %v2888_v55 = vmul.f32 0.01, %v2885_v46 }
0x57d5   :  { %452 = vrot.lane.b32.xlu1 %v4166_v53, %s4290_s0 }
0x57d9   :  { %861 = vrot.lane.b32.xlu1 %v855_v19, %s4291_s20  ;;  %v3088_v19 = vadd.f32 %v5134_v56, %v5208_v62 }
0x57db   :  { %v3091_v56 = vmul.f32 0.01, %v3088_v19 }
0x57dd   :  { %1267 = vrot.lane.b32.xlu1 %v1261_v49, %s4291_s20 }
0x57e1   :  { %1673 = vrot.lane.b32.xlu1 %v1667_v40, %s4291_s20 }
0x57e5   :  { %2079 = vrot.lane.b32.xlu1 %v2073_v41, %s4291_s20 }
0x57e9   :  { %2485 = vrot.lane.b32.xlu1 %v2479_v33, %s4291_s20 }
0x57ed   :  { %2891 = vrot.lane.b32.xlu1 %v2885_v46, %s4291_s20 }
0x57f1   :  { %3297 = vrot.lane.b32.xlu1 %v5230_v2, %s4291_s20 }
0x57f5   :  { %458 = vrot.lane.b32.xlu1 %v448_v29, %s4291_s20 }
0x5843   :  { %v3442_v14 = vpop.permute.xlu1 %3441 }
0x5844   :  { %v3444_v18 = vmul.f32 %v4139_v43, %v3442_v14 }
0x5846   :  { %v5239_v51 = vpack.c.bf16 %v3444_v18, %v3444_v18 }
0x5847   :  { %v453_v36 = vpop.permute.xlu1 %452 }
0x5848   :  { %v454_v9 = vrot.slane %v453_v36, 2  ;;  %3447 = vrot.lane.b32.xlu0 %v5239_v51, %s4290_s0 }
0x584a   :  { %v456_v32 = vadd.f32 %v454_v9, %v451_v50 }
0x584b   :  { %v862_v11 = vpop.permute.xlu1 %861 }
0x584c   :  { %v5245_v0 = vadd.f32 %v655_v47, %v456_v32  ;;  %658 = vrot.lane.b32.xlu0 %v652_v59, %s4291_s20 }
0x584e   :  { %v859_v16 = vadd.f32 %v858_v22, %v5245_v0 }
0x584f   :  { %v1268_v23 = vpop.permute.xlu1 %1267 }
0x5850   :  { %v864_v58 = vsel %vm461_vm7, %v859_v16, %v862_v11  ;;  %v5252_v27 = vadd.f32 %v1061_v31, %v859_v16  ;;  %1064 = vrot.lane.b32.xlu0 %v1058_v10, %s4291_s20  ;;  %v3294_v11 = vmul.f32 0.01, %v5230_v2 }
0x5851   :  { %866 = vrot.lane.b32.xlu1 %v864_v58, %s4300_s6 }
0x5852   :  { %v1265_v8 = vadd.f32 %v1264_v4, %v5252_v27 }
0x5853   :  { %v1674_v44 = vpop.permute.xlu1 %1673 }
0x5854   :  { %v1270_v54 = vsel %vm461_vm7, %v1265_v8, %v1268_v23  ;;  %v5259_v35 = vadd.f32 %v1467_v38, %v1265_v8  ;;  %1470 = vrot.lane.b32.xlu0 %v1464_v20, %s4291_s20 }
0x5855   :  { %1272 = vrot.lane.b32.xlu1 %v1270_v54, %s4295_s1 }
0x5856   :  { %v1671_v15 = vadd.f32 %v1670_v34, %v5259_v35 }
0x5857   :  { %v2080_v37 = vpop.permute.xlu1 %2079 }
0x5858   :  { %v5266_v60 = vadd.f32 %v1873_v48, %v1671_v15  ;;  %v1676_v3 = vsel %vm461_vm7, %v1671_v15, %v1674_v44  ;;  %1876 = vrot.lane.b32.xlu0 %v1870_v39, %s4291_s20 }
0x5859   :  { %1678 = vrot.lane.b32.xlu1 %v1676_v3, %s4301_s29 }
0x585a   :  { %v2077_v7 = vadd.f32 %v2076_v42, %v5266_v60 }
0x585b   :  { %v2486_v12 = vpop.permute.xlu1 %2485 }
0x585c   :  { %v5273_v43 = vadd.f32 %v2279_v26, %v2077_v7  ;;  %2282 = vrot.lane.b32.xlu0 %v2276_v57, %s4291_s20  ;;  %v2082_v28 = vsel %vm461_vm7, %v2077_v7, %v2080_v37 }
0x585d   :  { %2084 = vrot.lane.b32.xlu1 %v2082_v28, %s4290_s0 }
0x585e   :  { %v2483_v45 = vadd.f32 %v2482_v6, %v5273_v43 }
0x585f   :  { %v2892_v63 = vpop.permute.xlu1 %2891 }
0x5860   :  { %v2488_v53 = vsel %vm461_vm7, %v2483_v45, %v2486_v12  ;;  %v2686_v1 = vadd.f32 %v2685_v5, %v2483_v45  ;;  %2688 = vrot.lane.b32.xlu0 %v2682_v61, %s4291_s20 }
0x5861   :  { %2490 = vrot.lane.b32.xlu1 %v2488_v53, %s4302_s30 }
0x5862   :  { %v2889_v49 = vadd.f32 %v2888_v55, %v2686_v1 }
0x5863   :  { %v3298_v40 = vpop.permute.xlu1 %3297 }
0x5864   :  { %v2894_v41 = vsel %vm461_vm7, %v2889_v49, %v2892_v63  ;;  %3094 = vrot.lane.b32.xlu0 %v3088_v19, %s4291_s20  ;;  %v3092_v47 = vadd.f32 %v3091_v56, %v2889_v49 }
0x5866   :  { %v3295_v22 = vadd.f32 %v3294_v11, %v3092_v47 }
0x5867   :  { %v459_v33 = vpop.permute.xlu1 %458 }
0x5868   :  { %v462_v46 = vsel %vm461_vm7, %v456_v32, %v459_v33  ;;  %v3300_v32 = vsel %vm461_vm7, %v3295_v22, %v3298_v40 }
0x5869   :  { %464 = vst.msk [vmem:[#allocation12] sm:$0x3] %vm463_vm8, %v462_v46  ;;  %vm3102_vm8 = vcmask 911168  }
0x58ba   :  { %v3448_v29 = vpop.permute.xlu0 %3447 }
0x58bb   :  { %3663 = vmatmul.mubr.msk.bf16.vlgmr.msra.gmra.mrb[92].mxu1 %vm150_vm1, %v3448_v29 }
0x58be   :  { %v659_v14 = vpop.permute.xlu0 %658 }
0x58bf   :  { %v661_v57 = vsel %vm461_vm7, %v5245_v0, %v659_v14 }
0x58c2   :  { %v1065_v18 = vpop.permute.xlu0 %1064 }
0x58c3   :  { %v867_v31 = vpop.permute.xlu1 %866  ;;  %v1067_v15 = vsel %vm461_vm7, %v5252_v27, %v1065_v18  ;;  %v3516_v27 = vrot.slane %v5181_v30, %v4442_v13 }
0x58c6   :  { %v1471_v59 = vpop.permute.xlu0 %1470 }
0x58c7   :  { %v1273_v20 = vpop.permute.xlu1 %1272 }
0x58ca   :  { %v1877_v36 = vpop.permute.xlu0 %1876 }
0x58cb   :  { %v1679_v16 = vpop.permute.xlu1 %1678 }
0x58ce   :  { %v2283_v50 = vpop.permute.xlu0 %2282 }
0x58cf   :  { %v2085_v23 = vpop.permute.xlu1 %2084  ;;  %v2285_v0 = vsel %vm461_vm7, %v5273_v43, %v2283_v50 }
0x58d2   :  { %v2689_v9 = vpop.permute.xlu0 %2688 }
0x58d3   :  { %v2691_v10 = vsel %vm461_vm7, %v2686_v1, %v2689_v9  ;;  %v5293_v4 = vpop.permute.xlu1 %2490 }
0x58d4   :  { %2693 = vrot.lane.b32.xlu1 %v2691_v10, %s4303_s2 }
0x58d6   :  { %v3095_v42 = vpop.permute.xlu0 %3094 }
0x58d7   :  { %v3097_v3 = vsel %vm461_vm7, %v3092_v47, %v3095_v42 }
0x58d8   :  { %2896 = vrot.lane.b32.xlu1 %v2894_v41, %s4299_s11 }
0x58dc   :  { %3302 = vrot.lane.b32.xlu1 %v3300_v32, %s4304_s28 }
0x58e0   :  { %3549 = vrot.lane.b32.xlu1 %v5239_v51, %s4299_s11 }
0x5946   :  { %v5295_v58 = vpop.permute.xlu1 %2693 }
0x594a   :  { %v5297_v38 = vpop.permute.xlu1 %2896 }
0x594e   :  { %v5299_v2 = vpop.permute.xlu1 %3302 }
0x5952   :  { %v3550_v39 = vpop.permute.xlu1 %3549 }
0x5953   :  { %v3552_v8 = vsel %vm150_vm1, %v5186_v21, %v3550_v39  ;;  %v1473_v21 = vsel %vm461_vm7, %v5259_v35, %v1471_v59 }
0x5954   :  { %3555 = vst.msk [vmem:[#allocation3] sm:$0x1] %vm111_vm0, %v3552_v8  ;;  %vm2087_vm0 = vcmask 583168  }
0x598e   :  { %v5304_v44 = vpop.f32.mrb[92].mxu1 }
0x598f   :  { %v3488_v51 = vpop.f32.mrb[93].mxu1  ;;  %v3494_v5 = vadd.f32 %v5304_v44, %v5175_v52 }
0x5990   :  { %v3493_v34 = vadd.f32 %v3488_v51, %v5208_v62  ;;  %v3490_v54 = vpop.f32.mrb[94].mxu1  ;;  %v1879_v62 = vsel %vm461_vm7, %v5266_v60, %v1877_v36 }
0x5991   :  { %v3491_v48 = vpop.f32.mrb[95].mxu1  ;;  %v3495_v63 = vadd.f32 %v5172_v24, %v3494_v5 }
0x5992   :  { %3499 = vrot.lane.b32.xlu0 %v3493_v34, %s4291_s20  ;;  %s4308_s20 = smov 72   ;;  %v3496_v37 = vmul.f32 0.01, %v3493_v34 }
0x5994   :  { %v3497_v35 = vadd.f32 %v3496_v37, %v3295_v22 }
0x5996   :  { %663 = vrot.lane.b32.xlu0 %v661_v57, %s4287_s16  ;;  %s4309_s16 = smov 104   ;;  %v3527_v60 = vrot.slane %v3497_v35, %v4442_v13 }
0x599a   :  { %1069 = vrot.lane.b32.xlu0 %v1067_v15, %s4305_s9 }
0x599e   :  { %1475 = vrot.lane.b32.xlu0 %v1473_v21, %s4306_s10 }
0x59a2   :  { %1881 = vrot.lane.b32.xlu0 %v1879_v62, %s4307_s3 }
0x59a6   :  { %2287 = vrot.lane.b32.xlu0 %v2285_v0, %s4308_s20 }
0x59aa   :  { %3517 = vrot.lane.b32.xlu0 %v3516_v27, %s4299_s11 }
0x59ae   :  { %3099 = vrot.lane.b32.xlu0 %v3097_v3, %s4309_s16 }
0x59b2   :  { %3528 = vrot.lane.b32.xlu0 %v3527_v60, %s4290_s0  ;;  %s4311_s0 = smov [#allocation12]  }
0x59b3   :  { %s3562_s4 = sshll.u32 %s4311_s0, 4  ;;  %s3563_s4 = int_to_ptr.vmem [resolvable:$true] %s3562_s4 }
0x59b4   :  { %s4255_s15 = scalar_lea.vmem %s3563_s4, 32  ;;  %p4260_p5 = scmp.lt.s32.totalorder %s3563_s4, %s3563_s4 }
0x59b5   :  { %p4256_p4 = scmp.ne.s32.totalorder %s3563_s4, %s4255_s15  ;;  %p4261_p6 = scmp.lt.s32.totalorder %s4255_s15, %s4255_s15 }
0x59b7   :  { %p4262_p7 = por %p4261_p6, %p4260_p5 }
0x59b9   :  { %p4263_p8 = pnand %p4262_p7, %p4256_p4 }
0x5a04   :  { %v3500_v26 = vpop.permute.xlu0 %3499 }
0x5a05   :  { %v3502_v61 = vsel %vm461_vm7, %v3497_v35, %v3500_v26  ;;  %vm2899_vm7 = vcmask 845568  }
0x5a06   :  { %3504 = vrot.lane.b32.xlu0 %v3502_v61, %s4310_s22 }
0x5a08   :  { %v664_v30 = vpop.permute.xlu0 %663 }
0x5a09   :  { %667 = vst.msk [vmem:[#allocation12] sm:$0x3] %vm666_vm9, %v664_v30  ;;  %vm3305_vm9 = vcmask 976768  }
0x5a0a   :  { %870 = vst.msk [vmem:[#allocation12] sm:$0x3] %vm869_vm10, %v867_v31  ;;  %vm3507_vm10 = vcmask 1042368  }
0x5a0c   :  { %v1070_v7 = vpop.permute.xlu0 %1069 }
0x5a0d   :  { %1073 = vst.msk [vmem:[#allocation12] sm:$0x3] %vm1072_vm11, %v1070_v7 }
0x5a0e   :  { %1276 = vst.msk [vmem:[#allocation12] sm:$0x3] %vm1275_vm12, %v1273_v20 }
0x5a10   :  { %v1476_v12 = vpop.permute.xlu0 %1475 }
0x5a11   :  { %1479 = vst.msk [vmem:[#allocation12] sm:$0x3] %vm1478_vm13, %v1476_v12 }
0x5a12   :  { %1682 = vst.msk [vmem:[#allocation12] sm:$0x3] %vm1681_vm14, %v1679_v16 }
0x5a14   :  { %v1882_v6 = vpop.permute.xlu0 %1881 }
0x5a15   :  { %1885 = vst.msk [vmem:[#allocation12] sm:$0x3] %vm1884_vm15, %v1882_v6 }
0x5a16   :  { %2088 = vst.msk [vmem:[#allocation12] sm:$0x3] %vm2087_vm0, %v2085_v23 }
0x5a18   :  { %v2288_v43 = vpop.permute.xlu0 %2287 }
0x5a19   :  { %2291 = vst.msk [vmem:[#allocation12] sm:$0x3] %vm2290_vm3, %v2288_v43 }
0x5a1a   :  { %2494 = vst.msk [vmem:[#allocation12] sm:$0x3] %vm2493_vm4, %v5293_v4 }
0x5a1b   :  { %2697 = vst.msk [vmem:[#allocation12] sm:$0x3] %vm2696_vm6, %v5295_v58 }
0x5a1c   :  { %v3518_v28 = vpop.permute.xlu0 %3517  ;;  %2900 = vst.msk [vmem:[#allocation12] sm:$0x3] %vm2899_vm7, %v5297_v38 }
0x5a1d   :  { %v3531_v55 = vsel %vm150_vm1, %v3518_v28, %v5200_v25 }
0x5a20   :  { %v3100_v45 = vpop.permute.xlu0 %3099 }
0x5a21   :  { %3103 = vst.msk [vmem:[#allocation12] sm:$0x3] %vm3102_vm8, %v3100_v45 }
0x5a22   :  { %3306 = vst.msk [vmem:[#allocation12] sm:$0x3] %vm3305_vm9, %v5299_v2 }
0x5a24   :  { %v3529_v53 = vpop.permute.xlu0 %3528 }
0x5a25   :  { %v3533_v1 = vsel %vm94_vm2, %v3531_v55, %v3529_v53 }
0x5a26   :  { %v3536_v19 = vcombine.low %v3495_v63, %v3533_v1 }
0x5a28   :  { %v3543_v49 = vrot.slane %v3536_v19, %v4442_v13 }
0x5a2a   :  { %3548 = vst.msk [vmem:[#allocation2] sm:$0xf] %vm4445_vm5, %v3543_v49 }
0x5a78   :  { %v3505_v52 = vpop.permute.xlu0 %3504 }
0x5a79   :  { %3508 = vst.msk [vmem:[#allocation12] sm:$0x3] %vm3507_vm10, %v3505_v52 }
0x5a7a   :  { %4266 = shalt.err (!%p4263_p8)
}
0x5a7b   :  { %s4267_s12 = scalar_lea.hbm %s5359_s8, 32 }
0x5a7c   :  { %p4268_p9 = scmp.ne.s32.totalorder %s5359_s8, %s4267_s12  ;;  %p4271_p10 = scmp.lt.u32.totalorder %s4267_s12, %s5359_s8 }
0x5a7e   :  { %p4273_p11 = pnand %p4271_p10, %p4268_p9 }
0x5a80   :  { %4276 = shalt.err (!%p4273_p11)
}
0x5a81   :  { %3565 = dma.vmem_to_hbm [thread:$0]  %s3563_s4, 32, %s5359_s8, [#allocation6]  }
0x5a82   :  { %4283 = dma.done.wait [#allocation6], 32  }
0x5a83   :  { %4284 = vsyncadd [#allocation6], 4294967264 }
0x5a84   :  { %3569 = vsyncpa [#allocation5], 1 }
0x5a85   :  { %3570 = vsyncpa [#allocation8], 1 }
0x5a86   :  { %3571 = vsyncpa [#allocation11], 1 }
0x5a87   :  { %3572 = vsyncpa [#allocation6], 1 }

</bundles_post_ra>
